<compile_context>
chip_gen: v7x
topology: tpu7x:2x2x1
jax: 0.10.0
libtpu: 0.0.40
codegen_flags: <defaults>
</compile_context>

<pallas_src>
import jax
import jax.numpy as jnp
from jax.experimental import pallas as pl
from jax.experimental.pallas import tpu as pltpu


# ---------------------------------------------------------------------------
# In-kernel helpers (operate on VMEM-resident values; batch dim squeezed off)
# ---------------------------------------------------------------------------
def _shift_cols(a, direction):
    """Shift along the packed-column axis (axis 1) with zero fill.

    direction=+1: out[:, j] = a[:, j-1] (zero at j == 0)
    direction=-1: out[:, j] = a[:, j+1] (zero at the right edge)
    """
    zero = jnp.zeros_like(a[:, :1])
    if direction > 0:
        return jnp.concatenate([zero, a[:, :-1]], axis=1)
    return jnp.concatenate([a[:, 1:], zero], axis=1)


def _pad_rows(a):
    """Zero-pad one row on top and bottom (axis 0 -- above the tiled dims)."""
    zero = jnp.zeros_like(a[:1])
    return jnp.concatenate([zero, a, zero], axis=0)


def _conv3x3_packed(v, wc, wl, wr, b, *, relu=False):
    """3x3 stride-1 'same' conv on a column-pair packed tensor via per-tap dots.

    v : (H, Wp, 2*Cin) f32; channels [0:Cin] = even image cols, [Cin:] = odd.
    wc: (3, 2*Cin, 2*Cout) bf16  packed-column offset  0 taps (one per ky)
    wl: (3,   Cin, 2*Cout) bf16  packed-column offset -1 taps (vo[j-1] -> even out)
    wr: (3,   Cin, 2*Cout) bf16  packed-column offset +1 taps (ve[j+1] -> odd out)
    b : (1, 2*Cout) f32
    Returns (H, Wp, 2*Cout) f32.  f32 accumulation, bf16 MXU inputs.
    """
    H, Wp, C2 = v.shape
    C = C2 // 2
    cout2 = wc.shape[-1]
    vb = v.astype(jnp.bfloat16)
    p_c = _pad_rows(vb)                                 # (H+2, Wp, 2C)
    p_l = _pad_rows(_shift_cols(vb[..., C:], +1))       # vo at column j-1
    p_r = _pad_rows(_shift_cols(vb[..., :C], -1))       # ve at column j+1
    acc = jnp.zeros((H * Wp, cout2), jnp.float32)
    for ky in range(3):                                 # unrolled at trace time
        acc += jnp.dot(p_c[ky:ky + H].reshape(H * Wp, C2), wc[ky],
                       preferred_element_type=jnp.float32)
        acc += jnp.dot(p_l[ky:ky + H].reshape(H * Wp, C), wl[ky],
                       preferred_element_type=jnp.float32)
        acc += jnp.dot(p_r[ky:ky + H].reshape(H * Wp, C), wr[ky],
                       preferred_element_type=jnp.float32)
    out = acc + b
    if relu:
        out = jnp.maximum(out, 0.0)
    return out.reshape(H, Wp, cout2)


def _down_conv_packed(v, wc, wl, b):
    """3x3 stride-2 'same' conv, computed directly on the needed output pixels.

    v : (H, Wp, 2*Cin) f32 packed.  Output is NOT packed: (H/2, Wp, Cout) f32
        (Wp == W/2 equals the stride-2 output width).
    wc: (3, 2*Cin, Cout) bf16   input packed col j2 taps
    wl: (3,   Cin, Cout) bf16   input packed col j2-1 taps (vo only)
    """
    H, Wp, C2 = v.shape
    C = C2 // 2
    Ho = H // 2
    cout = wc.shape[-1]
    vb = v.astype(jnp.bfloat16)
    p_c = _pad_rows(vb)                                 # (H+2, Wp, 2C)
    p_l = _pad_rows(_shift_cols(vb[..., C:], +1))       # vo at column j2-1
    acc = jnp.zeros((Ho * Wp, cout), jnp.float32)
    for ky in range(3):
        # output row i2 reads input rows 2*i2 + ky - 1  -> even local rows of the slice
        tc = p_c[ky:ky + H].reshape(Ho, 2, Wp, C2)[:, 0].reshape(Ho * Wp, C2)
        tl = p_l[ky:ky + H].reshape(Ho, 2, Wp, C)[:, 0].reshape(Ho * Wp, C)
        acc += jnp.dot(tc, wc[ky], preferred_element_type=jnp.float32)
        acc += jnp.dot(tl, wl[ky], preferred_element_type=jnp.float32)
    return (acc + b).reshape(Ho, Wp, cout)


def _conv3x3_lowres(v, w, b, *, relu=False):
    """Ordinary 3x3 stride-1 'same' conv (low-res branch) via per-tap dots.

    v: (Ho, Wo, Cin) f32;  w: (3, 3, Cin, Cout) bf16;  b: (1, Cout) f32.
    """
    Ho, Wo, Cin = v.shape
    cout = w.shape[-1]
    vb = v.astype(jnp.bfloat16)
    pads = [_pad_rows(_shift_cols(vb, +1)),             # input col j-1
            _pad_rows(vb),                              # input col j
            _pad_rows(_shift_cols(vb, -1))]             # input col j+1
    acc = jnp.zeros((Ho * Wo, cout), jnp.float32)
    for ky in range(3):
        for kx in range(3):
            tap = pads[kx][ky:ky + Ho].reshape(Ho * Wo, Cin)
            acc += jnp.dot(tap, w[ky, kx], preferred_element_type=jnp.float32)
    out = acc + b
    if relu:
        out = jnp.maximum(out, 0.0)
    return out.reshape(Ho, Wo, cout)


def _upsample2x_col_phases(y):
    """Bilinear x2 upsample (align_corners=False).

    y: (Ho, Wo, C) f32 -> (up_even, up_odd), each (2*Ho, Wo, C) f32, the even /
    odd output-column phases (matching the packed layout).
    """
    Ho, Wo, C = y.shape
    # rows: out[2k] = 0.25*y[k-1] + 0.75*y[k]; out[2k+1] = 0.75*y[k] + 0.25*y[k+1]
    y_prev = jnp.concatenate([y[:1], y[:Ho - 1]], axis=0)
    y_next = jnp.concatenate([y[1:], y[Ho - 1:]], axis=0)
    row_even = 0.25 * y_prev + 0.75 * y
    row_odd = 0.75 * y + 0.25 * y_next
    u = jnp.concatenate([jnp.expand_dims(row_even, 1),
                         jnp.expand_dims(row_odd, 1)], axis=1)
    u = u.reshape(2 * Ho, Wo, C)                        # rows interleaved
    # columns, kept as two phases
    u_prev = jnp.concatenate([u[:, :1], u[:, :Wo - 1]], axis=1)
    u_next = jnp.concatenate([u[:, 1:], u[:, Wo - 1:]], axis=1)
    up_even = 0.25 * u_prev + 0.75 * u                  # output col 2j
    up_odd = 0.75 * u + 0.25 * u_next                   # output col 2j+1
    return up_even, up_odd


# ---------------------------------------------------------------------------
# Fused kernel: tra1 + tra2 + upsample + fution, one HBM read / one HBM write
# ---------------------------------------------------------------------------
def _tra_block_kernel(x_ref,
                      r1a_c_ref, r1a_l_ref, r1a_r_ref, r1a_b_ref,
                      r1b_c_ref, r1b_l_ref, r1b_r_ref, r1b_b_ref,
                      d_c_ref, d_l_ref, d_b_ref,
                      r2a_w_ref, r2a_b_ref,
                      r2b_w_ref, r2b_b_ref,
                      f_w_ref, f_b_ref,
                      o_ref):
    x = x_ref[0].astype(jnp.float32)                    # (H, Wp, 2C) packed
    H, Wp, C2 = x.shape

    # --- stage 1: x1 = x + conv(relu(conv(x))) ------------------------------
    t = _conv3x3_packed(x, r1a_c_ref[...], r1a_l_ref[...], r1a_r_ref[...],
                        r1a_b_ref[...], relu=True)
    r = _conv3x3_packed(t, r1b_c_ref[...], r1b_l_ref[...], r1b_r_ref[...],
                        r1b_b_ref[...], relu=False)
    x1 = x + r                                          # stays in VMEM

    # --- stage 2: stride-2 conv + ResBlock(2dim) -----------------------------
    y = _down_conv_packed(x, d_c_ref[...], d_l_ref[...], d_b_ref[...])
    t2 = _conv3x3_lowres(y, r2a_w_ref[...], r2a_b_ref[...], relu=True)
    r2 = _conv3x3_lowres(t2, r2b_w_ref[...], r2b_b_ref[...], relu=False)
    y2 = y + r2                                         # stays in VMEM

    # --- stage 3: bilinear x2 upsample + 1x1 fution (single block-diag dot) --
    up_e, up_o = _upsample2x_col_phases(y2)             # each (H, Wp, 2dim)
    m = H * Wp
    cat = jnp.concatenate(
        [x1.reshape(m, C2).astype(jnp.bfloat16),
         up_e.reshape(m, -1).astype(jnp.bfloat16),
         up_o.reshape(m, -1).astype(jnp.bfloat16)], axis=-1)     # (m, 6*dim)
    out = (jnp.dot(cat, f_w_ref[...], preferred_element_type=jnp.float32)
           + f_b_ref[...])                               # (m, 2*dim) packed
    o_ref[0] = out.reshape(H, Wp, -1).astype(o_ref.dtype)


# ---------------------------------------------------------------------------
# Host-side wrapper
# ---------------------------------------------------------------------------
def _compiler_params():
    cap = 64 * 1024 * 1024                              # conservative default
    try:
        cap = int(getattr(pltpu.get_tpu_info(), "vmem_capacity_bytes", cap))
    except Exception:
        pass
    # ~48 MiB on v7x (64 MiB physical), ~96 MiB on v5e/v6e (128 MiB physical)
    vmem_limit = int(min(cap * 3 // 4, 100 * 1024 * 1024))
    return pltpu.CompilerParams(
        dimension_semantics=("parallel",),
        vmem_limit_bytes=vmem_limit,
    )


def _batch_spec(block_shape):
    return pl.BlockSpec(block_shape, lambda n: (n, 0, 0, 0))


def _whole_spec(arr):
    zeros = (0,) * arr.ndim
    return pl.BlockSpec(arr.shape, lambda n, _z=zeros: _z)


def tra_block_forward(x_nchw, kp):
    """TraBlock forward. x_nchw: (N, dim, H, W) f32; kp: prepare_params(...)."""
    N, C, H, W = x_nchw.shape
    assert H % 2 == 0 and W % 2 == 0, "even spatial sizes required"
    Wp = W // 2
    C2 = 2 * C
    Cf2 = kp["f_b"].shape[-1]                           # 2*dim (packed output)

    # NCHW -> NHWC -> column-pair packed (N, H, W/2, 2C); the reshape is free.
    x = jnp.transpose(x_nchw, (0, 2, 3, 1)).reshape(N, H, Wp, C2)

    weights = [kp["r1a_c"], kp["r1a_l"], kp["r1a_r"], kp["r1a_b"],
               kp["r1b_c"], kp["r1b_l"], kp["r1b_r"], kp["r1b_b"],
               kp["d_c"], kp["d_l"], kp["d_b"],
               kp["r2a_w"], kp["r2a_b"],
               kp["r2b_w"], kp["r2b_b"],
               kp["f_w"], kp["f_b"]]

    out_packed = pl.pallas_call(
        _tra_block_kernel,
        out_shape=jax.ShapeDtypeStruct((N, H, Wp, Cf2), x.dtype),
        grid=(N,),
        in_specs=[_batch_spec((1, H, Wp, C2))] + [_whole_spec(w) for w in weights],
        out_specs=_batch_spec((1, H, Wp, Cf2)),
        compiler_params=_compiler_params(),
    )(x, *weights)

    # packed -> NHWC (free reshape) -> NCHW
    out = out_packed.reshape(N, H, W, Cf2 // 2)
    return jnp.transpose(out, (0, 3, 1, 2))


# ---------------------------------------------------------------------------
# Parameters (PyTorch layouts) + conversion to kernel layouts
# ---------------------------------------------------------------------------
def make_params(key, dim):
    ks = jax.random.split(key, 12)

    def conv_w(k, cout, cin, kh=3, kw=3):
        scale = 1.0 / float(cin * kh * kw) ** 0.5
        return jax.random.normal(k, (cout, cin, kh, kw), jnp.float32) * scale

    def conv_b(k, cout):
        return jax.random.normal(k, (cout,), jnp.float32) * 0.01

    return {
        "r1a_w": conv_w(ks[0], dim, dim), "r1a_b": conv_b(ks[1], dim),
        "r1b_w": conv_w(ks[2], dim, dim), "r1b_b": conv_b(ks[3], dim),
        "d_w": conv_w(ks[4], 2 * dim, dim), "d_b": conv_b(ks[5], 2 * dim),
        "r2a_w": conv_w(ks[6], 2 * dim, 2 * dim), "r2a_b": conv_b(ks[7], 2 * dim),
        "r2b_w": conv_w(ks[8], 2 * dim, 2 * dim), "r2b_b": conv_b(ks[9], 2 * dim),
        "f_w": conv_w(ks[10], dim, 3 * dim, 1, 1), "f_b": conv_b(ks[11], dim),
    }


def _pack_w2c(w_oihw):
    """Torch (Cout, Cin, 3, 3) -> per-tap weights for the column-pair packed conv.

    Returns (center (3,2Cin,2Cout), left (3,Cin,2Cout), right (3,Cin,2Cout)) bf16.
    Packed output channels: [0:Cout] = even output column, [Cout:] = odd.
    """
    wt = jnp.transpose(w_oihw, (2, 3, 1, 0))            # (ky, kx, Cin, Cout)
    cin, cout = wt.shape[2], wt.shape[3]
    z = jnp.zeros((cin, cout), wt.dtype)
    center, left, right = [], [], []
    for ky in range(3):
        center.append(jnp.concatenate([
            jnp.concatenate([wt[ky, 1], wt[ky, 0]], axis=1),   # ve[j] rows
            jnp.concatenate([wt[ky, 2], wt[ky, 1]], axis=1),   # vo[j] rows
        ], axis=0))
        left.append(jnp.concatenate([wt[ky, 0], z], axis=1))   # vo[j-1] -> even
        right.append(jnp.concatenate([z, wt[ky, 2]], axis=1))  # ve[j+1] -> odd
    as_bf16 = lambda xs: jnp.stack(xs).astype(jnp.bfloat16)
    return as_bf16(center), as_bf16(left), as_bf16(right)


def _pack_wdown(w_oihw):
    """Torch (Cout, Cin, 3, 3) stride-2 conv -> per-tap packed-input weights."""
    wt = jnp.transpose(w_oihw, (2, 3, 1, 0))            # (ky, kx, Cin, Cout)
    center = [jnp.concatenate([wt[ky, 1], wt[ky, 2]], axis=0) for ky in range(3)]
    left = [wt[ky, 0] for ky in range(3)]
    return (jnp.stack(center).astype(jnp.bfloat16),
            jnp.stack(left).astype(jnp.bfloat16))


def _pack_wfuse(wf_oihw, dim):
    """1x1 fution conv -> block-diagonal (6*dim, 2*dim) weight for the packed slab.

    Input slab lane order: [x1_even (dim), x1_odd (dim), up_even (2dim), up_odd (2dim)].
    Output lane order:     [out_even (dim), out_odd (dim)].
    """
    wf = wf_oihw[:, :, 0, 0]                            # (dim, 3*dim)
    w1 = jnp.transpose(wf[:, :dim])                     # (dim, dim)   x1 part
    w2 = jnp.transpose(wf[:, dim:])                     # (2dim, dim)  upsampled part
    z1, z2 = jnp.zeros_like(w1), jnp.zeros_like(w2)
    w_fuse = jnp.concatenate([
        jnp.concatenate([w1, z1], axis=1),
        jnp.concatenate([z1, w1], axis=1),
        jnp.concatenate([w2, z2], axis=1),
        jnp.concatenate([z2, w2], axis=1),
    ], axis=0)
    return w_fuse.astype(jnp.bfloat16)


def prepare_params(p, dim):
    def dup_b(b):                                       # packed even/odd bias
        return jnp.concatenate([b, b]).reshape(1, -1).astype(jnp.float32)

    def plain_b(b):
        return b.reshape(1, -1).astype(jnp.float32)

    r1a_c, r1a_l, r1a_r = _pack_w2c(p["r1a_w"])
    r1b_c, r1b_l, r1b_r = _pack_w2c(p["r1b_w"])
    d_c, d_l = _pack_wdown(p["d_w"])
    return {
        "r1a_c": r1a_c, "r1a_l": r1a_l, "r1a_r": r1a_r, "r1a_b": dup_b(p["r1a_b"]),
        "r1b_c": r1b_c, "r1b_l": r1b_l, "r1b_r": r1b_r, "r1b_b": dup_b(p["r1b_b"]),
        "d_c": d_c, "d_l": d_l, "d_b": plain_b(p["d_b"]),
        "r2a_w": jnp.transpose(p["r2a_w"], (2, 3, 1, 0)).astype(jnp.bfloat16),
        "r2a_b": plain_b(p["r2a_b"]),
        "r2b_w": jnp.transpose(p["r2b_w"], (2, 3, 1, 0)).astype(jnp.bfloat16),
        "r2b_b": plain_b(p["r2b_b"]),
        "f_w": _pack_wfuse(p["f_w"], dim), "f_b": dup_b(p["f_b"]),
    }


# ---------------------------------------------------------------------------
# Pure-JAX reference (mirrors the PyTorch module) for a structural sanity check
# ---------------------------------------------------------------------------
def _conv_ref(x, w, b, stride=1, pad=1):
    out = jax.lax.conv_general_dilated(
        x, w, window_strides=(stride, stride), padding=((pad, pad), (pad, pad)),
        dimension_numbers=("NCHW", "OIHW", "NCHW"))
    return out + b[None, :, None, None]


def _resblock_ref(x, wa, ba, wb, bb):
    return x + _conv_ref(jax.nn.relu(_conv_ref(x, wa, ba)), wb, bb)


def _upsample2x_ref(x):
    """F.interpolate(scale_factor=2, mode='bilinear', align_corners=False)."""
    def lerp(v, axis, size):
        o = jnp.arange(2 * size)
        src = jnp.clip((o + 0.5) / 2.0 - 0.5, 0.0, size - 1.0)
        lo = jnp.floor(src).astype(jnp.int32)
        hi = jnp.minimum(lo + 1, size - 1)
        t = (src - lo).astype(v.dtype)
        shape = [1] * v.ndim
        shape[axis] = 2 * size
        t = t.reshape(shape)
        return jnp.take(v, lo, axis=axis) * (1.0 - t) + jnp.take(v, hi, axis=axis) * t

    x = lerp(x, 2, x.shape[2])
    x = lerp(x, 3, x.shape[3])
    return x


def tra_block_ref(x, p):
    x1 = _resblock_ref(x, p["r1a_w"], p["r1a_b"], p["r1b_w"], p["r1b_b"])
    y = _conv_ref(x, p["d_w"], p["d_b"], stride=2)
    y2 = _resblock_ref(y, p["r2a_w"], p["r2a_b"], p["r2b_w"], p["r2b_b"])
    x2 = _upsample2x_ref(y2)
    cat = jnp.concatenate([x1, x2], axis=1)
    return _conv_ref(cat, p["f_w"], p["f_b"], stride=1, pad=0)


# ---------------------------------------------------------------------------
# Demo
# ---------------------------------------------------------------------------
if __name__ == "__main__":
    N, dim, H, W = 2, 4, 16, 16
    key = jax.random.PRNGKey(0)
    k_params, k_x = jax.random.split(key)
    params = make_params(k_params, dim)
    kparams = prepare_params(params, dim)
    x = jax.random.normal(k_x, (N, dim, H, W), jnp.float32)

    fwd = jax.jit(lambda xx: tra_block_forward(xx, kparams))
    out = jax.block_until_ready(fwd(x))
    assert out.shape == (N, dim, H, W), out.shape

    # Structural sanity check against a pure-JAX/XLA reference.  The kernel uses
    # bf16 MXU inputs (f32 accumulation) and the XLA reference runs at default
    # TPU matmul precision, hence the loose tolerance.
    ref = tra_block_ref(x, params)
    max_err = float(jnp.max(jnp.abs(out - ref)))
    assert max_err < 1.5e-1, f"mismatch vs reference: max abs err = {max_err}"

    print("KERNEL_OK")
</pallas_src>

<mosaic_0001>
module attributes {stable_mosaic.version = 11 : i64} {
  func.func @_tra_block_kernel(%arg0: i32, %arg1: memref<1x16x8x8xf32, #tpu.memory_space<vmem>>, %arg2: memref<3x8x8xbf16, #tpu.memory_space<vmem>>, %arg3: memref<3x4x8xbf16, #tpu.memory_space<vmem>>, %arg4: memref<3x4x8xbf16, #tpu.memory_space<vmem>>, %arg5: memref<1x8xf32, #tpu.memory_space<vmem>>, %arg6: memref<3x8x8xbf16, #tpu.memory_space<vmem>>, %arg7: memref<3x4x8xbf16, #tpu.memory_space<vmem>>, %arg8: memref<3x4x8xbf16, #tpu.memory_space<vmem>>, %arg9: memref<1x8xf32, #tpu.memory_space<vmem>>, %arg10: memref<3x8x8xbf16, #tpu.memory_space<vmem>>, %arg11: memref<3x4x8xbf16, #tpu.memory_space<vmem>>, %arg12: memref<1x8xf32, #tpu.memory_space<vmem>>, %arg13: memref<3x3x8x8xbf16, #tpu.memory_space<vmem>>, %arg14: memref<1x8xf32, #tpu.memory_space<vmem>>, %arg15: memref<3x3x8x8xbf16, #tpu.memory_space<vmem>>, %arg16: memref<1x8xf32, #tpu.memory_space<vmem>>, %arg17: memref<24x8xbf16, #tpu.memory_space<vmem>>, %arg18: memref<1x8xf32, #tpu.memory_space<vmem>>, %arg19: memref<1x16x8x8xf32, #tpu.memory_space<vmem>>) attributes {dimension_semantics = [#tpu.dimension_semantics<parallel>], iteration_bounds = array<i64: 2>, scalar_prefetch = 0 : i64, scratch_operands = 0 : i64, tpu.core_type = #tpu.core_type<tc>, window_params = [{transform_indices = @transform_0, window_bounds = array<i64: 1, 16, 8, 8>}, {pipeline_mode = #tpu.pipeline_mode<synchronous>, transform_indices = @transform_1, window_bounds = array<i64: 3, 8, 8>}, {pipeline_mode = #tpu.pipeline_mode<synchronous>, transform_indices = @transform_2, window_bounds = array<i64: 3, 4, 8>}, {pipeline_mode = #tpu.pipeline_mode<synchronous>, transform_indices = @transform_3, window_bounds = array<i64: 3, 4, 8>}, {pipeline_mode = #tpu.pipeline_mode<synchronous>, transform_indices = @transform_4, window_bounds = array<i64: 1, 8>}, {pipeline_mode = #tpu.pipeline_mode<synchronous>, transform_indices = @transform_5, window_bounds = array<i64: 3, 8, 8>}, {pipeline_mode = #tpu.pipeline_mode<synchronous>, transform_indices = @transform_6, window_bounds = array<i64: 3, 4, 8>}, {pipeline_mode = #tpu.pipeline_mode<synchronous>, transform_indices = @transform_7, window_bounds = array<i64: 3, 4, 8>}, {pipeline_mode = #tpu.pipeline_mode<synchronous>, transform_indices = @transform_8, window_bounds = array<i64: 1, 8>}, {pipeline_mode = #tpu.pipeline_mode<synchronous>, transform_indices = @transform_9, window_bounds = array<i64: 3, 8, 8>}, {pipeline_mode = #tpu.pipeline_mode<synchronous>, transform_indices = @transform_10, window_bounds = array<i64: 3, 4, 8>}, {pipeline_mode = #tpu.pipeline_mode<synchronous>, transform_indices = @transform_11, window_bounds = array<i64: 1, 8>}, {pipeline_mode = #tpu.pipeline_mode<synchronous>, transform_indices = @transform_12, window_bounds = array<i64: 3, 3, 8, 8>}, {pipeline_mode = #tpu.pipeline_mode<synchronous>, transform_indices = @transform_13, window_bounds = array<i64: 1, 8>}, {pipeline_mode = #tpu.pipeline_mode<synchronous>, transform_indices = @transform_14, window_bounds = array<i64: 3, 3, 8, 8>}, {pipeline_mode = #tpu.pipeline_mode<synchronous>, transform_indices = @transform_15, window_bounds = array<i64: 1, 8>}, {pipeline_mode = #tpu.pipeline_mode<synchronous>, transform_indices = @transform_16, window_bounds = array<i64: 24, 8>}, {pipeline_mode = #tpu.pipeline_mode<synchronous>, transform_indices = @transform_17, window_bounds = array<i64: 1, 8>}, {transform_indices = @transform_18, window_bounds = array<i64: 1, 16, 8, 8>}]} {
    %c0 = arith.constant 0 : index
    %c0_0 = arith.constant 0 : index
    %c0_1 = arith.constant 0 : index
    %c0_2 = arith.constant 0 : index
    %0 = vector.load %arg1[%c0, %c0_0, %c0_1, %c0_2] : memref<1x16x8x8xf32, #tpu.memory_space<vmem>>, vector<1x16x8x8xf32>
    %1 = vector.shape_cast %0 : vector<1x16x8x8xf32> to vector<16x8x8xf32>
    %c0_3 = arith.constant 0 : index
    %c0_4 = arith.constant 0 : index
    %c0_5 = arith.constant 0 : index
    %2 = vector.load %arg2[%c0_3, %c0_4, %c0_5] : memref<3x8x8xbf16, #tpu.memory_space<vmem>>, vector<3x8x8xbf16>
    %c0_6 = arith.constant 0 : index
    %c0_7 = arith.constant 0 : index
    %c0_8 = arith.constant 0 : index
    %3 = vector.load %arg3[%c0_6, %c0_7, %c0_8] : memref<3x4x8xbf16, #tpu.memory_space<vmem>>, vector<3x4x8xbf16>
    %c0_9 = arith.constant 0 : index
    %c0_10 = arith.constant 0 : index
    %c0_11 = arith.constant 0 : index
    %4 = vector.load %arg4[%c0_9, %c0_10, %c0_11] : memref<3x4x8xbf16, #tpu.memory_space<vmem>>, vector<3x4x8xbf16>
    %c0_12 = arith.constant 0 : index
    %c0_13 = arith.constant 0 : index
    %5 = vector.load %arg5[%c0_12, %c0_13] : memref<1x8xf32, #tpu.memory_space<vmem>>, vector<1x8xf32>
    %6 = arith.truncf %1 : vector<16x8x8xf32> to vector<16x8x8xbf16>
    %cst = arith.constant 0.000000e+00 : bf16
    %7 = vector.broadcast %cst : bf16 to vector<1x8x8xbf16>
    %8 = tpu.concatenate %7, %6, %7 in 0 : vector<1x8x8xbf16>, vector<16x8x8xbf16>, vector<1x8x8xbf16> -> vector<18x8x8xbf16>
    %9 = vector.extract_strided_slice %6 {offsets = [0, 0, 4], sizes = [16, 8, 4], strides = [1, 1, 1]} : vector<16x8x8xbf16> to vector<16x8x4xbf16>
    %cst_14 = arith.constant 0.000000e+00 : bf16
    %10 = vector.broadcast %cst_14 : bf16 to vector<16x1x4xbf16>
    %11 = vector.extract_strided_slice %9 {offsets = [0, 0, 0], sizes = [16, 7, 4], strides = [1, 1, 1]} : vector<16x8x4xbf16> to vector<16x7x4xbf16>
    %12 = tpu.concatenate %10, %11 in 1 : vector<16x1x4xbf16>, vector<16x7x4xbf16> -> vector<16x8x4xbf16>
    %cst_15 = arith.constant 0.000000e+00 : bf16
    %13 = vector.broadcast %cst_15 : bf16 to vector<1x8x4xbf16>
    %14 = tpu.concatenate %13, %12, %13 in 0 : vector<1x8x4xbf16>, vector<16x8x4xbf16>, vector<1x8x4xbf16> -> vector<18x8x4xbf16>
    %15 = vector.extract_strided_slice %6 {offsets = [0, 0, 0], sizes = [16, 8, 4], strides = [1, 1, 1]} : vector<16x8x8xbf16> to vector<16x8x4xbf16>
    %cst_16 = arith.constant 0.000000e+00 : bf16
    %16 = vector.broadcast %cst_16 : bf16 to vector<16x1x4xbf16>
    %17 = vector.extract_strided_slice %15 {offsets = [0, 1, 0], sizes = [16, 7, 4], strides = [1, 1, 1]} : vector<16x8x4xbf16> to vector<16x7x4xbf16>
    %18 = tpu.concatenate %17, %16 in 1 : vector<16x7x4xbf16>, vector<16x1x4xbf16> -> vector<16x8x4xbf16>
    %cst_17 = arith.constant 0.000000e+00 : bf16
    %19 = vector.broadcast %cst_17 : bf16 to vector<1x8x4xbf16>
    %20 = tpu.concatenate %19, %18, %19 in 0 : vector<1x8x4xbf16>, vector<16x8x4xbf16>, vector<1x8x4xbf16> -> vector<18x8x4xbf16>
    %cst_18 = arith.constant 0.000000e+00 : f32
    %21 = vector.broadcast %cst_18 : f32 to vector<128x8xf32>
    %22 = vector.extract_strided_slice %8 {offsets = [0, 0, 0], sizes = [16, 8, 8], strides = [1, 1, 1]} : vector<18x8x8xbf16> to vector<16x8x8xbf16>
    %23 = vector.shape_cast %22 : vector<16x8x8xbf16> to vector<128x8xbf16>
    %24 = vector.extract_strided_slice %2 {offsets = [0, 0, 0], sizes = [1, 8, 8], strides = [1, 1, 1]} : vector<3x8x8xbf16> to vector<1x8x8xbf16>
    %25 = vector.shape_cast %24 : vector<1x8x8xbf16> to vector<8x8xbf16>
    %cst_19 = arith.constant dense<0.000000e+00> : vector<128x8xf32>
    %26 = tpu.matmul %23, %25, %cst_19 {dimension_numbers = #tpu.dot_dimension_numbers<[1], [0], [0], [1], [0, 0, 1, 1], [], []>} : vector<128x8xbf16>, vector<8x8xbf16>, vector<128x8xf32> -> vector<128x8xf32>
    %27 = arith.addf %21, %26 : vector<128x8xf32>
    %28 = vector.extract_strided_slice %14 {offsets = [0, 0, 0], sizes = [16, 8, 4], strides = [1, 1, 1]} : vector<18x8x4xbf16> to vector<16x8x4xbf16>
    %29 = vector.shape_cast %28 : vector<16x8x4xbf16> to vector<128x4xbf16>
    %30 = vector.extract_strided_slice %3 {offsets = [0, 0, 0], sizes = [1, 4, 8], strides = [1, 1, 1]} : vector<3x4x8xbf16> to vector<1x4x8xbf16>
    %31 = vector.shape_cast %30 : vector<1x4x8xbf16> to vector<4x8xbf16>
    %cst_20 = arith.constant dense<0.000000e+00> : vector<128x8xf32>
    %32 = tpu.matmul %29, %31, %cst_20 {dimension_numbers = #tpu.dot_dimension_numbers<[1], [0], [0], [1], [0, 0, 1, 1], [], []>} : vector<128x4xbf16>, vector<4x8xbf16>, vector<128x8xf32> -> vector<128x8xf32>
    %33 = arith.addf %27, %32 : vector<128x8xf32>
    %34 = vector.extract_strided_slice %20 {offsets = [0, 0, 0], sizes = [16, 8, 4], strides = [1, 1, 1]} : vector<18x8x4xbf16> to vector<16x8x4xbf16>
    %35 = vector.shape_cast %34 : vector<16x8x4xbf16> to vector<128x4xbf16>
    %36 = vector.extract_strided_slice %4 {offsets = [0, 0, 0], sizes = [1, 4, 8], strides = [1, 1, 1]} : vector<3x4x8xbf16> to vector<1x4x8xbf16>
    %37 = vector.shape_cast %36 : vector<1x4x8xbf16> to vector<4x8xbf16>
    %cst_21 = arith.constant dense<0.000000e+00> : vector<128x8xf32>
    %38 = tpu.matmul %35, %37, %cst_21 {dimension_numbers = #tpu.dot_dimension_numbers<[1], [0], [0], [1], [0, 0, 1, 1], [], []>} : vector<128x4xbf16>, vector<4x8xbf16>, vector<128x8xf32> -> vector<128x8xf32>
    %39 = arith.addf %33, %38 : vector<128x8xf32>
    %40 = vector.extract_strided_slice %8 {offsets = [1, 0, 0], sizes = [16, 8, 8], strides = [1, 1, 1]} : vector<18x8x8xbf16> to vector<16x8x8xbf16>
    %41 = vector.shape_cast %40 : vector<16x8x8xbf16> to vector<128x8xbf16>
    %42 = vector.extract_strided_slice %2 {offsets = [1, 0, 0], sizes = [1, 8, 8], strides = [1, 1, 1]} : vector<3x8x8xbf16> to vector<1x8x8xbf16>
    %43 = vector.shape_cast %42 : vector<1x8x8xbf16> to vector<8x8xbf16>
    %cst_22 = arith.constant dense<0.000000e+00> : vector<128x8xf32>
    %44 = tpu.matmul %41, %43, %cst_22 {dimension_numbers = #tpu.dot_dimension_numbers<[1], [0], [0], [1], [0, 0, 1, 1], [], []>} : vector<128x8xbf16>, vector<8x8xbf16>, vector<128x8xf32> -> vector<128x8xf32>
    %45 = arith.addf %39, %44 : vector<128x8xf32>
    %46 = vector.extract_strided_slice %14 {offsets = [1, 0, 0], sizes = [16, 8, 4], strides = [1, 1, 1]} : vector<18x8x4xbf16> to vector<16x8x4xbf16>
    %47 = vector.shape_cast %46 : vector<16x8x4xbf16> to vector<128x4xbf16>
    %48 = vector.extract_strided_slice %3 {offsets = [1, 0, 0], sizes = [1, 4, 8], strides = [1, 1, 1]} : vector<3x4x8xbf16> to vector<1x4x8xbf16>
    %49 = vector.shape_cast %48 : vector<1x4x8xbf16> to vector<4x8xbf16>
    %cst_23 = arith.constant dense<0.000000e+00> : vector<128x8xf32>
    %50 = tpu.matmul %47, %49, %cst_23 {dimension_numbers = #tpu.dot_dimension_numbers<[1], [0], [0], [1], [0, 0, 1, 1], [], []>} : vector<128x4xbf16>, vector<4x8xbf16>, vector<128x8xf32> -> vector<128x8xf32>
    %51 = arith.addf %45, %50 : vector<128x8xf32>
    %52 = vector.extract_strided_slice %20 {offsets = [1, 0, 0], sizes = [16, 8, 4], strides = [1, 1, 1]} : vector<18x8x4xbf16> to vector<16x8x4xbf16>
    %53 = vector.shape_cast %52 : vector<16x8x4xbf16> to vector<128x4xbf16>
    %54 = vector.extract_strided_slice %4 {offsets = [1, 0, 0], sizes = [1, 4, 8], strides = [1, 1, 1]} : vector<3x4x8xbf16> to vector<1x4x8xbf16>
    %55 = vector.shape_cast %54 : vector<1x4x8xbf16> to vector<4x8xbf16>
    %cst_24 = arith.constant dense<0.000000e+00> : vector<128x8xf32>
    %56 = tpu.matmul %53, %55, %cst_24 {dimension_numbers = #tpu.dot_dimension_numbers<[1], [0], [0], [1], [0, 0, 1, 1], [], []>} : vector<128x4xbf16>, vector<4x8xbf16>, vector<128x8xf32> -> vector<128x8xf32>
    %57 = arith.addf %51, %56 : vector<128x8xf32>
    %58 = vector.extract_strided_slice %8 {offsets = [2, 0, 0], sizes = [16, 8, 8], strides = [1, 1, 1]} : vector<18x8x8xbf16> to vector<16x8x8xbf16>
    %59 = vector.shape_cast %58 : vector<16x8x8xbf16> to vector<128x8xbf16>
    %60 = vector.extract_strided_slice %2 {offsets = [2, 0, 0], sizes = [1, 8, 8], strides = [1, 1, 1]} : vector<3x8x8xbf16> to vector<1x8x8xbf16>
    %61 = vector.shape_cast %60 : vector<1x8x8xbf16> to vector<8x8xbf16>
    %cst_25 = arith.constant dense<0.000000e+00> : vector<128x8xf32>
    %62 = tpu.matmul %59, %61, %cst_25 {dimension_numbers = #tpu.dot_dimension_numbers<[1], [0], [0], [1], [0, 0, 1, 1], [], []>} : vector<128x8xbf16>, vector<8x8xbf16>, vector<128x8xf32> -> vector<128x8xf32>
    %63 = arith.addf %57, %62 : vector<128x8xf32>
    %64 = vector.extract_strided_slice %14 {offsets = [2, 0, 0], sizes = [16, 8, 4], strides = [1, 1, 1]} : vector<18x8x4xbf16> to vector<16x8x4xbf16>
    %65 = vector.shape_cast %64 : vector<16x8x4xbf16> to vector<128x4xbf16>
    %66 = vector.extract_strided_slice %3 {offsets = [2, 0, 0], sizes = [1, 4, 8], strides = [1, 1, 1]} : vector<3x4x8xbf16> to vector<1x4x8xbf16>
    %67 = vector.shape_cast %66 : vector<1x4x8xbf16> to vector<4x8xbf16>
    %cst_26 = arith.constant dense<0.000000e+00> : vector<128x8xf32>
    %68 = tpu.matmul %65, %67, %cst_26 {dimension_numbers = #tpu.dot_dimension_numbers<[1], [0], [0], [1], [0, 0, 1, 1], [], []>} : vector<128x4xbf16>, vector<4x8xbf16>, vector<128x8xf32> -> vector<128x8xf32>
    %69 = arith.addf %63, %68 : vector<128x8xf32>
    %70 = vector.extract_strided_slice %20 {offsets = [2, 0, 0], sizes = [16, 8, 4], strides = [1, 1, 1]} : vector<18x8x4xbf16> to vector<16x8x4xbf16>
    %71 = vector.shape_cast %70 : vector<16x8x4xbf16> to vector<128x4xbf16>
    %72 = vector.extract_strided_slice %4 {offsets = [2, 0, 0], sizes = [1, 4, 8], strides = [1, 1, 1]} : vector<3x4x8xbf16> to vector<1x4x8xbf16>
    %73 = vector.shape_cast %72 : vector<1x4x8xbf16> to vector<4x8xbf16>
    %cst_27 = arith.constant dense<0.000000e+00> : vector<128x8xf32>
    %74 = tpu.matmul %71, %73, %cst_27 {dimension_numbers = #tpu.dot_dimension_numbers<[1], [0], [0], [1], [0, 0, 1, 1], [], []>} : vector<128x4xbf16>, vector<4x8xbf16>, vector<128x8xf32> -> vector<128x8xf32>
    %75 = arith.addf %69, %74 : vector<128x8xf32>
    %76 = vector.broadcast %5 : vector<1x8xf32> to vector<128x8xf32>
    %77 = arith.addf %75, %76 : vector<128x8xf32>
    %cst_28 = arith.constant 0.000000e+00 : f32
    %78 = vector.broadcast %cst_28 : f32 to vector<128x8xf32>
    %79 = arith.maximumf %77, %78 : vector<128x8xf32>
    %80 = vector.shape_cast %79 : vector<128x8xf32> to vector<16x8x8xf32>
    %c0_29 = arith.constant 0 : index
    %c0_30 = arith.constant 0 : index
    %c0_31 = arith.constant 0 : index
    %81 = vector.load %arg6[%c0_29, %c0_30, %c0_31] : memref<3x8x8xbf16, #tpu.memory_space<vmem>>, vector<3x8x8xbf16>
    %c0_32 = arith.constant 0 : index
    %c0_33 = arith.constant 0 : index
    %c0_34 = arith.constant 0 : index
    %82 = vector.load %arg7[%c0_32, %c0_33, %c0_34] : memref<3x4x8xbf16, #tpu.memory_space<vmem>>, vector<3x4x8xbf16>
    %c0_35 = arith.constant 0 : index
    %c0_36 = arith.constant 0 : index
    %c0_37 = arith.constant 0 : index
    %83 = vector.load %arg8[%c0_35, %c0_36, %c0_37] : memref<3x4x8xbf16, #tpu.memory_space<vmem>>, vector<3x4x8xbf16>
    %c0_38 = arith.constant 0 : index
    %c0_39 = arith.constant 0 : index
    %84 = vector.load %arg9[%c0_38, %c0_39] : memref<1x8xf32, #tpu.memory_space<vmem>>, vector<1x8xf32>
    %85 = arith.truncf %80 : vector<16x8x8xf32> to vector<16x8x8xbf16>
    %cst_40 = arith.constant 0.000000e+00 : bf16
    %86 = vector.broadcast %cst_40 : bf16 to vector<1x8x8xbf16>
    %87 = tpu.concatenate %86, %85, %86 in 0 : vector<1x8x8xbf16>, vector<16x8x8xbf16>, vector<1x8x8xbf16> -> vector<18x8x8xbf16>
    %88 = vector.extract_strided_slice %85 {offsets = [0, 0, 4], sizes = [16, 8, 4], strides = [1, 1, 1]} : vector<16x8x8xbf16> to vector<16x8x4xbf16>
    %cst_41 = arith.constant 0.000000e+00 : bf16
    %89 = vector.broadcast %cst_41 : bf16 to vector<16x1x4xbf16>
    %90 = vector.extract_strided_slice %88 {offsets = [0, 0, 0], sizes = [16, 7, 4], strides = [1, 1, 1]} : vector<16x8x4xbf16> to vector<16x7x4xbf16>
    %91 = tpu.concatenate %89, %90 in 1 : vector<16x1x4xbf16>, vector<16x7x4xbf16> -> vector<16x8x4xbf16>
    %cst_42 = arith.constant 0.000000e+00 : bf16
    %92 = vector.broadcast %cst_42 : bf16 to vector<1x8x4xbf16>
    %93 = tpu.concatenate %92, %91, %92 in 0 : vector<1x8x4xbf16>, vector<16x8x4xbf16>, vector<1x8x4xbf16> -> vector<18x8x4xbf16>
    %94 = vector.extract_strided_slice %85 {offsets = [0, 0, 0], sizes = [16, 8, 4], strides = [1, 1, 1]} : vector<16x8x8xbf16> to vector<16x8x4xbf16>
    %cst_43 = arith.constant 0.000000e+00 : bf16
    %95 = vector.broadcast %cst_43 : bf16 to vector<16x1x4xbf16>
    %96 = vector.extract_strided_slice %94 {offsets = [0, 1, 0], sizes = [16, 7, 4], strides = [1, 1, 1]} : vector<16x8x4xbf16> to vector<16x7x4xbf16>
    %97 = tpu.concatenate %96, %95 in 1 : vector<16x7x4xbf16>, vector<16x1x4xbf16> -> vector<16x8x4xbf16>
    %cst_44 = arith.constant 0.000000e+00 : bf16
    %98 = vector.broadcast %cst_44 : bf16 to vector<1x8x4xbf16>
    %99 = tpu.concatenate %98, %97, %98 in 0 : vector<1x8x4xbf16>, vector<16x8x4xbf16>, vector<1x8x4xbf16> -> vector<18x8x4xbf16>
    %cst_45 = arith.constant 0.000000e+00 : f32
    %100 = vector.broadcast %cst_45 : f32 to vector<128x8xf32>
    %101 = vector.extract_strided_slice %87 {offsets = [0, 0, 0], sizes = [16, 8, 8], strides = [1, 1, 1]} : vector<18x8x8xbf16> to vector<16x8x8xbf16>
    %102 = vector.shape_cast %101 : vector<16x8x8xbf16> to vector<128x8xbf16>
    %103 = vector.extract_strided_slice %81 {offsets = [0, 0, 0], sizes = [1, 8, 8], strides = [1, 1, 1]} : vector<3x8x8xbf16> to vector<1x8x8xbf16>
    %104 = vector.shape_cast %103 : vector<1x8x8xbf16> to vector<8x8xbf16>
    %cst_46 = arith.constant dense<0.000000e+00> : vector<128x8xf32>
    %105 = tpu.matmul %102, %104, %cst_46 {dimension_numbers = #tpu.dot_dimension_numbers<[1], [0], [0], [1], [0, 0, 1, 1], [], []>} : vector<128x8xbf16>, vector<8x8xbf16>, vector<128x8xf32> -> vector<128x8xf32>
    %106 = arith.addf %100, %105 : vector<128x8xf32>
    %107 = vector.extract_strided_slice %93 {offsets = [0, 0, 0], sizes = [16, 8, 4], strides = [1, 1, 1]} : vector<18x8x4xbf16> to vector<16x8x4xbf16>
    %108 = vector.shape_cast %107 : vector<16x8x4xbf16> to vector<128x4xbf16>
    %109 = vector.extract_strided_slice %82 {offsets = [0, 0, 0], sizes = [1, 4, 8], strides = [1, 1, 1]} : vector<3x4x8xbf16> to vector<1x4x8xbf16>
    %110 = vector.shape_cast %109 : vector<1x4x8xbf16> to vector<4x8xbf16>
    %cst_47 = arith.constant dense<0.000000e+00> : vector<128x8xf32>
    %111 = tpu.matmul %108, %110, %cst_47 {dimension_numbers = #tpu.dot_dimension_numbers<[1], [0], [0], [1], [0, 0, 1, 1], [], []>} : vector<128x4xbf16>, vector<4x8xbf16>, vector<128x8xf32> -> vector<128x8xf32>
    %112 = arith.addf %106, %111 : vector<128x8xf32>
    %113 = vector.extract_strided_slice %99 {offsets = [0, 0, 0], sizes = [16, 8, 4], strides = [1, 1, 1]} : vector<18x8x4xbf16> to vector<16x8x4xbf16>
    %114 = vector.shape_cast %113 : vector<16x8x4xbf16> to vector<128x4xbf16>
    %115 = vector.extract_strided_slice %83 {offsets = [0, 0, 0], sizes = [1, 4, 8], strides = [1, 1, 1]} : vector<3x4x8xbf16> to vector<1x4x8xbf16>
    %116 = vector.shape_cast %115 : vector<1x4x8xbf16> to vector<4x8xbf16>
    %cst_48 = arith.constant dense<0.000000e+00> : vector<128x8xf32>
    %117 = tpu.matmul %114, %116, %cst_48 {dimension_numbers = #tpu.dot_dimension_numbers<[1], [0], [0], [1], [0, 0, 1, 1], [], []>} : vector<128x4xbf16>, vector<4x8xbf16>, vector<128x8xf32> -> vector<128x8xf32>
    %118 = arith.addf %112, %117 : vector<128x8xf32>
    %119 = vector.extract_strided_slice %87 {offsets = [1, 0, 0], sizes = [16, 8, 8], strides = [1, 1, 1]} : vector<18x8x8xbf16> to vector<16x8x8xbf16>
    %120 = vector.shape_cast %119 : vector<16x8x8xbf16> to vector<128x8xbf16>
    %121 = vector.extract_strided_slice %81 {offsets = [1, 0, 0], sizes = [1, 8, 8], strides = [1, 1, 1]} : vector<3x8x8xbf16> to vector<1x8x8xbf16>
    %122 = vector.shape_cast %121 : vector<1x8x8xbf16> to vector<8x8xbf16>
    %cst_49 = arith.constant dense<0.000000e+00> : vector<128x8xf32>
    %123 = tpu.matmul %120, %122, %cst_49 {dimension_numbers = #tpu.dot_dimension_numbers<[1], [0], [0], [1], [0, 0, 1, 1], [], []>} : vector<128x8xbf16>, vector<8x8xbf16>, vector<128x8xf32> -> vector<128x8xf32>
    %124 = arith.addf %118, %123 : vector<128x8xf32>
    %125 = vector.extract_strided_slice %93 {offsets = [1, 0, 0], sizes = [16, 8, 4], strides = [1, 1, 1]} : vector<18x8x4xbf16> to vector<16x8x4xbf16>
    %126 = vector.shape_cast %125 : vector<16x8x4xbf16> to vector<128x4xbf16>
    %127 = vector.extract_strided_slice %82 {offsets = [1, 0, 0], sizes = [1, 4, 8], strides = [1, 1, 1]} : vector<3x4x8xbf16> to vector<1x4x8xbf16>
    %128 = vector.shape_cast %127 : vector<1x4x8xbf16> to vector<4x8xbf16>
    %cst_50 = arith.constant dense<0.000000e+00> : vector<128x8xf32>
    %129 = tpu.matmul %126, %128, %cst_50 {dimension_numbers = #tpu.dot_dimension_numbers<[1], [0], [0], [1], [0, 0, 1, 1], [], []>} : vector<128x4xbf16>, vector<4x8xbf16>, vector<128x8xf32> -> vector<128x8xf32>
    %130 = arith.addf %124, %129 : vector<128x8xf32>
    %131 = vector.extract_strided_slice %99 {offsets = [1, 0, 0], sizes = [16, 8, 4], strides = [1, 1, 1]} : vector<18x8x4xbf16> to vector<16x8x4xbf16>
    %132 = vector.shape_cast %131 : vector<16x8x4xbf16> to vector<128x4xbf16>
    %133 = vector.extract_strided_slice %83 {offsets = [1, 0, 0], sizes = [1, 4, 8], strides = [1, 1, 1]} : vector<3x4x8xbf16> to vector<1x4x8xbf16>
    %134 = vector.shape_cast %133 : vector<1x4x8xbf16> to vector<4x8xbf16>
    %cst_51 = arith.constant dense<0.000000e+00> : vector<128x8xf32>
    %135 = tpu.matmul %132, %134, %cst_51 {dimension_numbers = #tpu.dot_dimension_numbers<[1], [0], [0], [1], [0, 0, 1, 1], [], []>} : vector<128x4xbf16>, vector<4x8xbf16>, vector<128x8xf32> -> vector<128x8xf32>
    %136 = arith.addf %130, %135 : vector<128x8xf32>
    %137 = vector.extract_strided_slice %87 {offsets = [2, 0, 0], sizes = [16, 8, 8], strides = [1, 1, 1]} : vector<18x8x8xbf16> to vector<16x8x8xbf16>
    %138 = vector.shape_cast %137 : vector<16x8x8xbf16> to vector<128x8xbf16>
    %139 = vector.extract_strided_slice %81 {offsets = [2, 0, 0], sizes = [1, 8, 8], strides = [1, 1, 1]} : vector<3x8x8xbf16> to vector<1x8x8xbf16>
    %140 = vector.shape_cast %139 : vector<1x8x8xbf16> to vector<8x8xbf16>
    %cst_52 = arith.constant dense<0.000000e+00> : vector<128x8xf32>
    %141 = tpu.matmul %138, %140, %cst_52 {dimension_numbers = #tpu.dot_dimension_numbers<[1], [0], [0], [1], [0, 0, 1, 1], [], []>} : vector<128x8xbf16>, vector<8x8xbf16>, vector<128x8xf32> -> vector<128x8xf32>
    %142 = arith.addf %136, %141 : vector<128x8xf32>
    %143 = vector.extract_strided_slice %93 {offsets = [2, 0, 0], sizes = [16, 8, 4], strides = [1, 1, 1]} : vector<18x8x4xbf16> to vector<16x8x4xbf16>
    %144 = vector.shape_cast %143 : vector<16x8x4xbf16> to vector<128x4xbf16>
    %145 = vector.extract_strided_slice %82 {offsets = [2, 0, 0], sizes = [1, 4, 8], strides = [1, 1, 1]} : vector<3x4x8xbf16> to vector<1x4x8xbf16>
    %146 = vector.shape_cast %145 : vector<1x4x8xbf16> to vector<4x8xbf16>
    %cst_53 = arith.constant dense<0.000000e+00> : vector<128x8xf32>
    %147 = tpu.matmul %144, %146, %cst_53 {dimension_numbers = #tpu.dot_dimension_numbers<[1], [0], [0], [1], [0, 0, 1, 1], [], []>} : vector<128x4xbf16>, vector<4x8xbf16>, vector<128x8xf32> -> vector<128x8xf32>
    %148 = arith.addf %142, %147 : vector<128x8xf32>
    %149 = vector.extract_strided_slice %99 {offsets = [2, 0, 0], sizes = [16, 8, 4], strides = [1, 1, 1]} : vector<18x8x4xbf16> to vector<16x8x4xbf16>
    %150 = vector.shape_cast %149 : vector<16x8x4xbf16> to vector<128x4xbf16>
    %151 = vector.extract_strided_slice %83 {offsets = [2, 0, 0], sizes = [1, 4, 8], strides = [1, 1, 1]} : vector<3x4x8xbf16> to vector<1x4x8xbf16>
    %152 = vector.shape_cast %151 : vector<1x4x8xbf16> to vector<4x8xbf16>
    %cst_54 = arith.constant dense<0.000000e+00> : vector<128x8xf32>
    %153 = tpu.matmul %150, %152, %cst_54 {dimension_numbers = #tpu.dot_dimension_numbers<[1], [0], [0], [1], [0, 0, 1, 1], [], []>} : vector<128x4xbf16>, vector<4x8xbf16>, vector<128x8xf32> -> vector<128x8xf32>
    %154 = arith.addf %148, %153 : vector<128x8xf32>
    %155 = vector.broadcast %84 : vector<1x8xf32> to vector<128x8xf32>
    %156 = arith.addf %154, %155 : vector<128x8xf32>
    %157 = vector.shape_cast %156 : vector<128x8xf32> to vector<16x8x8xf32>
    %158 = arith.addf %1, %157 : vector<16x8x8xf32>
    %c0_55 = arith.constant 0 : index
    %c0_56 = arith.constant 0 : index
    %c0_57 = arith.constant 0 : index
    %159 = vector.load %arg10[%c0_55, %c0_56, %c0_57] : memref<3x8x8xbf16, #tpu.memory_space<vmem>>, vector<3x8x8xbf16>
    %c0_58 = arith.constant 0 : index
    %c0_59 = arith.constant 0 : index
    %c0_60 = arith.constant 0 : index
    %160 = vector.load %arg11[%c0_58, %c0_59, %c0_60] : memref<3x4x8xbf16, #tpu.memory_space<vmem>>, vector<3x4x8xbf16>
    %c0_61 = arith.constant 0 : index
    %c0_62 = arith.constant 0 : index
    %161 = vector.load %arg12[%c0_61, %c0_62] : memref<1x8xf32, #tpu.memory_space<vmem>>, vector<1x8xf32>
    %162 = arith.truncf %1 : vector<16x8x8xf32> to vector<16x8x8xbf16>
    %cst_63 = arith.constant 0.000000e+00 : bf16
    %163 = vector.broadcast %cst_63 : bf16 to vector<1x8x8xbf16>
    %164 = tpu.concatenate %163, %162, %163 in 0 : vector<1x8x8xbf16>, vector<16x8x8xbf16>, vector<1x8x8xbf16> -> vector<18x8x8xbf16>
    %165 = vector.extract_strided_slice %162 {offsets = [0, 0, 4], sizes = [16, 8, 4], strides = [1, 1, 1]} : vector<16x8x8xbf16> to vector<16x8x4xbf16>
    %cst_64 = arith.constant 0.000000e+00 : bf16
    %166 = vector.broadcast %cst_64 : bf16 to vector<16x1x4xbf16>
    %167 = vector.extract_strided_slice %165 {offsets = [0, 0, 0], sizes = [16, 7, 4], strides = [1, 1, 1]} : vector<16x8x4xbf16> to vector<16x7x4xbf16>
    %168 = tpu.concatenate %166, %167 in 1 : vector<16x1x4xbf16>, vector<16x7x4xbf16> -> vector<16x8x4xbf16>
    %cst_65 = arith.constant 0.000000e+00 : bf16
    %169 = vector.broadcast %cst_65 : bf16 to vector<1x8x4xbf16>
    %170 = tpu.concatenate %169, %168, %169 in 0 : vector<1x8x4xbf16>, vector<16x8x4xbf16>, vector<1x8x4xbf16> -> vector<18x8x4xbf16>
    %cst_66 = arith.constant 0.000000e+00 : f32
    %171 = vector.broadcast %cst_66 : f32 to vector<64x8xf32>
    %172 = vector.extract_strided_slice %164 {offsets = [0, 0, 0], sizes = [16, 8, 8], strides = [1, 1, 1]} : vector<18x8x8xbf16> to vector<16x8x8xbf16>
    %173 = vector.shape_cast %172 : vector<16x8x8xbf16> to vector<8x2x8x8xbf16>
    %174 = vector.extract_strided_slice %173 {offsets = [0, 0, 0, 0], sizes = [8, 1, 8, 8], strides = [1, 1, 1, 1]} : vector<8x2x8x8xbf16> to vector<8x1x8x8xbf16>
    %175 = vector.shape_cast %174 : vector<8x1x8x8xbf16> to vector<8x8x8xbf16>
    %176 = vector.shape_cast %175 : vector<8x8x8xbf16> to vector<64x8xbf16>
    %177 = vector.extract_strided_slice %170 {offsets = [0, 0, 0], sizes = [16, 8, 4], strides = [1, 1, 1]} : vector<18x8x4xbf16> to vector<16x8x4xbf16>
    %178 = vector.shape_cast %177 : vector<16x8x4xbf16> to vector<8x2x8x4xbf16>
    %179 = vector.extract_strided_slice %178 {offsets = [0, 0, 0, 0], sizes = [8, 1, 8, 4], strides = [1, 1, 1, 1]} : vector<8x2x8x4xbf16> to vector<8x1x8x4xbf16>
    %180 = vector.shape_cast %179 : vector<8x1x8x4xbf16> to vector<8x8x4xbf16>
    %181 = vector.shape_cast %180 : vector<8x8x4xbf16> to vector<64x4xbf16>
    %182 = vector.extract_strided_slice %159 {offsets = [0, 0, 0], sizes = [1, 8, 8], strides = [1, 1, 1]} : vector<3x8x8xbf16> to vector<1x8x8xbf16>
    %183 = vector.shape_cast %182 : vector<1x8x8xbf16> to vector<8x8xbf16>
    %cst_67 = arith.constant dense<0.000000e+00> : vector<64x8xf32>
    %184 = tpu.matmul %176, %183, %cst_67 {dimension_numbers = #tpu.dot_dimension_numbers<[1], [0], [0], [1], [0, 0, 1, 1], [], []>} : vector<64x8xbf16>, vector<8x8xbf16>, vector<64x8xf32> -> vector<64x8xf32>
    %185 = arith.addf %171, %184 : vector<64x8xf32>
    %186 = vector.extract_strided_slice %160 {offsets = [0, 0, 0], sizes = [1, 4, 8], strides = [1, 1, 1]} : vector<3x4x8xbf16> to vector<1x4x8xbf16>
    %187 = vector.shape_cast %186 : vector<1x4x8xbf16> to vector<4x8xbf16>
    %cst_68 = arith.constant dense<0.000000e+00> : vector<64x8xf32>
    %188 = tpu.matmul %181, %187, %cst_68 {dimension_numbers = #tpu.dot_dimension_numbers<[1], [0], [0], [1], [0, 0, 1, 1], [], []>} : vector<64x4xbf16>, vector<4x8xbf16>, vector<64x8xf32> -> vector<64x8xf32>
    %189 = arith.addf %185, %188 : vector<64x8xf32>
    %190 = vector.extract_strided_slice %164 {offsets = [1, 0, 0], sizes = [16, 8, 8], strides = [1, 1, 1]} : vector<18x8x8xbf16> to vector<16x8x8xbf16>
    %191 = vector.shape_cast %190 : vector<16x8x8xbf16> to vector<8x2x8x8xbf16>
    %192 = vector.extract_strided_slice %191 {offsets = [0, 0, 0, 0], sizes = [8, 1, 8, 8], strides = [1, 1, 1, 1]} : vector<8x2x8x8xbf16> to vector<8x1x8x8xbf16>
    %193 = vector.shape_cast %192 : vector<8x1x8x8xbf16> to vector<8x8x8xbf16>
    %194 = vector.shape_cast %193 : vector<8x8x8xbf16> to vector<64x8xbf16>
    %195 = vector.extract_strided_slice %170 {offsets = [1, 0, 0], sizes = [16, 8, 4], strides = [1, 1, 1]} : vector<18x8x4xbf16> to vector<16x8x4xbf16>
    %196 = vector.shape_cast %195 : vector<16x8x4xbf16> to vector<8x2x8x4xbf16>
    %197 = vector.extract_strided_slice %196 {offsets = [0, 0, 0, 0], sizes = [8, 1, 8, 4], strides = [1, 1, 1, 1]} : vector<8x2x8x4xbf16> to vector<8x1x8x4xbf16>
    %198 = vector.shape_cast %197 : vector<8x1x8x4xbf16> to vector<8x8x4xbf16>
    %199 = vector.shape_cast %198 : vector<8x8x4xbf16> to vector<64x4xbf16>
    %200 = vector.extract_strided_slice %159 {offsets = [1, 0, 0], sizes = [1, 8, 8], strides = [1, 1, 1]} : vector<3x8x8xbf16> to vector<1x8x8xbf16>
    %201 = vector.shape_cast %200 : vector<1x8x8xbf16> to vector<8x8xbf16>
    %cst_69 = arith.constant dense<0.000000e+00> : vector<64x8xf32>
    %202 = tpu.matmul %194, %201, %cst_69 {dimension_numbers = #tpu.dot_dimension_numbers<[1], [0], [0], [1], [0, 0, 1, 1], [], []>} : vector<64x8xbf16>, vector<8x8xbf16>, vector<64x8xf32> -> vector<64x8xf32>
    %203 = arith.addf %189, %202 : vector<64x8xf32>
    %204 = vector.extract_strided_slice %160 {offsets = [1, 0, 0], sizes = [1, 4, 8], strides = [1, 1, 1]} : vector<3x4x8xbf16> to vector<1x4x8xbf16>
    %205 = vector.shape_cast %204 : vector<1x4x8xbf16> to vector<4x8xbf16>
    %cst_70 = arith.constant dense<0.000000e+00> : vector<64x8xf32>
    %206 = tpu.matmul %199, %205, %cst_70 {dimension_numbers = #tpu.dot_dimension_numbers<[1], [0], [0], [1], [0, 0, 1, 1], [], []>} : vector<64x4xbf16>, vector<4x8xbf16>, vector<64x8xf32> -> vector<64x8xf32>
    %207 = arith.addf %203, %206 : vector<64x8xf32>
    %208 = vector.extract_strided_slice %164 {offsets = [2, 0, 0], sizes = [16, 8, 8], strides = [1, 1, 1]} : vector<18x8x8xbf16> to vector<16x8x8xbf16>
    %209 = vector.shape_cast %208 : vector<16x8x8xbf16> to vector<8x2x8x8xbf16>
    %210 = vector.extract_strided_slice %209 {offsets = [0, 0, 0, 0], sizes = [8, 1, 8, 8], strides = [1, 1, 1, 1]} : vector<8x2x8x8xbf16> to vector<8x1x8x8xbf16>
    %211 = vector.shape_cast %210 : vector<8x1x8x8xbf16> to vector<8x8x8xbf16>
    %212 = vector.shape_cast %211 : vector<8x8x8xbf16> to vector<64x8xbf16>
    %213 = vector.extract_strided_slice %170 {offsets = [2, 0, 0], sizes = [16, 8, 4], strides = [1, 1, 1]} : vector<18x8x4xbf16> to vector<16x8x4xbf16>
    %214 = vector.shape_cast %213 : vector<16x8x4xbf16> to vector<8x2x8x4xbf16>
    %215 = vector.extract_strided_slice %214 {offsets = [0, 0, 0, 0], sizes = [8, 1, 8, 4], strides = [1, 1, 1, 1]} : vector<8x2x8x4xbf16> to vector<8x1x8x4xbf16>
    %216 = vector.shape_cast %215 : vector<8x1x8x4xbf16> to vector<8x8x4xbf16>
    %217 = vector.shape_cast %216 : vector<8x8x4xbf16> to vector<64x4xbf16>
    %218 = vector.extract_strided_slice %159 {offsets = [2, 0, 0], sizes = [1, 8, 8], strides = [1, 1, 1]} : vector<3x8x8xbf16> to vector<1x8x8xbf16>
    %219 = vector.shape_cast %218 : vector<1x8x8xbf16> to vector<8x8xbf16>
    %cst_71 = arith.constant dense<0.000000e+00> : vector<64x8xf32>
    %220 = tpu.matmul %212, %219, %cst_71 {dimension_numbers = #tpu.dot_dimension_numbers<[1], [0], [0], [1], [0, 0, 1, 1], [], []>} : vector<64x8xbf16>, vector<8x8xbf16>, vector<64x8xf32> -> vector<64x8xf32>
    %221 = arith.addf %207, %220 : vector<64x8xf32>
    %222 = vector.extract_strided_slice %160 {offsets = [2, 0, 0], sizes = [1, 4, 8], strides = [1, 1, 1]} : vector<3x4x8xbf16> to vector<1x4x8xbf16>
    %223 = vector.shape_cast %222 : vector<1x4x8xbf16> to vector<4x8xbf16>
    %cst_72 = arith.constant dense<0.000000e+00> : vector<64x8xf32>
    %224 = tpu.matmul %217, %223, %cst_72 {dimension_numbers = #tpu.dot_dimension_numbers<[1], [0], [0], [1], [0, 0, 1, 1], [], []>} : vector<64x4xbf16>, vector<4x8xbf16>, vector<64x8xf32> -> vector<64x8xf32>
    %225 = arith.addf %221, %224 : vector<64x8xf32>
    %226 = vector.broadcast %161 : vector<1x8xf32> to vector<64x8xf32>
    %227 = arith.addf %225, %226 : vector<64x8xf32>
    %228 = vector.shape_cast %227 : vector<64x8xf32> to vector<8x8x8xf32>
    %c0_73 = arith.constant 0 : index
    %c0_74 = arith.constant 0 : index
    %c0_75 = arith.constant 0 : index
    %c0_76 = arith.constant 0 : index
    %229 = vector.load %arg13[%c0_73, %c0_74, %c0_75, %c0_76] : memref<3x3x8x8xbf16, #tpu.memory_space<vmem>>, vector<3x3x8x8xbf16>
    %c0_77 = arith.constant 0 : index
    %c0_78 = arith.constant 0 : index
    %230 = vector.load %arg14[%c0_77, %c0_78] : memref<1x8xf32, #tpu.memory_space<vmem>>, vector<1x8xf32>
    %231 = arith.truncf %228 : vector<8x8x8xf32> to vector<8x8x8xbf16>
    %cst_79 = arith.constant 0.000000e+00 : bf16
    %232 = vector.broadcast %cst_79 : bf16 to vector<8x1x8xbf16>
    %233 = vector.extract_strided_slice %231 {offsets = [0, 0, 0], sizes = [8, 7, 8], strides = [1, 1, 1]} : vector<8x8x8xbf16> to vector<8x7x8xbf16>
    %234 = tpu.concatenate %232, %233 in 1 : vector<8x1x8xbf16>, vector<8x7x8xbf16> -> vector<8x8x8xbf16>
    %cst_80 = arith.constant 0.000000e+00 : bf16
    %235 = vector.broadcast %cst_80 : bf16 to vector<1x8x8xbf16>
    %236 = tpu.concatenate %235, %234, %235 in 0 : vector<1x8x8xbf16>, vector<8x8x8xbf16>, vector<1x8x8xbf16> -> vector<10x8x8xbf16>
    %cst_81 = arith.constant 0.000000e+00 : bf16
    %237 = vector.broadcast %cst_81 : bf16 to vector<1x8x8xbf16>
    %238 = tpu.concatenate %237, %231, %237 in 0 : vector<1x8x8xbf16>, vector<8x8x8xbf16>, vector<1x8x8xbf16> -> vector<10x8x8xbf16>
    %cst_82 = arith.constant 0.000000e+00 : bf16
    %239 = vector.broadcast %cst_82 : bf16 to vector<8x1x8xbf16>
    %240 = vector.extract_strided_slice %231 {offsets = [0, 1, 0], sizes = [8, 7, 8], strides = [1, 1, 1]} : vector<8x8x8xbf16> to vector<8x7x8xbf16>
    %241 = tpu.concatenate %240, %239 in 1 : vector<8x7x8xbf16>, vector<8x1x8xbf16> -> vector<8x8x8xbf16>
    %cst_83 = arith.constant 0.000000e+00 : bf16
    %242 = vector.broadcast %cst_83 : bf16 to vector<1x8x8xbf16>
    %243 = tpu.concatenate %242, %241, %242 in 0 : vector<1x8x8xbf16>, vector<8x8x8xbf16>, vector<1x8x8xbf16> -> vector<10x8x8xbf16>
    %cst_84 = arith.constant 0.000000e+00 : f32
    %244 = vector.broadcast %cst_84 : f32 to vector<64x8xf32>
    %245 = vector.extract_strided_slice %236 {offsets = [0, 0, 0], sizes = [8, 8, 8], strides = [1, 1, 1]} : vector<10x8x8xbf16> to vector<8x8x8xbf16>
    %246 = vector.shape_cast %245 : vector<8x8x8xbf16> to vector<64x8xbf16>
    %247 = vector.extract_strided_slice %229 {offsets = [0, 0, 0, 0], sizes = [1, 1, 8, 8], strides = [1, 1, 1, 1]} : vector<3x3x8x8xbf16> to vector<1x1x8x8xbf16>
    %248 = vector.shape_cast %247 : vector<1x1x8x8xbf16> to vector<8x8xbf16>
    %cst_85 = arith.constant dense<0.000000e+00> : vector<64x8xf32>
    %249 = tpu.matmul %246, %248, %cst_85 {dimension_numbers = #tpu.dot_dimension_numbers<[1], [0], [0], [1], [0, 0, 1, 1], [], []>} : vector<64x8xbf16>, vector<8x8xbf16>, vector<64x8xf32> -> vector<64x8xf32>
    %250 = arith.addf %244, %249 : vector<64x8xf32>
    %251 = vector.extract_strided_slice %238 {offsets = [0, 0, 0], sizes = [8, 8, 8], strides = [1, 1, 1]} : vector<10x8x8xbf16> to vector<8x8x8xbf16>
    %252 = vector.shape_cast %251 : vector<8x8x8xbf16> to vector<64x8xbf16>
    %253 = vector.extract_strided_slice %229 {offsets = [0, 1, 0, 0], sizes = [1, 1, 8, 8], strides = [1, 1, 1, 1]} : vector<3x3x8x8xbf16> to vector<1x1x8x8xbf16>
    %254 = vector.shape_cast %253 : vector<1x1x8x8xbf16> to vector<8x8xbf16>
    %cst_86 = arith.constant dense<0.000000e+00> : vector<64x8xf32>
    %255 = tpu.matmul %252, %254, %cst_86 {dimension_numbers = #tpu.dot_dimension_numbers<[1], [0], [0], [1], [0, 0, 1, 1], [], []>} : vector<64x8xbf16>, vector<8x8xbf16>, vector<64x8xf32> -> vector<64x8xf32>
    %256 = arith.addf %250, %255 : vector<64x8xf32>
    %257 = vector.extract_strided_slice %243 {offsets = [0, 0, 0], sizes = [8, 8, 8], strides = [1, 1, 1]} : vector<10x8x8xbf16> to vector<8x8x8xbf16>
    %258 = vector.shape_cast %257 : vector<8x8x8xbf16> to vector<64x8xbf16>
    %259 = vector.extract_strided_slice %229 {offsets = [0, 2, 0, 0], sizes = [1, 1, 8, 8], strides = [1, 1, 1, 1]} : vector<3x3x8x8xbf16> to vector<1x1x8x8xbf16>
    %260 = vector.shape_cast %259 : vector<1x1x8x8xbf16> to vector<8x8xbf16>
    %cst_87 = arith.constant dense<0.000000e+00> : vector<64x8xf32>
    %261 = tpu.matmul %258, %260, %cst_87 {dimension_numbers = #tpu.dot_dimension_numbers<[1], [0], [0], [1], [0, 0, 1, 1], [], []>} : vector<64x8xbf16>, vector<8x8xbf16>, vector<64x8xf32> -> vector<64x8xf32>
    %262 = arith.addf %256, %261 : vector<64x8xf32>
    %263 = vector.extract_strided_slice %236 {offsets = [1, 0, 0], sizes = [8, 8, 8], strides = [1, 1, 1]} : vector<10x8x8xbf16> to vector<8x8x8xbf16>
    %264 = vector.shape_cast %263 : vector<8x8x8xbf16> to vector<64x8xbf16>
    %265 = vector.extract_strided_slice %229 {offsets = [1, 0, 0, 0], sizes = [1, 1, 8, 8], strides = [1, 1, 1, 1]} : vector<3x3x8x8xbf16> to vector<1x1x8x8xbf16>
    %266 = vector.shape_cast %265 : vector<1x1x8x8xbf16> to vector<8x8xbf16>
    %cst_88 = arith.constant dense<0.000000e+00> : vector<64x8xf32>
    %267 = tpu.matmul %264, %266, %cst_88 {dimension_numbers = #tpu.dot_dimension_numbers<[1], [0], [0], [1], [0, 0, 1, 1], [], []>} : vector<64x8xbf16>, vector<8x8xbf16>, vector<64x8xf32> -> vector<64x8xf32>
    %268 = arith.addf %262, %267 : vector<64x8xf32>
    %269 = vector.extract_strided_slice %238 {offsets = [1, 0, 0], sizes = [8, 8, 8], strides = [1, 1, 1]} : vector<10x8x8xbf16> to vector<8x8x8xbf16>
    %270 = vector.shape_cast %269 : vector<8x8x8xbf16> to vector<64x8xbf16>
    %271 = vector.extract_strided_slice %229 {offsets = [1, 1, 0, 0], sizes = [1, 1, 8, 8], strides = [1, 1, 1, 1]} : vector<3x3x8x8xbf16> to vector<1x1x8x8xbf16>
    %272 = vector.shape_cast %271 : vector<1x1x8x8xbf16> to vector<8x8xbf16>
    %cst_89 = arith.constant dense<0.000000e+00> : vector<64x8xf32>
    %273 = tpu.matmul %270, %272, %cst_89 {dimension_numbers = #tpu.dot_dimension_numbers<[1], [0], [0], [1], [0, 0, 1, 1], [], []>} : vector<64x8xbf16>, vector<8x8xbf16>, vector<64x8xf32> -> vector<64x8xf32>
    %274 = arith.addf %268, %273 : vector<64x8xf32>
    %275 = vector.extract_strided_slice %243 {offsets = [1, 0, 0], sizes = [8, 8, 8], strides = [1, 1, 1]} : vector<10x8x8xbf16> to vector<8x8x8xbf16>
    %276 = vector.shape_cast %275 : vector<8x8x8xbf16> to vector<64x8xbf16>
    %277 = vector.extract_strided_slice %229 {offsets = [1, 2, 0, 0], sizes = [1, 1, 8, 8], strides = [1, 1, 1, 1]} : vector<3x3x8x8xbf16> to vector<1x1x8x8xbf16>
    %278 = vector.shape_cast %277 : vector<1x1x8x8xbf16> to vector<8x8xbf16>
    %cst_90 = arith.constant dense<0.000000e+00> : vector<64x8xf32>
    %279 = tpu.matmul %276, %278, %cst_90 {dimension_numbers = #tpu.dot_dimension_numbers<[1], [0], [0], [1], [0, 0, 1, 1], [], []>} : vector<64x8xbf16>, vector<8x8xbf16>, vector<64x8xf32> -> vector<64x8xf32>
    %280 = arith.addf %274, %279 : vector<64x8xf32>
    %281 = vector.extract_strided_slice %236 {offsets = [2, 0, 0], sizes = [8, 8, 8], strides = [1, 1, 1]} : vector<10x8x8xbf16> to vector<8x8x8xbf16>
    %282 = vector.shape_cast %281 : vector<8x8x8xbf16> to vector<64x8xbf16>
    %283 = vector.extract_strided_slice %229 {offsets = [2, 0, 0, 0], sizes = [1, 1, 8, 8], strides = [1, 1, 1, 1]} : vector<3x3x8x8xbf16> to vector<1x1x8x8xbf16>
    %284 = vector.shape_cast %283 : vector<1x1x8x8xbf16> to vector<8x8xbf16>
    %cst_91 = arith.constant dense<0.000000e+00> : vector<64x8xf32>
    %285 = tpu.matmul %282, %284, %cst_91 {dimension_numbers = #tpu.dot_dimension_numbers<[1], [0], [0], [1], [0, 0, 1, 1], [], []>} : vector<64x8xbf16>, vector<8x8xbf16>, vector<64x8xf32> -> vector<64x8xf32>
    %286 = arith.addf %280, %285 : vector<64x8xf32>
    %287 = vector.extract_strided_slice %238 {offsets = [2, 0, 0], sizes = [8, 8, 8], strides = [1, 1, 1]} : vector<10x8x8xbf16> to vector<8x8x8xbf16>
    %288 = vector.shape_cast %287 : vector<8x8x8xbf16> to vector<64x8xbf16>
    %289 = vector.extract_strided_slice %229 {offsets = [2, 1, 0, 0], sizes = [1, 1, 8, 8], strides = [1, 1, 1, 1]} : vector<3x3x8x8xbf16> to vector<1x1x8x8xbf16>
    %290 = vector.shape_cast %289 : vector<1x1x8x8xbf16> to vector<8x8xbf16>
    %cst_92 = arith.constant dense<0.000000e+00> : vector<64x8xf32>
    %291 = tpu.matmul %288, %290, %cst_92 {dimension_numbers = #tpu.dot_dimension_numbers<[1], [0], [0], [1], [0, 0, 1, 1], [], []>} : vector<64x8xbf16>, vector<8x8xbf16>, vector<64x8xf32> -> vector<64x8xf32>
    %292 = arith.addf %286, %291 : vector<64x8xf32>
    %293 = vector.extract_strided_slice %243 {offsets = [2, 0, 0], sizes = [8, 8, 8], strides = [1, 1, 1]} : vector<10x8x8xbf16> to vector<8x8x8xbf16>
    %294 = vector.shape_cast %293 : vector<8x8x8xbf16> to vector<64x8xbf16>
    %295 = vector.extract_strided_slice %229 {offsets = [2, 2, 0, 0], sizes = [1, 1, 8, 8], strides = [1, 1, 1, 1]} : vector<3x3x8x8xbf16> to vector<1x1x8x8xbf16>
    %296 = vector.shape_cast %295 : vector<1x1x8x8xbf16> to vector<8x8xbf16>
    %cst_93 = arith.constant dense<0.000000e+00> : vector<64x8xf32>
    %297 = tpu.matmul %294, %296, %cst_93 {dimension_numbers = #tpu.dot_dimension_numbers<[1], [0], [0], [1], [0, 0, 1, 1], [], []>} : vector<64x8xbf16>, vector<8x8xbf16>, vector<64x8xf32> -> vector<64x8xf32>
    %298 = arith.addf %292, %297 : vector<64x8xf32>
    %299 = vector.broadcast %230 : vector<1x8xf32> to vector<64x8xf32>
    %300 = arith.addf %298, %299 : vector<64x8xf32>
    %cst_94 = arith.constant 0.000000e+00 : f32
    %301 = vector.broadcast %cst_94 : f32 to vector<64x8xf32>
    %302 = arith.maximumf %300, %301 : vector<64x8xf32>
    %303 = vector.shape_cast %302 : vector<64x8xf32> to vector<8x8x8xf32>
    %c0_95 = arith.constant 0 : index
    %c0_96 = arith.constant 0 : index
    %c0_97 = arith.constant 0 : index
    %c0_98 = arith.constant 0 : index
    %304 = vector.load %arg15[%c0_95, %c0_96, %c0_97, %c0_98] : memref<3x3x8x8xbf16, #tpu.memory_space<vmem>>, vector<3x3x8x8xbf16>
    %c0_99 = arith.constant 0 : index
    %c0_100 = arith.constant 0 : index
    %305 = vector.load %arg16[%c0_99, %c0_100] : memref<1x8xf32, #tpu.memory_space<vmem>>, vector<1x8xf32>
    %306 = arith.truncf %303 : vector<8x8x8xf32> to vector<8x8x8xbf16>
    %cst_101 = arith.constant 0.000000e+00 : bf16
    %307 = vector.broadcast %cst_101 : bf16 to vector<8x1x8xbf16>
    %308 = vector.extract_strided_slice %306 {offsets = [0, 0, 0], sizes = [8, 7, 8], strides = [1, 1, 1]} : vector<8x8x8xbf16> to vector<8x7x8xbf16>
    %309 = tpu.concatenate %307, %308 in 1 : vector<8x1x8xbf16>, vector<8x7x8xbf16> -> vector<8x8x8xbf16>
    %cst_102 = arith.constant 0.000000e+00 : bf16
    %310 = vector.broadcast %cst_102 : bf16 to vector<1x8x8xbf16>
    %311 = tpu.concatenate %310, %309, %310 in 0 : vector<1x8x8xbf16>, vector<8x8x8xbf16>, vector<1x8x8xbf16> -> vector<10x8x8xbf16>
    %cst_103 = arith.constant 0.000000e+00 : bf16
    %312 = vector.broadcast %cst_103 : bf16 to vector<1x8x8xbf16>
    %313 = tpu.concatenate %312, %306, %312 in 0 : vector<1x8x8xbf16>, vector<8x8x8xbf16>, vector<1x8x8xbf16> -> vector<10x8x8xbf16>
    %cst_104 = arith.constant 0.000000e+00 : bf16
    %314 = vector.broadcast %cst_104 : bf16 to vector<8x1x8xbf16>
    %315 = vector.extract_strided_slice %306 {offsets = [0, 1, 0], sizes = [8, 7, 8], strides = [1, 1, 1]} : vector<8x8x8xbf16> to vector<8x7x8xbf16>
    %316 = tpu.concatenate %315, %314 in 1 : vector<8x7x8xbf16>, vector<8x1x8xbf16> -> vector<8x8x8xbf16>
    %cst_105 = arith.constant 0.000000e+00 : bf16
    %317 = vector.broadcast %cst_105 : bf16 to vector<1x8x8xbf16>
    %318 = tpu.concatenate %317, %316, %317 in 0 : vector<1x8x8xbf16>, vector<8x8x8xbf16>, vector<1x8x8xbf16> -> vector<10x8x8xbf16>
    %cst_106 = arith.constant 0.000000e+00 : f32
    %319 = vector.broadcast %cst_106 : f32 to vector<64x8xf32>
    %320 = vector.extract_strided_slice %311 {offsets = [0, 0, 0], sizes = [8, 8, 8], strides = [1, 1, 1]} : vector<10x8x8xbf16> to vector<8x8x8xbf16>
    %321 = vector.shape_cast %320 : vector<8x8x8xbf16> to vector<64x8xbf16>
    %322 = vector.extract_strided_slice %304 {offsets = [0, 0, 0, 0], sizes = [1, 1, 8, 8], strides = [1, 1, 1, 1]} : vector<3x3x8x8xbf16> to vector<1x1x8x8xbf16>
    %323 = vector.shape_cast %322 : vector<1x1x8x8xbf16> to vector<8x8xbf16>
    %cst_107 = arith.constant dense<0.000000e+00> : vector<64x8xf32>
    %324 = tpu.matmul %321, %323, %cst_107 {dimension_numbers = #tpu.dot_dimension_numbers<[1], [0], [0], [1], [0, 0, 1, 1], [], []>} : vector<64x8xbf16>, vector<8x8xbf16>, vector<64x8xf32> -> vector<64x8xf32>
    %325 = arith.addf %319, %324 : vector<64x8xf32>
    %326 = vector.extract_strided_slice %313 {offsets = [0, 0, 0], sizes = [8, 8, 8], strides = [1, 1, 1]} : vector<10x8x8xbf16> to vector<8x8x8xbf16>
    %327 = vector.shape_cast %326 : vector<8x8x8xbf16> to vector<64x8xbf16>
    %328 = vector.extract_strided_slice %304 {offsets = [0, 1, 0, 0], sizes = [1, 1, 8, 8], strides = [1, 1, 1, 1]} : vector<3x3x8x8xbf16> to vector<1x1x8x8xbf16>
    %329 = vector.shape_cast %328 : vector<1x1x8x8xbf16> to vector<8x8xbf16>
    %cst_108 = arith.constant dense<0.000000e+00> : vector<64x8xf32>
    %330 = tpu.matmul %327, %329, %cst_108 {dimension_numbers = #tpu.dot_dimension_numbers<[1], [0], [0], [1], [0, 0, 1, 1], [], []>} : vector<64x8xbf16>, vector<8x8xbf16>, vector<64x8xf32> -> vector<64x8xf32>
    %331 = arith.addf %325, %330 : vector<64x8xf32>
    %332 = vector.extract_strided_slice %318 {offsets = [0, 0, 0], sizes = [8, 8, 8], strides = [1, 1, 1]} : vector<10x8x8xbf16> to vector<8x8x8xbf16>
    %333 = vector.shape_cast %332 : vector<8x8x8xbf16> to vector<64x8xbf16>
    %334 = vector.extract_strided_slice %304 {offsets = [0, 2, 0, 0], sizes = [1, 1, 8, 8], strides = [1, 1, 1, 1]} : vector<3x3x8x8xbf16> to vector<1x1x8x8xbf16>
    %335 = vector.shape_cast %334 : vector<1x1x8x8xbf16> to vector<8x8xbf16>
    %cst_109 = arith.constant dense<0.000000e+00> : vector<64x8xf32>
    %336 = tpu.matmul %333, %335, %cst_109 {dimension_numbers = #tpu.dot_dimension_numbers<[1], [0], [0], [1], [0, 0, 1, 1], [], []>} : vector<64x8xbf16>, vector<8x8xbf16>, vector<64x8xf32> -> vector<64x8xf32>
    %337 = arith.addf %331, %336 : vector<64x8xf32>
    %338 = vector.extract_strided_slice %311 {offsets = [1, 0, 0], sizes = [8, 8, 8], strides = [1, 1, 1]} : vector<10x8x8xbf16> to vector<8x8x8xbf16>
    %339 = vector.shape_cast %338 : vector<8x8x8xbf16> to vector<64x8xbf16>
    %340 = vector.extract_strided_slice %304 {offsets = [1, 0, 0, 0], sizes = [1, 1, 8, 8], strides = [1, 1, 1, 1]} : vector<3x3x8x8xbf16> to vector<1x1x8x8xbf16>
    %341 = vector.shape_cast %340 : vector<1x1x8x8xbf16> to vector<8x8xbf16>
    %cst_110 = arith.constant dense<0.000000e+00> : vector<64x8xf32>
    %342 = tpu.matmul %339, %341, %cst_110 {dimension_numbers = #tpu.dot_dimension_numbers<[1], [0], [0], [1], [0, 0, 1, 1], [], []>} : vector<64x8xbf16>, vector<8x8xbf16>, vector<64x8xf32> -> vector<64x8xf32>
    %343 = arith.addf %337, %342 : vector<64x8xf32>
    %344 = vector.extract_strided_slice %313 {offsets = [1, 0, 0], sizes = [8, 8, 8], strides = [1, 1, 1]} : vector<10x8x8xbf16> to vector<8x8x8xbf16>
    %345 = vector.shape_cast %344 : vector<8x8x8xbf16> to vector<64x8xbf16>
    %346 = vector.extract_strided_slice %304 {offsets = [1, 1, 0, 0], sizes = [1, 1, 8, 8], strides = [1, 1, 1, 1]} : vector<3x3x8x8xbf16> to vector<1x1x8x8xbf16>
    %347 = vector.shape_cast %346 : vector<1x1x8x8xbf16> to vector<8x8xbf16>
    %cst_111 = arith.constant dense<0.000000e+00> : vector<64x8xf32>
    %348 = tpu.matmul %345, %347, %cst_111 {dimension_numbers = #tpu.dot_dimension_numbers<[1], [0], [0], [1], [0, 0, 1, 1], [], []>} : vector<64x8xbf16>, vector<8x8xbf16>, vector<64x8xf32> -> vector<64x8xf32>
    %349 = arith.addf %343, %348 : vector<64x8xf32>
    %350 = vector.extract_strided_slice %318 {offsets = [1, 0, 0], sizes = [8, 8, 8], strides = [1, 1, 1]} : vector<10x8x8xbf16> to vector<8x8x8xbf16>
    %351 = vector.shape_cast %350 : vector<8x8x8xbf16> to vector<64x8xbf16>
    %352 = vector.extract_strided_slice %304 {offsets = [1, 2, 0, 0], sizes = [1, 1, 8, 8], strides = [1, 1, 1, 1]} : vector<3x3x8x8xbf16> to vector<1x1x8x8xbf16>
    %353 = vector.shape_cast %352 : vector<1x1x8x8xbf16> to vector<8x8xbf16>
    %cst_112 = arith.constant dense<0.000000e+00> : vector<64x8xf32>
    %354 = tpu.matmul %351, %353, %cst_112 {dimension_numbers = #tpu.dot_dimension_numbers<[1], [0], [0], [1], [0, 0, 1, 1], [], []>} : vector<64x8xbf16>, vector<8x8xbf16>, vector<64x8xf32> -> vector<64x8xf32>
    %355 = arith.addf %349, %354 : vector<64x8xf32>
    %356 = vector.extract_strided_slice %311 {offsets = [2, 0, 0], sizes = [8, 8, 8], strides = [1, 1, 1]} : vector<10x8x8xbf16> to vector<8x8x8xbf16>
    %357 = vector.shape_cast %356 : vector<8x8x8xbf16> to vector<64x8xbf16>
    %358 = vector.extract_strided_slice %304 {offsets = [2, 0, 0, 0], sizes = [1, 1, 8, 8], strides = [1, 1, 1, 1]} : vector<3x3x8x8xbf16> to vector<1x1x8x8xbf16>
    %359 = vector.shape_cast %358 : vector<1x1x8x8xbf16> to vector<8x8xbf16>
    %cst_113 = arith.constant dense<0.000000e+00> : vector<64x8xf32>
    %360 = tpu.matmul %357, %359, %cst_113 {dimension_numbers = #tpu.dot_dimension_numbers<[1], [0], [0], [1], [0, 0, 1, 1], [], []>} : vector<64x8xbf16>, vector<8x8xbf16>, vector<64x8xf32> -> vector<64x8xf32>
    %361 = arith.addf %355, %360 : vector<64x8xf32>
    %362 = vector.extract_strided_slice %313 {offsets = [2, 0, 0], sizes = [8, 8, 8], strides = [1, 1, 1]} : vector<10x8x8xbf16> to vector<8x8x8xbf16>
    %363 = vector.shape_cast %362 : vector<8x8x8xbf16> to vector<64x8xbf16>
    %364 = vector.extract_strided_slice %304 {offsets = [2, 1, 0, 0], sizes = [1, 1, 8, 8], strides = [1, 1, 1, 1]} : vector<3x3x8x8xbf16> to vector<1x1x8x8xbf16>
    %365 = vector.shape_cast %364 : vector<1x1x8x8xbf16> to vector<8x8xbf16>
    %cst_114 = arith.constant dense<0.000000e+00> : vector<64x8xf32>
    %366 = tpu.matmul %363, %365, %cst_114 {dimension_numbers = #tpu.dot_dimension_numbers<[1], [0], [0], [1], [0, 0, 1, 1], [], []>} : vector<64x8xbf16>, vector<8x8xbf16>, vector<64x8xf32> -> vector<64x8xf32>
    %367 = arith.addf %361, %366 : vector<64x8xf32>
    %368 = vector.extract_strided_slice %318 {offsets = [2, 0, 0], sizes = [8, 8, 8], strides = [1, 1, 1]} : vector<10x8x8xbf16> to vector<8x8x8xbf16>
    %369 = vector.shape_cast %368 : vector<8x8x8xbf16> to vector<64x8xbf16>
    %370 = vector.extract_strided_slice %304 {offsets = [2, 2, 0, 0], sizes = [1, 1, 8, 8], strides = [1, 1, 1, 1]} : vector<3x3x8x8xbf16> to vector<1x1x8x8xbf16>
    %371 = vector.shape_cast %370 : vector<1x1x8x8xbf16> to vector<8x8xbf16>
    %cst_115 = arith.constant dense<0.000000e+00> : vector<64x8xf32>
    %372 = tpu.matmul %369, %371, %cst_115 {dimension_numbers = #tpu.dot_dimension_numbers<[1], [0], [0], [1], [0, 0, 1, 1], [], []>} : vector<64x8xbf16>, vector<8x8xbf16>, vector<64x8xf32> -> vector<64x8xf32>
    %373 = arith.addf %367, %372 : vector<64x8xf32>
    %374 = vector.broadcast %305 : vector<1x8xf32> to vector<64x8xf32>
    %375 = arith.addf %373, %374 : vector<64x8xf32>
    %376 = vector.shape_cast %375 : vector<64x8xf32> to vector<8x8x8xf32>
    %377 = arith.addf %228, %376 : vector<8x8x8xf32>
    %378 = vector.extract_strided_slice %377 {offsets = [0, 0, 0], sizes = [1, 8, 8], strides = [1, 1, 1]} : vector<8x8x8xf32> to vector<1x8x8xf32>
    %379 = vector.extract_strided_slice %377 {offsets = [0, 0, 0], sizes = [7, 8, 8], strides = [1, 1, 1]} : vector<8x8x8xf32> to vector<7x8x8xf32>
    %380 = tpu.concatenate %378, %379 in 0 : vector<1x8x8xf32>, vector<7x8x8xf32> -> vector<8x8x8xf32>
    %381 = vector.extract_strided_slice %377 {offsets = [1, 0, 0], sizes = [7, 8, 8], strides = [1, 1, 1]} : vector<8x8x8xf32> to vector<7x8x8xf32>
    %382 = vector.extract_strided_slice %377 {offsets = [7, 0, 0], sizes = [1, 8, 8], strides = [1, 1, 1]} : vector<8x8x8xf32> to vector<1x8x8xf32>
    %383 = tpu.concatenate %381, %382 in 0 : vector<7x8x8xf32>, vector<1x8x8xf32> -> vector<8x8x8xf32>
    %cst_116 = arith.constant 2.500000e-01 : f32
    %384 = vector.broadcast %cst_116 : f32 to vector<8x8x8xf32>
    %385 = arith.mulf %384, %380 : vector<8x8x8xf32>
    %cst_117 = arith.constant 7.500000e-01 : f32
    %386 = vector.broadcast %cst_117 : f32 to vector<8x8x8xf32>
    %387 = arith.mulf %386, %377 : vector<8x8x8xf32>
    %388 = arith.addf %385, %387 : vector<8x8x8xf32>
    %cst_118 = arith.constant 7.500000e-01 : f32
    %389 = vector.broadcast %cst_118 : f32 to vector<8x8x8xf32>
    %390 = arith.mulf %389, %377 : vector<8x8x8xf32>
    %cst_119 = arith.constant 2.500000e-01 : f32
    %391 = vector.broadcast %cst_119 : f32 to vector<8x8x8xf32>
    %392 = arith.mulf %391, %383 : vector<8x8x8xf32>
    %393 = arith.addf %390, %392 : vector<8x8x8xf32>
    %394 = vector.shape_cast %388 : vector<8x8x8xf32> to vector<8x1x8x8xf32>
    %395 = vector.shape_cast %393 : vector<8x8x8xf32> to vector<8x1x8x8xf32>
    %396 = tpu.concatenate %394, %395 in 1 : vector<8x1x8x8xf32>, vector<8x1x8x8xf32> -> vector<8x2x8x8xf32>
    %397 = vector.shape_cast %396 : vector<8x2x8x8xf32> to vector<16x8x8xf32>
    %398 = vector.extract_strided_slice %397 {offsets = [0, 0, 0], sizes = [16, 1, 8], strides = [1, 1, 1]} : vector<16x8x8xf32> to vector<16x1x8xf32>
    %399 = vector.extract_strided_slice %397 {offsets = [0, 0, 0], sizes = [16, 7, 8], strides = [1, 1, 1]} : vector<16x8x8xf32> to vector<16x7x8xf32>
    %400 = tpu.concatenate %398, %399 in 1 : vector<16x1x8xf32>, vector<16x7x8xf32> -> vector<16x8x8xf32>
    %401 = vector.extract_strided_slice %397 {offsets = [0, 1, 0], sizes = [16, 7, 8], strides = [1, 1, 1]} : vector<16x8x8xf32> to vector<16x7x8xf32>
    %402 = vector.extract_strided_slice %397 {offsets = [0, 7, 0], sizes = [16, 1, 8], strides = [1, 1, 1]} : vector<16x8x8xf32> to vector<16x1x8xf32>
    %403 = tpu.concatenate %401, %402 in 1 : vector<16x7x8xf32>, vector<16x1x8xf32> -> vector<16x8x8xf32>
    %cst_120 = arith.constant 2.500000e-01 : f32
    %404 = vector.broadcast %cst_120 : f32 to vector<16x8x8xf32>
    %405 = arith.mulf %404, %400 : vector<16x8x8xf32>
    %cst_121 = arith.constant 7.500000e-01 : f32
    %406 = vector.broadcast %cst_121 : f32 to vector<16x8x8xf32>
    %407 = arith.mulf %406, %397 : vector<16x8x8xf32>
    %408 = arith.addf %405, %407 : vector<16x8x8xf32>
    %cst_122 = arith.constant 7.500000e-01 : f32
    %409 = vector.broadcast %cst_122 : f32 to vector<16x8x8xf32>
    %410 = arith.mulf %409, %397 : vector<16x8x8xf32>
    %cst_123 = arith.constant 2.500000e-01 : f32
    %411 = vector.broadcast %cst_123 : f32 to vector<16x8x8xf32>
    %412 = arith.mulf %411, %403 : vector<16x8x8xf32>
    %413 = arith.addf %410, %412 : vector<16x8x8xf32>
    %414 = vector.shape_cast %158 : vector<16x8x8xf32> to vector<128x8xf32>
    %415 = arith.truncf %414 : vector<128x8xf32> to vector<128x8xbf16>
    %416 = vector.shape_cast %408 : vector<16x8x8xf32> to vector<128x8xf32>
    %417 = arith.truncf %416 : vector<128x8xf32> to vector<128x8xbf16>
    %418 = vector.shape_cast %413 : vector<16x8x8xf32> to vector<128x8xf32>
    %419 = arith.truncf %418 : vector<128x8xf32> to vector<128x8xbf16>
    %420 = tpu.concatenate %415, %417, %419 in 1 : vector<128x8xbf16>, vector<128x8xbf16>, vector<128x8xbf16> -> vector<128x24xbf16>
    %c0_124 = arith.constant 0 : index
    %c0_125 = arith.constant 0 : index
    %421 = vector.load %arg17[%c0_124, %c0_125] : memref<24x8xbf16, #tpu.memory_space<vmem>>, vector<24x8xbf16>
    %cst_126 = arith.constant dense<0.000000e+00> : vector<128x8xf32>
    %422 = tpu.matmul %420, %421, %cst_126 {dimension_numbers = #tpu.dot_dimension_numbers<[1], [0], [0], [1], [0, 0, 1, 1], [], []>} : vector<128x24xbf16>, vector<24x8xbf16>, vector<128x8xf32> -> vector<128x8xf32>
    %c0_127 = arith.constant 0 : index
    %c0_128 = arith.constant 0 : index
    %423 = vector.load %arg18[%c0_127, %c0_128] : memref<1x8xf32, #tpu.memory_space<vmem>>, vector<1x8xf32>
    %424 = vector.broadcast %423 : vector<1x8xf32> to vector<128x8xf32>
    %425 = arith.addf %422, %424 : vector<128x8xf32>
    %426 = vector.shape_cast %425 : vector<128x8xf32> to vector<16x8x8xf32>
    %c0_129 = arith.constant 0 : index
    %c0_130 = arith.constant 0 : index
    %c0_131 = arith.constant 0 : index
    %c0_132 = arith.constant 0 : index
    %427 = vector.load %arg19[%c0_129, %c0_130, %c0_131, %c0_132] : memref<1x16x8x8xf32, #tpu.memory_space<vmem>>, vector<1x16x8x8xf32>
    %428 = vector.shape_cast %427 : vector<1x16x8x8xf32> to vector<16x8x8xf32>
    %429 = vector.shape_cast %426 : vector<16x8x8xf32> to vector<1x16x8x8xf32>
    tpu.vector_store %arg19[%c0_129, %c0_130, %c0_131, %c0_132], %429 {strides = array<i32>} : memref<1x16x8x8xf32, #tpu.memory_space<vmem>>, vector<1x16x8x8xf32>,
    return
  }
  func.func @transform_0(%arg0: i32) -> (i32, i32, i32, i32) {
    %c0_i32 = arith.constant 0 : i32
    %c0_i32_0 = arith.constant 0 : i32
    %c0_i32_1 = arith.constant 0 : i32
    %c0_i32_2 = arith.constant 0 : i32
    return %arg0, %c0_i32, %c0_i32_0, %c0_i32_1 : i32, i32, i32, i32
  }
  func.func @transform_1(%arg0: i32) -> (i32, i32, i32) {
    %c0_i32 = arith.constant 0 : i32
    %c0_i32_0 = arith.constant 0 : i32
    %c0_i32_1 = arith.constant 0 : i32
    %c0_i32_2 = arith.constant 0 : i32
    return %c0_i32, %c0_i32_0, %c0_i32_1 : i32, i32, i32
  }
  func.func @transform_2(%arg0: i32) -> (i32, i32, i32) {
    %c0_i32 = arith.constant 0 : i32
    %c0_i32_0 = arith.constant 0 : i32
    %c0_i32_1 = arith.constant 0 : i32
    %c0_i32_2 = arith.constant 0 : i32
    return %c0_i32, %c0_i32_0, %c0_i32_1 : i32, i32, i32
  }
  func.func @transform_3(%arg0: i32) -> (i32, i32, i32) {
    %c0_i32 = arith.constant 0 : i32
    %c0_i32_0 = arith.constant 0 : i32
    %c0_i32_1 = arith.constant 0 : i32
    %c0_i32_2 = arith.constant 0 : i32
    return %c0_i32, %c0_i32_0, %c0_i32_1 : i32, i32, i32
  }
  func.func @transform_4(%arg0: i32) -> (i32, i32) {
    %c0_i32 = arith.constant 0 : i32
    %c0_i32_0 = arith.constant 0 : i32
    %c0_i32_1 = arith.constant 0 : i32
    return %c0_i32, %c0_i32_0 : i32, i32
  }
  func.func @transform_5(%arg0: i32) -> (i32, i32, i32) {
    %c0_i32 = arith.constant 0 : i32
    %c0_i32_0 = arith.constant 0 : i32
    %c0_i32_1 = arith.constant 0 : i32
    %c0_i32_2 = arith.constant 0 : i32
    return %c0_i32, %c0_i32_0, %c0_i32_1 : i32, i32, i32
  }
  func.func @transform_6(%arg0: i32) -> (i32, i32, i32) {
    %c0_i32 = arith.constant 0 : i32
    %c0_i32_0 = arith.constant 0 : i32
    %c0_i32_1 = arith.constant 0 : i32
    %c0_i32_2 = arith.constant 0 : i32
    return %c0_i32, %c0_i32_0, %c0_i32_1 : i32, i32, i32
  }
  func.func @transform_7(%arg0: i32) -> (i32, i32, i32) {
    %c0_i32 = arith.constant 0 : i32
    %c0_i32_0 = arith.constant 0 : i32
    %c0_i32_1 = arith.constant 0 : i32
    %c0_i32_2 = arith.constant 0 : i32
    return %c0_i32, %c0_i32_0, %c0_i32_1 : i32, i32, i32
  }
  func.func @transform_8(%arg0: i32) -> (i32, i32) {
    %c0_i32 = arith.constant 0 : i32
    %c0_i32_0 = arith.constant 0 : i32
    %c0_i32_1 = arith.constant 0 : i32
    return %c0_i32, %c0_i32_0 : i32, i32
  }
  func.func @transform_9(%arg0: i32) -> (i32, i32, i32) {
    %c0_i32 = arith.constant 0 : i32
    %c0_i32_0 = arith.constant 0 : i32
    %c0_i32_1 = arith.constant 0 : i32
    %c0_i32_2 = arith.constant 0 : i32
    return %c0_i32, %c0_i32_0, %c0_i32_1 : i32, i32, i32
  }
  func.func @transform_10(%arg0: i32) -> (i32, i32, i32) {
    %c0_i32 = arith.constant 0 : i32
    %c0_i32_0 = arith.constant 0 : i32
    %c0_i32_1 = arith.constant 0 : i32
    %c0_i32_2 = arith.constant 0 : i32
    return %c0_i32, %c0_i32_0, %c0_i32_1 : i32, i32, i32
  }
  func.func @transform_11(%arg0: i32) -> (i32, i32) {
    %c0_i32 = arith.constant 0 : i32
    %c0_i32_0 = arith.constant 0 : i32
    %c0_i32_1 = arith.constant 0 : i32
    return %c0_i32, %c0_i32_0 : i32, i32
  }
  func.func @transform_12(%arg0: i32) -> (i32, i32, i32, i32) {
    %c0_i32 = arith.constant 0 : i32
    %c0_i32_0 = arith.constant 0 : i32
    %c0_i32_1 = arith.constant 0 : i32
    %c0_i32_2 = arith.constant 0 : i32
    %c0_i32_3 = arith.constant 0 : i32
    return %c0_i32, %c0_i32_0, %c0_i32_1, %c0_i32_2 : i32, i32, i32, i32
  }
  func.func @transform_13(%arg0: i32) -> (i32, i32) {
    %c0_i32 = arith.constant 0 : i32
    %c0_i32_0 = arith.constant 0 : i32
    %c0_i32_1 = arith.constant 0 : i32
    return %c0_i32, %c0_i32_0 : i32, i32
  }
  func.func @transform_14(%arg0: i32) -> (i32, i32, i32, i32) {
    %c0_i32 = arith.constant 0 : i32
    %c0_i32_0 = arith.constant 0 : i32
    %c0_i32_1 = arith.constant 0 : i32
    %c0_i32_2 = arith.constant 0 : i32
    %c0_i32_3 = arith.constant 0 : i32
    return %c0_i32, %c0_i32_0, %c0_i32_1, %c0_i32_2 : i32, i32, i32, i32
  }
  func.func @transform_15(%arg0: i32) -> (i32, i32) {
    %c0_i32 = arith.constant 0 : i32
    %c0_i32_0 = arith.constant 0 : i32
    %c0_i32_1 = arith.constant 0 : i32
    return %c0_i32, %c0_i32_0 : i32, i32
  }
  func.func @transform_16(%arg0: i32) -> (i32, i32) {
    %c0_i32 = arith.constant 0 : i32
    %c0_i32_0 = arith.constant 0 : i32
    %c0_i32_1 = arith.constant 0 : i32
    return %c0_i32, %c0_i32_0 : i32, i32
  }
  func.func @transform_17(%arg0: i32) -> (i32, i32) {
    %c0_i32 = arith.constant 0 : i32
    %c0_i32_0 = arith.constant 0 : i32
    %c0_i32_1 = arith.constant 0 : i32
    return %c0_i32, %c0_i32_0 : i32, i32
  }
  func.func @transform_18(%arg0: i32) -> (i32, i32, i32, i32) {
    %c0_i32 = arith.constant 0 : i32
    %c0_i32_0 = arith.constant 0 : i32
    %c0_i32_1 = arith.constant 0 : i32
    %c0_i32_2 = arith.constant 0 : i32
    return %arg0, %c0_i32, %c0_i32_0, %c0_i32_1 : i32, i32, i32, i32
  }
}

</mosaic_0001>

<bundles_post_ra>
// kernel: _lambda_.1
= control target key start
LH: loop header
LB: loop body
LE: loop exit
PB: predicated region body
PF: predicated region fallthrough
CT: control target
= control target key end

     0   :  { %s8860_s27 = smov 0   ;;  %s11263_s0 = inlined_call_operand.vmem [shape: f32[2,16,8,8], index: 0, kind: input, shape index: {}]   ;;  %s11264_s1 = inlined_call_operand.vmem [shape: bf16[3,8,8], index: 1, kind: input, shape index: {}]   ;;  %s11265_s2 = inlined_call_operand.vmem [shape: bf16[3,4,8], index: 2, kind: input, shape index: {}]   ;;  %s11266_s3 = inlined_call_operand.vmem [shape: bf16[3,4,8], index: 3, kind: input, shape index: {}]   ;;  %s11267_s4 = inlined_call_operand.vmem [shape: f32[1,8], index: 4, kind: input, shape index: {}]   ;;  %s11268_s5 = inlined_call_operand.vmem [shape: bf16[3,8,8], index: 5, kind: input, shape index: {}]   ;;  %s11269_s6 = inlined_call_operand.vmem [shape: bf16[3,4,8], index: 6, kind: input, shape index: {}]   ;;  %s11270_s7 = inlined_call_operand.vmem [shape: bf16[3,4,8], index: 7, kind: input, shape index: {}]   ;;  %s11271_s8 = inlined_call_operand.vmem [shape: f32[1,8], index: 8, kind: input, shape index: {}]   ;;  %s11272_s9 = inlined_call_operand.vmem [shape: bf16[3,8,8], index: 9, kind: input, shape index: {}]   ;;  %s11273_s10 = inlined_call_operand.vmem [shape: bf16[3,4,8], index: 10, kind: input, shape index: {}]   ;;  %s11274_s11 = inlined_call_operand.vmem [shape: f32[1,8], index: 11, kind: input, shape index: {}]   ;;  %s11275_s12 = inlined_call_operand.vmem [shape: bf16[3,3,8,8], index: 12, kind: input, shape index: {}]   ;;  %s11276_s13 = inlined_call_operand.vmem [shape: f32[1,8], index: 13, kind: input, shape index: {}]   ;;  %s11277_s14 = inlined_call_operand.vmem [shape: bf16[3,3,8,8], index: 14, kind: input, shape index: {}]   ;;  %s11278_s15 = inlined_call_operand.vmem [shape: f32[1,8], index: 15, kind: input, shape index: {}]   ;;  %s11279_s16 = inlined_call_operand.vmem [shape: bf16[24,8], index: 16, kind: input, shape index: {}]   ;;  %s11280_s17 = inlined_call_operand.vmem [shape: f32[1,8], index: 17, kind: input, shape index: {}]   ;;  %s11281_s18 = inlined_call_operand.vmem [shape: f32[2,16,8,8], index: 18, kind: output, shape index: {}]  }
   0x1   :  { %11346 = sst [smem:[#allocation24_spill]] %s11263_s0 }
   0x2   :  { %11347 = sst [smem:[#allocation25_spill]] %s11264_s1 }
   0x3   :  { %11348 = sst [smem:[#allocation26_spill]] %s11265_s2 }
   0x4 LB: > { %s6876_s28 = sadd.s32 4294967295, %s8759_s27   ;;  %p6880_p0 = scmp.ge.s32.totalorder %s8759_s27, 1  ;;  %s8759_s27 = sphi %s8860_s27, %s28_s27  }
   0x5   : > { %p512_p1 = scmp.lt.s32.totalorder %s8759_s27, 3 }
   0x7   : > { %p513_p2 = pnand %p6880_p0, %p512_p1 }
   0x9   : > { %516 = sbr.rel (%p513_p2) target bundleno = 2021 (0x7e5), region = 92 }
  0x10   : > { %p566_p3 = scmp.lt.s32.totalorder %s6876_s28, 1  ;;  %vm846_vm0 = vcmask 1043456   ;;  %s11349_s0 = sld [smem:[#allocation25_spill]]  ;;  %v8874_v1 = vld [vmem:[%s11266_s3] sm:$0x3]  ;;  %vm930_vm1 = vcmask 1041408  }
  0x11   : > { %s11350_s2 = sld [smem:[#allocation26_spill]]  ;;  %s11351_s25 = sld [smem:[#allocation24_spill]]  ;;  %vm1069_vm2 = vcmask 64512   ;;  %vm847_vm3 = vsmask.f32 3328  ;;  %vm905_vm5 = vcmask 31744  }
  0x12   : > { %s11523_s28 = smov (!%p566_p3, %s6876_s28), 1  ;;  %s8761_s29 = smov 124   ;;  %vm9135_vm4 = vmand %vm846_vm0, %vm847_vm3  ;;  %vm779_vm6 = vcmask 1040384   ;;  %vm780_vm7 = vsmask.f32 256  ;;  %vm6459_vm9 = vcmask 1046528  }
  0x13   : > { %s7323_s20 = sshll.u32 %s11523_s28, 7  ;;  %vm9392_vm8 = vmand %vm779_vm6, %vm780_vm7  ;;  %s8764_s21 = smov 16   ;;  %vm6652_vm10 = vcmask 130048   ;;  %vm6688_vm11 = vcmask 195584  }
  0x16   : > { %v593_v0 = vld [vmem:[%s11349_s0] sm:$0xf] }
  0x17   : > { %8681 = vmatprep.subr.msk.bf16.mxu0 %vm846_vm0, %v593_v0  ;;  %v1096_v2 = vsel %vm846_vm0, %v593_v0, 0  ;;  %v596_v3 = vld [vmem:[%s11350_s2] sm:$0x3]  ;;  %s8891_s26 = scalar_lea.vmem %s11351_s25, %s7323_s20  ;;  %s11226_s25 = scalar_lea.vmem %s11281_s18, %s7323_s20 }
  0x18   : > { %7691 = vmatpush3.bf16.msra.mxu0 %v1096_v2  ;;  %8680 = vmatprep.subr.msk.bf16.mxu1 %vm930_vm1, %v596_v3  ;;  %v8895_v4 = vld [vmem:[%s8891_s26 + $0x10] sm:$0xff]  ;;  %v8898_v5 = vld [vmem:[%s8891_s26] sm:$0xff]  ;;  %v8901_v6 = vld [vmem:[%s8891_s26 + $0x18] sm:$0xff]  ;;  %v932_v7 = vsel %vm930_vm1, %v596_v3, 0 }
  0x19   : > { %8682 = vmatprep.subr.msk.bf16.mxu0 %vm930_vm1, %v8874_v1  ;;  %11352 = vst [vmem:[#allocation2_spill] sm:$0xff] %v8895_v4  ;;  %11353 = vst [vmem:[#allocation3_spill] sm:$0xff] %v8898_v5  ;;  %v8906_v8 = vpack.c.bf16 %v8895_v4, %v8895_v4  ;;  %v8910_v9 = vpack.c.bf16 %v8898_v5, %v8898_v5  ;;  %v8914_v10 = vpack.c.bf16 %v8901_v6, %v8901_v6  ;;  %v8917_v11 = vld [vmem:[%s8891_s26 + $0x8] sm:$0xff]  ;;  %v8927_v14 = vld [vmem:[%s8891_s26 + $0x20] sm:$0xff] }
  0x1a   : > { %11354 = vst [vmem:[#allocation4_spill] sm:$0xff] %v8917_v11  ;;  %v8920_v12 = vld [vmem:[%s8891_s26 + $0x28] sm:$0xff]  ;;  %7673 = vmatpush3.bf16.msra.mxu1 %v932_v7  ;;  %v8924_v13 = vpack.c.bf16 %v8917_v11, %v8917_v11  ;;  %11355 = vst [vmem:[#allocation5_spill] sm:$0xff] %v8927_v14  ;;  %v8947_v26 = vpack.c.bf16 %v8927_v14, %v8927_v14  ;;  %v8958_v31 = vld [vmem:[%s8891_s26 + $0x38] sm:$0xff] }
  0x1b   : > { %v634_v15 = vshrl.u32 %v8906_v8, 16  ;;  %v637_v16 = vshll.u32 %v8906_v8, 16  ;;  %v620_v17 = vshrl.u32 %v8910_v9, 16  ;;  %v623_v18 = vshll.u32 %v8910_v9, 16  ;;  %v8961_v32 = vld [vmem:[%s8891_s26 + $0x30] sm:$0xff]  ;;  %v8989_v46 = vld [vmem:[%s8891_s26 + $0x48] sm:$0xff] }
  0x1c   : > { %v641_v19 = vshrl.u32 %v8914_v10, 16  ;;  %v644_v20 = vshll.u32 %v8914_v10, 16  ;;  %v627_v21 = vshrl.u32 %v8924_v13, 16  ;;  %v8938_v22 = vpack.c.bf16 %v8920_v12, %v8920_v12  ;;  %11356 = vst [vmem:[#allocation6_spill] sm:$0xff] %v8961_v32  ;;  %v8992_v47 = vld [vmem:[%s8891_s26 + $0x40] sm:$0xff]  ;;  %v8995_v48 = vld [vmem:[%s8891_s26 + $0x58] sm:$0xff] }
  0x1d   : > { %v636_v23 = vrot.slane %v634_v15, 7  ;;  %v622_v24 = vrot.slane %v620_v17, 7  ;;  %v630_v25 = vshll.u32 %v8924_v13, 16  ;;  %v11294_v37 = vshrl.u32 %v8947_v26, 16  ;;  %11357 = vst [vmem:[#allocation7_spill] sm:$0xff] %v8992_v47  ;;  %v9005_v52 = vld [vmem:[%s8891_s26 + $0x50] sm:$0xff] }
  0x1e   : > { %v643_v27 = vrot.slane %v641_v19, 7  ;;  %v629_v28 = vrot.slane %v627_v21, 7  ;;  %v11295_v35 = vshrl.u32 %v8938_v22, 16  ;;  %v658_v36 = vshll.u32 %v8938_v22, 16  ;;  %11358 = vst [vmem:[#allocation8_spill] sm:$0xff] %v9005_v52 }
  0x1f   : > { %v639_v29 = vor.u32 %v637_v16, %v636_v23  ;;  %v625_v30 = vor.u32 %v623_v18, %v622_v24  ;;  %v651_v38 = vshll.u32 %v8947_v26, 16  ;;  %v8975_v39 = vpack.c.bf16 %v8958_v31, %v8958_v31 }
  0x20   : > { %v646_v33 = vor.u32 %v644_v20, %v643_v27  ;;  %v632_v34 = vor.u32 %v630_v25, %v629_v28  ;;  %v8979_v40 = vpack.c.bf16 %v8961_v32, %v8961_v32  ;;  %v657_v41 = vrot.slane %v11295_v35, 7 }
  0x21   : > { %735 = vrot.lane.b32.xlu1 %v639_v29, %s8761_s29  ;;  %731 = vrot.lane.b32.xlu0 %v625_v30, %s8761_s29  ;;  %v650_v42 = vrot.slane %v11294_v37, 7  ;;  %v11293_v43 = vshrl.u32 %v8975_v39, 16  ;;  %v672_v44 = vshll.u32 %v8975_v39, 16  ;;  %v9013_v55 = vpack.c.bf16 %v8989_v46, %v8989_v46  ;;  %v9050_v30 = vld [vmem:[%s8891_s26 + $0x68] sm:$0xff] }
  0x22   : > { %v11292_v45 = vshrl.u32 %v8979_v40, 16  ;;  %v660_v49 = vor.u32 %v658_v36, %v657_v41  ;;  %v665_v51 = vshll.u32 %v8979_v40, 16  ;;  %v9017_v56 = vpack.c.bf16 %v8992_v47, %v8992_v47 }
  0x23   : > { %v653_v50 = vor.u32 %v651_v38, %v650_v42  ;;  %v671_v53 = vrot.slane %v11293_v43, 7  ;;  %v9021_v57 = vpack.c.bf16 %v8995_v48, %v8995_v48  ;;  %v9027_v59 = vpack.c.bf16 %v9005_v52, %v9005_v52  ;;  %v9062_v42 = vld [vmem:[%s8891_s26 + $0x78] sm:$0xff] }
  0x24   : > { %v664_v54 = vrot.slane %v11292_v45, 7  ;;  %v11289_v61 = vshrl.u32 %v9013_v55, 16  ;;  %v686_v62 = vshll.u32 %v9013_v55, 16  ;;  %v11288_v63 = vshrl.u32 %v9017_v56, 16  ;;  %11360 = vst [vmem:[#allocation10_spill] sm:$0xff] %v9062_v42 }
  0x25   : > { %737 = vrot.lane.b32.xlu1 %v646_v33, %s8761_s29  ;;  %733 = vrot.lane.b32.xlu0 %v632_v34, %s8761_s29  ;;  %v674_v58 = vor.u32 %v672_v44, %v671_v53  ;;  %v679_v0 = vshll.u32 %v9017_v56, 16  ;;  %v11285_v2 = vshrl.u32 %v9021_v57, 16  ;;  %v11284_v3 = vshrl.u32 %v9027_v59, 16  ;;  %v9053_v33 = vld [vmem:[%s8891_s26 + $0x60] sm:$0xff] }
  0x26   : > { %v667_v60 = vor.u32 %v665_v51, %v664_v54  ;;  %v685_v7 = vrot.slane %v11289_v61, 7  ;;  %v678_v23 = vrot.slane %v11288_v63, 7  ;;  %v11291_v24 = vshll.u32 %v9021_v57, 16  ;;  %11359 = vst [vmem:[#allocation9_spill] sm:$0xff] %v9053_v33 }
  0x27   : > { %v699_v27 = vrot.slane %v11285_v2, 7  ;;  %v692_v28 = vrot.slane %v11284_v3, 7  ;;  %v11290_v29 = vshll.u32 %v9027_v59, 16  ;;  %v804_v53 = vrot.slane %v644_v20, 1 }
  0x28   : > { %v688_v34 = vor.u32 %v686_v62, %v685_v7  ;;  %v681_v41 = vor.u32 %v679_v0, %v678_v23  ;;  %v9073_v54 = vpack.c.bf16 %v8895_v4, %v8917_v11  ;;  %v9081_v7 = vpack.c.bf16 %v9050_v30, %v9050_v30 }
  0x29   : > { %741 = vrot.lane.b32.xlu1 %v660_v49, %s8761_s29  ;;  %739 = vrot.lane.b32.xlu0 %v653_v50, %s8761_s29  ;;  %v9065_v49 = vld [vmem:[%s8891_s26 + $0x70] sm:$0xff]  ;;  %v802_v50 = vrot.slane %v637_v16, 1  ;;  %v9085_v16 = vpack.c.bf16 %v9053_v33, %v9053_v33  ;;  %v11286_v23 = vmov 0   ;;  %v695_v3 = vor.u32 %v11290_v29, %v692_v28 }
  0x2a   : > { %11361 = vst [vmem:[#allocation11_spill] sm:$0xff] %v9065_v49  ;;  %v6901_v20 = vcombine.low %v11286_v23, %v8910_v9  ;;  %v9101_v2 = vpack.c.bf16 %v8927_v14, %v8901_v6  ;;  %v11296_v23 = vshrl.u32 %v9081_v7, 16  ;;  %v714_v28 = vshll.u32 %v9081_v7, 16 }
  0x2b   : > { %v11297_v63 = vshrl.u32 %v9085_v16, 16  ;;  %v11299_v61 = vshll.u32 %v9085_v16, 16  ;;  %v803_v37 = vor.u32 %v802_v50, %v634_v15  ;;  %v798_v50 = vrot.slane %v623_v18, 1 }
  0x2c   : > { %7692 = vmatprep.mubr.msk.bf16.mxu0 %vm1069_vm2, %v6901_v20  ;;  %v9124_v20 = vld [vmem:[%s11349_s0 + $0x4] sm:$0xf]  ;;  %v810_v18 = vrot.slane %v665_v51, 1  ;;  %v814_v51 = vrot.slane %v679_v0, 1  ;;  %v11370_v9 = vshll.u32 %v9027_v59, 16 }
  0x2d   : > { %745 = vrot.lane.b32.xlu1 %v674_v58, %s8761_s29  ;;  %743 = vrot.lane.b32.xlu0 %v667_v60, %s8761_s29  ;;  %v1258_v58 = vsel %vm930_vm1, %v8874_v1, 0  ;;  %v702_v60 = vor.u32 %v11291_v24, %v699_v27  ;;  %v9093_v1 = vpack.c.bf16 %v9062_v42, %v9062_v42  ;;  %v9097_v27 = vpack.c.bf16 %v9065_v49, %v9065_v49 }
  0x2e   : > { %v706_v43 = vrot.slane %v11297_v63, 7  ;;  %7693 = vmatmul.mubr.msk.bf16.vlgmr.msra.gmra.mrb[0].mxu0 %vm1069_vm2, %v9073_v54  ;;  %v11362_v63 = vmov 0 }
  0x2f   : > { %v725_v29 = vshrl.u32 %v9093_v1, 16  ;;  %v728_v24 = vshll.u32 %v9093_v1, 16  ;;  %v11298_v45 = vshrl.u32 %v9097_v27, 16  ;;  %7709 = vmatpush3.bf16.msra.mxu0 %v1258_v58  ;;  %7696 = vmatprep.mubr.msk.bf16.mxu0 %vm1069_vm2, %v9101_v2  ;;  %v11363_v63 = vsel %vm9135_vm4, 4294967295, %v11362_v63 }
  0x30   : > { %11364 = vst [vmem:[#allocation12_spill] sm:$0xff] %v11363_v63  ;;  %v709_v10 = vor.u32 %v11299_v61, %v706_v43  ;;  %v806_v58 = vrot.slane %v651_v38, 1  ;;  %8683 = vmatprep.subr.msk.bf16.mxu0 %vm846_vm0, %v9124_v20  ;;  %v816_v38 = vrot.slane %v686_v62, 1 }
  0x31   : > { %749 = vrot.lane.b32.xlu1 %v688_v34, %s8761_s29  ;;  %747 = vrot.lane.b32.xlu0 %v681_v41, %s8761_s29  ;;  %v800_v34 = vrot.slane %v630_v25, 1  ;;  %v713_v41 = vrot.slane %v11296_v23, 7  ;;  %v805_v25 = vor.u32 %v804_v53, %v641_v19  ;;  %v828_v35 = vrot.slane %v728_v24, 1 }
  0x32   : > { %v721_v23 = vshll.u32 %v9097_v27, 16  ;;  %v727_v15 = vrot.slane %v725_v29, 7  ;;  %v720_v19 = vrot.slane %v11298_v45, 7  ;;  %v808_v53 = vrot.slane %v658_v36, 1 }
  0x33   : > { %v716_v8 = vor.u32 %v714_v28, %v713_v41  ;;  %v801_v43 = vor.u32 %v800_v34, %v627_v21  ;;  %v9165_v36 = vpack.c.bf16 %v8961_v32, %v8920_v12  ;;  %v9175_v21 = vpack.c.bf16 %v8992_v47, %v8958_v31 }
  0x34   : > { %v799_v34 = vor.u32 %v798_v50, %v620_v17  ;;  %v11365_v41 = vshrl.u32 %v8938_v22, 16  ;;  %v11366_v45 = vshrl.u32 %v8947_v26, 16  ;;  %v818_v17 = vrot.slane %v11370_v9, 1 }
  0x35   : > { %753 = vrot.lane.b32.xlu1 %v702_v60, %s8761_s29  ;;  %751 = vrot.lane.b32.xlu0 %v695_v3, %s8761_s29  ;;  %v9153_v3 = vor.u32 %v828_v35, %v725_v29  ;;  %v812_v60 = vrot.slane %v672_v44, 1  ;;  %v9169_v35 = vsel %vm9135_vm4, %v803_v37, 0  ;;  %v9179_v44 = vsel %vm9135_vm4, %v805_v25, 0 }
  0x36   : > { %v730_v37 = vor.u32 %v728_v24, %v727_v15  ;;  %v723_v29 = vor.u32 %v721_v23, %v720_v19  ;;  %v809_v25 = vor.u32 %v808_v53, %v11365_v41  ;;  %v807_v0 = vor.u32 %v806_v58, %v11366_v45  ;;  %7697 = vmatmul.mubr.msk.bf16.gmra.mrb[4].mxu0 %vm1069_vm2, %v9165_v36 }
  0x37   : > { %v11368_v24 = vshrl.u32 %v8979_v40, 16  ;;  %v11369_v15 = vshll.u32 %v9021_v57, 16  ;;  %7700 = vmatprep.mubr.msk.bf16.mxu0 %vm1069_vm2, %v9175_v21  ;;  %v9209_v22 = vsel %vm9135_vm4, %v801_v43, 0  ;;  %v11371_v26 = vshrl.u32 %v9013_v55, 16 }
  0x38   : > { %v11372_v40 = vshrl.u32 %v9017_v56, 16  ;;  %v9219_v50 = vpack.c.bf16 %v9005_v52, %v8989_v46  ;;  %v9223_v53 = vsel %vm9135_vm4, %v799_v34, 0  ;;  %v9227_v58 = vsel %vm9135_vm4, %v807_v0, 0 }
  0x39   : > { %757 = vrot.lane.b32.xlu1 %v716_v8, %s8761_s29  ;;  %755 = vrot.lane.b32.xlu0 %v709_v10, %s8761_s29  ;;  %v11367_v8 = vshrl.u32 %v8975_v39, 16  ;;  %v811_v10 = vor.u32 %v810_v18, %v11368_v24  ;;  %v820_v19 = vrot.slane %v11369_v15, 1  ;;  %v817_v39 = vor.u32 %v816_v38, %v11371_v26 }
  0x3a   : > { %v815_v45 = vor.u32 %v814_v51, %v11372_v40  ;;  %v9231_v55 = vsel %vm9135_vm4, %v809_v25, 0  ;;  %v11373_v38 = vshrl.u32 %v9021_v57, 16  ;;  %v9251_v34 = vpack.c.bf16 %v9053_v33, %v8995_v48 }
  0x3b   : > { %v813_v61 = vor.u32 %v812_v60, %v11367_v8  ;;  %v9235_v56 = vsel %vm9135_vm4, %v811_v10, 0  ;;  %v824_v41 = vrot.slane %v714_v28, 1  ;;  %v11375_v25 = vshll.u32 %v9085_v16, 16  ;;  %v595_v60 = vld [vmem:[%s11349_s0 + $0x8] sm:$0xf] }
  0x3c   : > { %v821_v51 = vor.u32 %v820_v19, %v11373_v38  ;;  %v9263_v57 = vsel %vm9135_vm4, %v815_v45, 0  ;;  %v11376_v15 = vshrl.u32 %v9081_v7, 16  ;;  %v11377_v9 = vshrl.u32 %v9085_v16, 16 }
  0x3d   : > { %761 = vrot.lane.b32.xlu1 %v730_v37, %s8761_s29  ;;  %759 = vrot.lane.b32.xlu0 %v723_v29, %s8761_s29  ;;  %v9239_v43 = vsel %vm9135_vm4, %v813_v61, 0  ;;  %v11374_v37 = vshrl.u32 %v9027_v59, 16  ;;  %v822_v0 = vrot.slane %v11375_v25, 1  ;;  %v9267_v59 = vsel %vm9135_vm4, %v817_v39, 0 }
  0x3e   : > { %7701 = vmatmul.mubr.msk.bf16.gmra.mrb[8].mxu0 %vm1069_vm2, %v9219_v50  ;;  %v9277_v8 = vsel %vm9135_vm4, %v821_v51, 0  ;;  %v825_v19 = vor.u32 %v824_v41, %v11376_v15  ;;  %v9289_v26 = vpack.c.bf16 %v9065_v49, %v9050_v30  ;;  %v11378_v39 = vmov 0  }
  0x3f   : > { %v819_v29 = vor.u32 %v818_v17, %v11374_v37  ;;  %7704 = vmatprep.mubr.msk.bf16.mxu0 %vm1069_vm2, %v9251_v34  ;;  %v823_v17 = vor.u32 %v822_v0, %v11377_v9  ;;  %v6917_v40 = vcombine.low %v11378_v39, %v9223_v53  ;;  %v9308_v38 = vcombine.low %v9209_v22, %v9169_v35 }
  0x40   : > { %v9301_v7 = vsel %vm9135_vm4, %v825_v19, 0  ;;  %v9312_v51 = vcombine.low %v9179_v44, %v9227_v58  ;;  %v1408_v37 = vsel %vm846_vm0, %v9124_v20, 0  ;;  %v9326_v41 = vcombine.low %v9231_v55, %v9235_v56 }
  0x41   : > { %v9273_v28 = vsel %vm9135_vm4, %v819_v29, 0  ;;  %v9297_v45 = vsel %vm9135_vm4, %v823_v17, 0  ;;  %v597_v29 = vld [vmem:[%s11350_s2 + $0x2] sm:$0x3]  ;;  %v9330_v20 = vcombine.low %v9239_v43, %v9263_v57  ;;  %v826_v25 = vrot.slane %v721_v23, 1 }
  0x42   : > { %v9340_v0 = vcombine.low %v9267_v59, %v9273_v28  ;;  %v11379_v15 = vshrl.u32 %v9097_v27, 16  ;;  %v9346_v9 = vcombine.low %v9277_v8, %v9297_v45  ;;  %v7332_v27 = vpack.c.bf16 %v8917_v11, %v8898_v5 }
  0x44   : > { %v827_v19 = vor.u32 %v826_v25, %v11379_v15  ;;  %v1558_v25 = vsel %vm930_vm1, %v597_v29, 0  ;;  %v600_v15 = vld [vmem:[%s11266_s3 + $0x2] sm:$0x3] }
  0x46   : > { %7705 = vmatmul.mubr.msk.bf16.gmra.mrb[12].mxu0 %vm1069_vm2, %v9289_v26  ;;  %v9354_v23 = vsel %vm9135_vm4, %v827_v19, 0  ;;  %v7335_v19 = vpack.c.bf16 %v8958_v31, %v8961_v32 }
  0x47   : > { %7710 = vmatprep.mubr.msk.bf16.mxu0 %vm905_vm5, %v6917_v40  ;;  %v9358_v17 = vcombine.low %v9301_v7, %v9354_v23  ;;  %v7333_v40 = vpack.c.bf16 %v8901_v6, %v8895_v4 }
  0x4e   : > { %7711 = vmatmul.mubr.msk.bf16.vlgmr.msra.gmra.mrb[0].mxu0 %vm905_vm5, %v9308_v38 }
  0x4f   : > { %7727 = vmatpush3.bf16.msra.mxu0 %v1408_v37  ;;  %7714 = vmatprep.mubr.msk.bf16.mxu0 %vm905_vm5, %v9312_v51  ;;  %v7334_v37 = vpack.c.bf16 %v8920_v12, %v8927_v14  ;;  %v598_v14 = vld [vmem:[%s11350_s2 + $0x4] sm:$0x3] }
  0x50   : > { %8684 = vmatprep.subr.msk.bf16.mxu0 %vm930_vm1, %v597_v29  ;;  %v7337_v29 = vpack.c.bf16 %v8995_v48, %v9005_v52 }
  0x56   : > { %7715 = vmatmul.mubr.msk.bf16.gmra.mrb[4].mxu0 %vm905_vm5, %v9326_v41 }
  0x57   : > { %7718 = vmatprep.mubr.msk.bf16.mxu0 %vm905_vm5, %v9330_v20 }
  0x5e   : > { %7719 = vmatmul.mubr.msk.bf16.gmra.mrb[8].mxu0 %vm905_vm5, %v9340_v0 }
  0x5f   : > { %7722 = vmatprep.mubr.msk.bf16.mxu0 %vm905_vm5, %v9346_v9 }
  0x66   : > { %7723 = vmatmul.mubr.msk.bf16.gmra.mrb[12].mxu0 %vm905_vm5, %v9358_v17 }
  0x67   : > { %7728 = vmatprep.mubr.msk.bf16.mxu0 %vm1069_vm2, %v7332_v27  ;;  %v7336_v27 = vpack.c.bf16 %v8989_v46, %v8992_v47 }
  0x6e   : > { %7729 = vmatmul.mubr.msk.bf16.vlgmr.msra.gmra.mrb[0].mxu0 %vm1069_vm2, %v7333_v40  ;;  %v7338_v40 = vpack.c.bf16 %v9050_v30, %v9053_v33 }
  0x6f   : > { %7745 = vmatpush3.bf16.msra.mxu0 %v1558_v25  ;;  %7732 = vmatprep.mubr.msk.bf16.mxu0 %vm1069_vm2, %v7334_v37  ;;  %v7339_v37 = vpack.c.bf16 %v9062_v42, %v9065_v49  ;;  %v11380_v25 = vmov 0 }
  0x70   : > { %8685 = vmatprep.subr.msk.bf16.mxu0 %vm930_vm1, %v600_v15  ;;  %v11381_v25 = vsel %vm9392_vm8, 4294967295, %v11380_v25 }
  0x71   : > { %11382 = vst [vmem:[#allocation13_spill] sm:$0xff] %v11381_v25  ;;  %v11390_v25 = vcombine.low %v9169_v35, %v9179_v44  ;;  %v11394_v35 = vcombine.low %v9273_v28, %v9277_v8  ;;  %v11395_v44 = vcombine.low %v9297_v45, %v9301_v7  ;;  %v7355_v28 = vpack.c.bf16 %v8920_v12, %v8901_v6  ;;  %v3841_v45 = vld [vmem:[%s11273_s10 + $0x2] sm:$0x3]  ;;  %v11399_v7 = vld [vmem:[#allocation3_spill] sm:$0xff] }
  0x72   : > { %v7356_v8 = vpack.c.bf16 %v8989_v46, %v8958_v31 }
  0x76   : > { %7733 = vmatmul.mubr.msk.bf16.gmra.mrb[4].mxu0 %vm1069_vm2, %v7335_v19 }
  0x77   : > { %7736 = vmatprep.mubr.msk.bf16.mxu0 %vm1069_vm2, %v7336_v27 }
  0x7e   : > { %7737 = vmatmul.mubr.msk.bf16.gmra.mrb[8].mxu0 %vm1069_vm2, %v7337_v29 }
  0x7f   : > { %7740 = vmatprep.mubr.msk.bf16.mxu0 %vm1069_vm2, %v7338_v40 }
  0x86   : > { %7741 = vmatmul.mubr.msk.bf16.gmra.mrb[12].mxu0 %vm1069_vm2, %v7339_v37 }
  0x93   : > { %v736_v19 = vpop.permute.xlu1 %735  ;;  %v732_v27 = vpop.permute.xlu0 %731 }
  0x94   : > { %v9398_v16 = vsel %vm9392_vm8, 0, %v736_v19  ;;  %v9402_v29 = vsel %vm9392_vm8, 0, %v732_v27 }
  0x95   : > { %11383 = vst [vmem:[#allocation14_spill] sm:$0xff] %v9398_v16  ;;  %11384 = vst [vmem:[#allocation15_spill] sm:$0xff] %v9402_v29  ;;  %v6885_v37 = vcombine.low %v11378_v39, %v9402_v29 }
  0x97   : > { %v738_v10 = vpop.permute.xlu1 %737  ;;  %7674 = vmatprep.mubr.msk.bf16.mxu1 %vm905_vm5, %v6885_v37  ;;  %v734_v24 = vpop.permute.xlu0 %733 }
  0x98   : > { %v9411_v61 = vsel %vm9392_vm8, 0, %v738_v10  ;;  %v9415_v19 = vsel %vm9392_vm8, 0, %v734_v24  ;;  %v1708_v10 = vsel %vm930_vm1, %v600_v15, 0 }
  0x99   : > { %v6950_v27 = vcombine.low %v9398_v16, %v9411_v61  ;;  %v9421_v40 = vcombine.low %v9415_v19, %v9398_v16  ;;  %v6949_v18 = vcombine.low %v9402_v29, %v9415_v19 }
  0x9b   : > { %v742_v62 = vpop.permute.xlu1 %741  ;;  %7675 = vmatmul.mubr.msk.bf16.vlgmr.msra.gmra.mrb[0].mxu1 %vm905_vm5, %v9421_v40  ;;  %7746 = vmatprep.mubr.msk.bf16.mxu0 %vm905_vm5, %v6949_v18  ;;  %v740_v24 = vpop.permute.xlu0 %739 }
  0x9c   : > { %v9436_v42 = vsel %vm9392_vm8, 0, %v742_v62  ;;  %v9440_v37 = vsel %vm9392_vm8, 0, %v740_v24  ;;  %7747 = vmatmul.mubr.msk.bf16.vlgmr.msra.gmra.mrb[0].mxu0 %vm905_vm5, %v6950_v27 }
  0x9d   : > { %11385 = vst [vmem:[#allocation16_spill] sm:$0xff] %v9440_v37  ;;  %v9447_v18 = vcombine.low %v9411_v61, %v9440_v37  ;;  %v6951_v11 = vcombine.low %v9440_v37, %v9436_v42  ;;  %7763 = vmatpush3.bf16.msra.mxu0 %v1708_v10 }
  0x9e   : > { %8686 = vmatprep.subr.msk.bf16.mxu0 %vm846_vm0, %v595_v60 }
  0x9f   : > { %v746_v62 = vpop.permute.xlu1 %745  ;;  %7678 = vmatprep.mubr.msk.bf16.mxu1 %vm905_vm5, %v9447_v18  ;;  %v744_v24 = vpop.permute.xlu0 %743  ;;  %7750 = vmatprep.mubr.msk.bf16.mxu0 %vm905_vm5, %v6951_v11 }
  0xa0   : > { %v9457_v27 = vsel %vm9392_vm8, 0, %v746_v62  ;;  %v9461_v15 = vsel %vm9392_vm8, 0, %v744_v24 }
  0xa1   : > { %11386 = vst [vmem:[#allocation17_spill] sm:$0xff] %v9461_v15  ;;  %v9467_v16 = vcombine.low %v9436_v42, %v9461_v15  ;;  %v6952_v29 = vcombine.low %v9461_v15, %v9457_v27 }
  0xa3   : > { %v750_v49 = vpop.permute.xlu1 %749  ;;  %7679 = vmatmul.mubr.msk.bf16.gmra.mrb[4].mxu1 %vm905_vm5, %v9467_v16  ;;  %v748_v62 = vpop.permute.xlu0 %747 }
  0xa4   : > { %v9477_v24 = vsel %vm9392_vm8, 0, %v750_v49  ;;  %v9481_v10 = vsel %vm9392_vm8, 0, %v748_v62  ;;  %7751 = vmatmul.mubr.msk.bf16.gmra.mrb[4].mxu0 %vm905_vm5, %v6952_v29 }
  0xa5   : > { %11387 = vst [vmem:[#allocation18_spill] sm:$0xff] %v9481_v10  ;;  %v9488_v11 = vcombine.low %v9457_v27, %v9481_v10  ;;  %v6953_v15 = vcombine.low %v9481_v10, %v9477_v24 }
  0xa7   : > { %v754_v37 = vpop.permute.xlu1 %753  ;;  %7682 = vmatprep.mubr.msk.bf16.mxu1 %vm905_vm5, %v9488_v11  ;;  %v752_v49 = vpop.permute.xlu0 %751  ;;  %7754 = vmatprep.mubr.msk.bf16.mxu0 %vm905_vm5, %v6953_v15 }
  0xa8   : > { %v9497_v29 = vsel %vm9392_vm8, 0, %v754_v37  ;;  %v9501_v62 = vsel %vm9392_vm8, 0, %v752_v49 }
  0xa9   : > { %11388 = vst [vmem:[#allocation19_spill] sm:$0xff] %v9501_v62  ;;  %v6890_v52 = vcombine.low %v9477_v24, %v9501_v62  ;;  %v6954_v47 = vcombine.low %v9501_v62, %v9497_v29 }
  0xab   : > { %v758_v32 = vpop.permute.xlu1 %757  ;;  %7683 = vmatmul.mubr.msk.bf16.gmra.mrb[8].mxu1 %vm905_vm5, %v6890_v52  ;;  %v756_v37 = vpop.permute.xlu0 %755 }
  0xac   : > { %v9514_v49 = vsel %vm9392_vm8, 0, %v758_v32  ;;  %v9518_v33 = vsel %vm9392_vm8, 0, %v756_v37  ;;  %7755 = vmatmul.mubr.msk.bf16.gmra.mrb[8].mxu0 %vm905_vm5, %v6954_v47 }
  0xad   : > { %v6891_v15 = vcombine.low %v9497_v29, %v9518_v33  ;;  %v6955_v62 = vcombine.low %v9518_v33, %v9514_v49 }
  0xaf   : > { %v762_v10 = vpop.permute.xlu1 %761  ;;  %7686 = vmatprep.mubr.msk.bf16.mxu1 %vm905_vm5, %v6891_v15  ;;  %v760_v32 = vpop.permute.xlu0 %759  ;;  %7758 = vmatprep.mubr.msk.bf16.mxu0 %vm905_vm5, %v6955_v62 }
  0xb0   : > { %v9531_v37 = vsel %vm9392_vm8, 0, %v762_v10  ;;  %v9535_v47 = vsel %vm9392_vm8, 0, %v760_v32  ;;  %v11389_v10 = vcombine.low %v9223_v53, %v9209_v22  ;;  %v1828_v32 = vsel %vm846_vm0, %v595_v60, 0 }
  0xb1   : > { %v6892_v4 = vcombine.low %v9514_v49, %v9535_v47  ;;  %v6956_v5 = vcombine.low %v9535_v47, %v9531_v37  ;;  %v7160_v62 = vcombine.low %v9518_v33, %v9535_v47  ;;  %v11392_v22 = vcombine.low %v9235_v56, %v9239_v43  ;;  %v601_v43 = vld [vmem:[%s11266_s3 + $0x4] sm:$0x3] }
  0xb2   : > { %v11393_v53 = vcombine.low %v9263_v57, %v9267_v59  ;;  %v1948_v56 = vsel %vm930_vm1, %v598_v14, 0  ;;  %v11396_v60 = vcombine.low %v9411_v61, %v9436_v42  ;;  %v7141_v57 = vcombine.low %v11378_v39, %v8924_v13 }
  0xb3   : > { %7687 = vmatmul.mubr.msk.bf16.gmra.mrb[12].mxu1 %vm905_vm5, %v6892_v4  ;;  %v11398_v59 = vcombine.low %v9497_v29, %v9514_v49  ;;  %v7357_v13 = vpack.c.bf16 %v9050_v30, %v8995_v48 }
  0xb4   : > { %7759 = vmatmul.mubr.msk.bf16.gmra.mrb[12].mxu0 %vm905_vm5, %v6956_v5  ;;  %v11391_v5 = vcombine.low %v9227_v58, %v9231_v55  ;;  %v864_v58 = vsel %vm9135_vm4, %v9153_v3, 0 }
  0xb5   : > { %7764 = vmatprep.mubr.msk.bf16.mxu0 %vm905_vm5, %v11389_v10  ;;  %v6972_v55 = vcombine.low %v9354_v23, %v864_v58  ;;  %v11408_v10 = vld [vmem:[#allocation14_spill] sm:$0xff] }
  0xbc   : > { %7765 = vmatmul.mubr.msk.bf16.vlgmr.msra.gmra.mrb[0].mxu0 %vm905_vm5, %v11390_v25  ;;  %v3839_v25 = vld [vmem:[%s11272_s9 + $0x8] sm:$0xf] }
  0xbd   : > { %7781 = vmatpush3.bf16.msra.mxu0 %v1828_v32  ;;  %7768 = vmatprep.mubr.msk.bf16.mxu0 %vm905_vm5, %v11391_v5  ;;  %v4213_v5 = vsel %vm846_vm0, %v3839_v25, 0 }
  0xbe   : > { %8687 = vmatprep.subr.msk.bf16.mxu0 %vm930_vm1, %v598_v14  ;;  %v6981_v14 = vcombine.low %v9093_v1, %v11378_v39  ;;  %v6990_v1 = vcombine.low %v9531_v37, %v11378_v39 }
  0xc4   : > { %7769 = vmatmul.mubr.msk.bf16.gmra.mrb[4].mxu0 %vm905_vm5, %v11392_v22  ;;  %v3842_v22 = vld [vmem:[%s11273_s10 + $0x4] sm:$0x3] }
  0xc5   : > { %7772 = vmatprep.mubr.msk.bf16.mxu0 %vm905_vm5, %v11393_v53  ;;  %v11410_v53 = vld [vmem:[#allocation16_spill] sm:$0xff] }
  0xcc   : > { %7773 = vmatmul.mubr.msk.bf16.gmra.mrb[8].mxu0 %vm905_vm5, %v11394_v35  ;;  %v11411_v35 = vld [vmem:[#allocation17_spill] sm:$0xff] }
  0xcd   : > { %7776 = vmatprep.mubr.msk.bf16.mxu0 %vm905_vm5, %v11395_v44  ;;  %v11412_v44 = vcombine.low %v11410_v53, %v11411_v35 }
  0xd4   : > { %7777 = vmatmul.mubr.msk.bf16.gmra.mrb[12].mxu0 %vm905_vm5, %v6972_v55  ;;  %v11414_v55 = vld [vmem:[#allocation19_spill] sm:$0xff] }
  0xd5   : > { %7782 = vmatprep.mubr.msk.bf16.mxu0 %vm1069_vm2, %v9073_v54  ;;  %v3840_v54 = vld [vmem:[%s11273_s10] sm:$0x3] }
  0xd6   : > { %v3861_v3 = vsel %vm930_vm1, %v3840_v54, 0 }
  0xdc   : > { %7783 = vmatmul.mubr.msk.bf16.vlgmr.msra.gmra.mrb[0].mxu0 %vm1069_vm2, %v9101_v2  ;;  %v2068_v2 = vsel %vm930_vm1, %v601_v43, 0 }
  0xdd   : > { %7799 = vmatpush3.bf16.msra.mxu0 %v1948_v56  ;;  %7786 = vmatprep.mubr.msk.bf16.mxu0 %vm1069_vm2, %v9165_v36  ;;  %v3837_v36 = vld [vmem:[%s11272_s9] sm:$0xf] }
  0xde   : > { %8688 = vmatprep.subr.msk.bf16.mxu0 %vm930_vm1, %v601_v43 }
  0xe4   : > { %7787 = vmatmul.mubr.msk.bf16.gmra.mrb[4].mxu0 %vm1069_vm2, %v9175_v21  ;;  %v3945_v21 = vsel %vm846_vm0, %v3837_v36, 0 }
  0xe5   : > { %7790 = vmatprep.mubr.msk.bf16.mxu0 %vm1069_vm2, %v9219_v50  ;;  %v3838_v50 = vld [vmem:[%s11272_s9 + $0x4] sm:$0xf] }
  0xec   : > { %7791 = vmatmul.mubr.msk.bf16.gmra.mrb[8].mxu0 %vm1069_vm2, %v9251_v34  ;;  %v11397_v34 = vcombine.low %v9457_v27, %v9477_v24 }
  0xed   : > { %7794 = vmatprep.mubr.msk.bf16.mxu0 %vm1069_vm2, %v9289_v26  ;;  %v4029_v26 = vsel %vm846_vm0, %v3838_v50, 0 }
  0xf4   : > { %7795 = vmatmul.mubr.msk.bf16.gmra.mrb[12].mxu0 %vm1069_vm2, %v6981_v14 }
  0xf5   : > { %7800 = vmatprep.mubr.msk.bf16.mxu0 %vm905_vm5, %v9421_v40  ;;  %v11405_v40 = vld [vmem:[#allocation9_spill] sm:$0xff] }
  0xfc   : > { %7801 = vmatmul.mubr.msk.bf16.vlgmr.msra.gmra.mrb[0].mxu0 %vm905_vm5, %v9447_v18  ;;  %v11406_v18 = vld [vmem:[#allocation11_spill] sm:$0xff] }
  0xfd   : > { %7817 = vmatpush3.bf16.msra.mxu0 %v2068_v2  ;;  %7804 = vmatprep.mubr.msk.bf16.mxu0 %vm905_vm5, %v9467_v16  ;;  %v11400_v16 = vld [vmem:[#allocation2_spill] sm:$0xff] }
  0xfe   : > { %8698 = vmatprep.subr.msk.bf16.mxu0 %vm930_vm1, %v3840_v54 }
 0x104   : > { %7805 = vmatmul.mubr.msk.bf16.gmra.mrb[4].mxu0 %vm905_vm5, %v9488_v11  ;;  %v7361_v11 = vpack.c.bf16 %v11406_v18, %v11405_v40 }
 0x105   : > { %7808 = vmatprep.mubr.msk.bf16.mxu0 %vm905_vm5, %v6890_v52  ;;  %v7133_v52 = vcombine.low %v11378_v39, %v9415_v19 }
 0x10c   : > { %7809 = vmatmul.mubr.msk.bf16.gmra.mrb[8].mxu0 %vm905_vm5, %v6891_v15  ;;  %v11407_v15 = vld [vmem:[#allocation15_spill] sm:$0xff] }
 0x10d   : > { %7812 = vmatprep.mubr.msk.bf16.mxu0 %vm905_vm5, %v6892_v4  ;;  %v6999_v4 = vcombine.low %v864_v58, %v11378_v39  ;;  %v11409_v32 = vcombine.low %v11407_v15, %v11408_v10  ;;  %v11413_v58 = vld [vmem:[#allocation18_spill] sm:$0xff] }
 0x10e   : > { %v11415_v56 = vcombine.low %v11413_v58, %v11414_v55 }
 0x114   : > { %7813 = vmatmul.mubr.msk.bf16.gmra.mrb[12].mxu0 %vm905_vm5, %v6990_v1  ;;  %v11416_v1 = vld [vmem:[#allocation4_spill] sm:$0xff] }
 0x115   : > { %7818 = vmatprep.mubr.msk.bf16.mxu0 %vm905_vm5, %v9308_v38  ;;  %v7358_v38 = vpack.c.bf16 %v11400_v16, %v11399_v7 }
 0x11c   : > { %7819 = vmatmul.mubr.msk.bf16.vlgmr.msra.gmra.mrb[0].mxu0 %vm905_vm5, %v9312_v51  ;;  %v11401_v51 = vld [vmem:[#allocation5_spill] sm:$0xff] }
 0x11d   : > { %7822 = vmatprep.mubr.msk.bf16.mxu0 %vm905_vm5, %v9326_v41  ;;  %7997 = vmatpush3.bf16.msra.mxu0 %v3861_v3  ;;  %v11402_v41 = vld [vmem:[#allocation6_spill] sm:$0xff]  ;;  %v7362_v3 = vpack.c.bf16 %v8901_v6, %v11416_v1 }
 0x11e   : > { %8699 = vmatprep.subr.msk.bf16.mxu0 %vm846_vm0, %v3837_v36 }
 0x124   : > { %7823 = vmatmul.mubr.msk.bf16.gmra.mrb[4].mxu0 %vm905_vm5, %v9330_v20  ;;  %v7359_v20 = vpack.c.bf16 %v11402_v41, %v11401_v51 }
 0x125   : > { %7826 = vmatprep.mubr.msk.bf16.mxu0 %vm905_vm5, %v9340_v0  ;;  %v11403_v0 = vld [vmem:[#allocation7_spill] sm:$0xff] }
 0x12c   : > { %7827 = vmatmul.mubr.msk.bf16.gmra.mrb[8].mxu0 %vm905_vm5, %v9346_v9  ;;  %v11404_v9 = vld [vmem:[#allocation8_spill] sm:$0xff] }
 0x12d   : > { %7830 = vmatprep.mubr.msk.bf16.mxu0 %vm905_vm5, %v9358_v17  ;;  %v7360_v23 = vpack.c.bf16 %v11404_v9, %v11403_v0  ;;  %v4121_v17 = vsel %vm930_vm1, %v3841_v45, 0 }
 0x134   : > { %7831 = vmatmul.mubr.msk.bf16.gmra.mrb[12].mxu0 %vm905_vm5, %v6999_v4 }
 0x135   : > { %7998 = vmatprep.mubr.msk.bf16.mxu0 %vm905_vm5, %v7133_v52 }
 0x13c   : > { %7999 = vmatmul.mubr.msk.bf16.vlgmr.msra.gmra.mrb[16].mxu0 %vm905_vm5, %v11396_v60  ;;  %v7364_v60 = vpack.c.bf16 %v8995_v48, %v8989_v46  ;;  %v11418_v46 = vcombine.low %v9415_v19, %v9411_v61  ;;  %v11421_v61 = vcombine.low %v9514_v49, %v9531_v37  ;;  %v2224_v19 = vld [vmem:[%s11269_s6] sm:$0x3] }
 0x13d   : > { %8002 = vmatprep.mubr.msk.bf16.mxu0 %vm905_vm5, %v11397_v34  ;;  %8007 = vmatpush3.bf16.msra.mxu0 %v3945_v21  ;;  %v7363_v21 = vpack.c.bf16 %v8958_v31, %v8920_v12  ;;  %v4305_v34 = vsel %vm930_vm1, %v3842_v22, 0 }
 0x13e   : > { %8700 = vmatprep.subr.msk.bf16.mxu0 %vm846_vm0, %v3838_v50  ;;  %8689 = vmatprep.subr.msk.bf16.mxu1 %vm930_vm1, %v2224_v19 }
 0x144   : > { %8003 = vmatmul.mubr.msk.bf16.gmra.mrb[20].mxu0 %vm905_vm5, %v11398_v59 }
 0x145   : > { %8008 = vmatprep.mubr.msk.bf16.mxu0 %vm1069_vm2, %v7141_v57 }
 0x14c   : > { %8009 = vmatmul.mubr.msk.bf16.vlgmr.msra.gmra.mrb[16].mxu0 %vm1069_vm2, %v7355_v28 }
 0x14d   : > { %8012 = vmatprep.mubr.msk.bf16.mxu0 %vm1069_vm2, %v7356_v8  ;;  %8017 = vmatpush3.bf16.msra.mxu0 %v4029_v26  ;;  %v11420_v8 = vcombine.low %v9477_v24, %v9497_v29 }
 0x14e   : > { %8701 = vmatprep.subr.msk.bf16.mxu0 %vm930_vm1, %v3841_v45 }
 0x154   : > { %8013 = vmatmul.mubr.msk.bf16.gmra.mrb[20].mxu0 %vm1069_vm2, %v7357_v13 }
 0x155   : > { %8018 = vmatprep.mubr.msk.bf16.mxu0 %vm1069_vm2, %v7358_v38 }
 0x15c   : > { %8019 = vmatmul.mubr.msk.bf16.vlgmr.msra.gmra.mrb[16].mxu0 %vm1069_vm2, %v7359_v20 }
 0x15d   : > { %8022 = vmatprep.mubr.msk.bf16.mxu0 %vm1069_vm2, %v7360_v23  ;;  %8027 = vmatpush3.bf16.msra.mxu0 %v4121_v17 }
 0x15e   : > { %8702 = vmatprep.subr.msk.bf16.mxu0 %vm846_vm0, %v3839_v25 }
 0x164   : > { %8023 = vmatmul.mubr.msk.bf16.gmra.mrb[20].mxu0 %vm1069_vm2, %v7361_v11 }
 0x165   : > { %8028 = vmatprep.mubr.msk.bf16.mxu0 %vm905_vm5, %v11409_v32 }
 0x16c   : > { %8029 = vmatmul.mubr.msk.bf16.vlgmr.msra.gmra.mrb[16].mxu0 %vm905_vm5, %v11412_v44 }
 0x16d   : > { %8032 = vmatprep.mubr.msk.bf16.mxu0 %vm905_vm5, %v11415_v56  ;;  %8037 = vmatpush3.bf16.msra.mxu0 %v4213_v5 }
 0x16e   : > { %v7676_v43 = vpop.f32.mrb[0].mxu1  ;;  %8703 = vmatprep.subr.msk.bf16.mxu0 %vm930_vm1, %v3842_v22 }
 0x16f   : > { %v968_v14 = vpop.f32.mrb[1].mxu1 }
 0x170   : > { %v7677_v2 = vpop.f32.mrb[2].mxu1 }
 0x171   : > { %v971_v54 = vpop.f32.mrb[3].mxu1 }
 0x174   : > { %8033 = vmatmul.mubr.msk.bf16.gmra.mrb[20].mxu0 %vm905_vm5, %v7160_v62  ;;  %v11417_v62 = vld [vmem:[#allocation10_spill] sm:$0xff] }
 0x175   : > { %8038 = vmatprep.mubr.msk.bf16.mxu0 %vm1069_vm2, %v7362_v3  ;;  %v7365_v12 = vpack.c.bf16 %v11417_v62, %v9050_v30  ;;  %v11419_v30 = vcombine.low %v9436_v42, %v9457_v27  ;;  %v2550_v42 = vsel %vm930_vm1, %v2224_v19, 0  ;;  %v9775_v27 = vld [vmem:[%s11267_s4] ss:$0 sm:$0xff] }
 0x176   : > { %v7680_v36 = vpop.f32.mrb[4].mxu1  ;;  %7835 = vmatpush3.bf16.msra.mxu1 %v2550_v42 }
 0x177   : > { %v984_v4 = vpop.f32.mrb[5].mxu1 }
 0x178   : > { %v7681_v52 = vpop.f32.mrb[6].mxu1 }
 0x179   : > { %v987_v50 = vpop.f32.mrb[7].mxu1 }
 0x17c   : > { %8039 = vmatmul.mubr.msk.bf16.vlgmr.msra.gmra.mrb[16].mxu0 %vm1069_vm2, %v7363_v21 }
 0x17d   : > { %8042 = vmatprep.mubr.msk.bf16.mxu0 %vm1069_vm2, %v7364_v60  ;;  %8047 = vmatpush3.bf16.msra.mxu0 %v4305_v34 }
 0x17e   : > { %v9732_v6 = vpop.f32.mrb[8].mxu1 }
 0x17f   : > { %v9734_v33 = vpop.f32.mrb[9].mxu1 }
 0x180   : > { %v9736_v47 = vpop.f32.mrb[10].mxu1 }
 0x181   : > { %v9740_v31 = vpop.f32.mrb[11].mxu1 }
 0x184   : > { %8043 = vmatmul.mubr.msk.bf16.gmra.mrb[20].mxu0 %vm1069_vm2, %v7365_v12 }
 0x185   : > { %8048 = vmatprep.mubr.msk.bf16.mxu0 %vm905_vm5, %v11418_v46 }
 0x186   : > { %v9747_v48 = vpop.f32.mrb[12].mxu1 }
 0x187   : > { %v9749_v57 = vpop.f32.mrb[13].mxu1 }
 0x188   : > { %v9751_v59 = vpop.f32.mrb[14].mxu1 }
 0x189   : > { %v9753_v28 = vpop.f32.mrb[15].mxu1 }
 0x18c   : > { %8049 = vmatmul.mubr.msk.bf16.vlgmr.msra.gmra.mrb[16].mxu0 %vm905_vm5, %v11419_v30 }
 0x18d   : > { %8052 = vmatprep.mubr.msk.bf16.mxu0 %vm905_vm5, %v11420_v8 }
 0x194   : > { %8053 = vmatmul.mubr.msk.bf16.gmra.mrb[20].mxu0 %vm905_vm5, %v11421_v61 }
 0x1ef   : > { %v7820_v24 = vpop.f32.mrb[0].mxu0 }
 0x1f0   : > { %v8256_v29 = vadd.f32 %v7820_v24, %v7676_v43  ;;  %v2104_v26 = vpop.f32.mrb[1].mxu0 }
 0x1f1   : > { %v8257_v49 = vadd.f32 %v2104_v26, %v968_v14  ;;  %v7821_v37 = vpop.f32.mrb[2].mxu0 }
 0x1f2   : > { %v2191_v45 = vadd.f32 %v8256_v29, %v9775_v27  ;;  %v8258_v13 = vadd.f32 %v7821_v37, %v7677_v2  ;;  %v2107_v7 = vpop.f32.mrb[3].mxu0 }
 0x1f3   : > { %v2189_v16 = vadd.f32 %v8257_v49, %v9775_v27  ;;  %v8259_v38 = vadd.f32 %v2107_v7, %v971_v54 }
 0x1f4   : > { %v9779_v51 = vmax.f32 %v2191_v45, 0.0  ;;  %v2192_v41 = vadd.f32 %v8258_v13, %v9775_v27 }
 0x1f5   : > { %v9782_v20 = vmax.f32 %v2189_v16, 0.0  ;;  %v2190_v0 = vadd.f32 %v8259_v38, %v9775_v27 }
 0x1f6   : > { %v2233_v9 = vpack.c.bf16 %v9779_v51, %v9779_v51  ;;  %v9787_v23 = vmax.f32 %v2192_v41, 0.0 }
 0x1f7   : > { %v9791_v17 = vpack.c.bf16 %v9782_v20, %v9782_v20  ;;  %v9793_v25 = vmax.f32 %v2190_v0, 0.0  ;;  %v7824_v40 = vpop.f32.mrb[4].mxu0 }
 0x1f8   : > { %v9797_v18 = vpack.c.bf16 %v9787_v23, %v9787_v23  ;;  %v8260_v15 = vadd.f32 %v7824_v40, %v7680_v36  ;;  %v2120_v10 = vpop.f32.mrb[5].mxu0  ;;  %v2262_v32 = vshrl.u32 %v2233_v9, 16  ;;  %v9814_v36 = vld [vmem:[%s11268_s5] sm:$0xf]  ;;  %v2265_v29 = vshll.u32 %v2233_v9, 16 }
 0x1f9   : > { %v2232_v5 = vpack.c.bf16 %v9793_v25, %v9793_v25  ;;  %v9805_v22 = vpack.c.bf16 %v9779_v51, %v9793_v25  ;;  %v8261_v53 = vadd.f32 %v2120_v10, %v984_v4  ;;  %v7825_v35 = vpop.f32.mrb[6].mxu0  ;;  %v2248_v44 = vshrl.u32 %v9791_v17, 16  ;;  %8690 = vmatprep.subr.msk.bf16.mxu1 %vm846_vm0, %v9814_v36 }
 0x1fa   : > { %v2195_v58 = vadd.f32 %v8260_v15, %v9775_v27  ;;  %v8262_v55 = vadd.f32 %v7825_v35, %v7681_v52  ;;  %v2123_v56 = vpop.f32.mrb[7].mxu0  ;;  %v2251_v43 = vshll.u32 %v9791_v17, 16  ;;  %v2264_v14 = vrot.slane %v2262_v32, 7 }
 0x1fb   : > { %v2193_v2 = vadd.f32 %v8261_v53, %v9775_v27  ;;  %v8263_v54 = vadd.f32 %v2123_v56, %v987_v50  ;;  %v2250_v1 = vrot.slane %v2248_v44, 7  ;;  %v2255_v3 = vshrl.u32 %v2232_v5, 16 }
 0x1fc   : > { %v9816_v4 = vmax.f32 %v2195_v58, 0.0  ;;  %v2196_v21 = vadd.f32 %v8262_v55, %v9775_v27  ;;  %v2423_v60 = vrot.slane %v2251_v43, 1  ;;  %v2258_v52 = vshll.u32 %v2232_v5, 16 }
 0x1fd   : > { %v9821_v34 = vmax.f32 %v2193_v2, 0.0  ;;  %v2194_v50 = vadd.f32 %v8263_v54, %v9775_v27  ;;  %v2253_v62 = vor.u32 %v2251_v43, %v2250_v1  ;;  %v2257_v12 = vrot.slane %v2255_v3, 7 }
 0x1fe   : > { %v9826_v46 = vpack.c.bf16 %v9816_v4, %v9816_v4  ;;  %v9828_v30 = vor.u32 %v2423_v60, %v2248_v44  ;;  %v2425_v8 = vrot.slane %v2258_v52, 1  ;;  %v9830_v61 = vmax.f32 %v2196_v21, 0.0 }
 0x1ff   : > { %v9832_v19 = vmax.f32 %v2194_v50, 0.0  ;;  %2359 = vrot.lane.b32.xlu0 %v2253_v62, %s8761_s29  ;;  %v7828_v42 = vpop.f32.mrb[8].mxu0  ;;  %v2260_v24 = vor.u32 %v2258_v52, %v2257_v12  ;;  %v2235_v26 = vpack.c.bf16 %v9821_v34, %v9821_v34  ;;  %v2269_v13 = vshrl.u32 %v9797_v18, 16 }
 0x200   : > { %v8264_v49 = vadd.f32 %v7828_v42, %v9732_v6  ;;  %v2136_v37 = vpop.f32.mrb[9].mxu0  ;;  %v2426_v45 = vor.u32 %v2425_v8, %v2255_v3  ;;  %v2267_v41 = vor.u32 %v2265_v29, %v2264_v14  ;;  %v2427_v0 = vrot.slane %v2265_v29, 1 }
 0x201   : > { %v9841_v7 = vpack.c.bf16 %v9832_v19, %v9832_v19  ;;  %v8265_v16 = vadd.f32 %v2136_v37, %v9734_v33  ;;  %2361 = vrot.lane.b32.xlu1 %v2260_v24, %s8761_s29  ;;  %v7829_v38 = vpop.f32.mrb[10].mxu0  ;;  %v2271_v10 = vrot.slane %v2269_v13, 7  ;;  %v2272_v35 = vshll.u32 %v9797_v18, 16 }
 0x202   : > { %v2199_v9 = vadd.f32 %v8264_v49, %v9775_v27  ;;  %v9848_v6 = vsel %vm9135_vm4, %v2426_v45, 0  ;;  %v8266_v40 = vadd.f32 %v7829_v38, %v9736_v47  ;;  %v2139_v15 = vpop.f32.mrb[11].mxu0  ;;  %v2428_v33 = vor.u32 %v2427_v0, %v2262_v32 }
 0x203   : > { %v2197_v5 = vadd.f32 %v8265_v16, %v9775_v27  ;;  %v8267_v53 = vadd.f32 %v2139_v15, %v9740_v31  ;;  %2363 = vrot.lane.b32.xlu0 %v2267_v41, %s8761_s29  ;;  %v2276_v55 = vshrl.u32 %v2235_v26, 16  ;;  %v2279_v56 = vshll.u32 %v2235_v26, 16 }
 0x204   : > { %v9855_v44 = vmax.f32 %v2199_v9, 0.0  ;;  %v2200_v58 = vadd.f32 %v8266_v40, %v9775_v27  ;;  %v9863_v14 = vsel %vm9135_vm4, %v2428_v33, 0  ;;  %v2274_v31 = vor.u32 %v2272_v35, %v2271_v10 }
 0x205   : > { %v9858_v43 = vmax.f32 %v2197_v5, 0.0  ;;  %v2198_v47 = vadd.f32 %v8267_v53, %v9775_v27  ;;  %v9867_v32 = vpack.c.bf16 %v9830_v61, %v9830_v61  ;;  %v9875_v2 = vcombine.low %v9848_v6, %v9863_v14 }
 0x206   : > { %v9871_v18 = vpack.c.bf16 %v9855_v44, %v9855_v44  ;;  %v2429_v54 = vrot.slane %v2272_v35, 1  ;;  %v9877_v1 = vmax.f32 %v2200_v58, 0.0  ;;  %2365 = vrot.lane.b32.xlu1 %v2274_v31, %s8761_s29  ;;  %v2278_v21 = vrot.slane %v2276_v55, 7 }
 0x207   : > { %v9879_v3 = vmax.f32 %v2198_v47, 0.0  ;;  %v2431_v60 = vrot.slane %v2279_v56, 1  ;;  %v7832_v52 = vpop.f32.mrb[12].mxu0  ;;  %v2239_v50 = vpack.c.bf16 %v9858_v43, %v9858_v43  ;;  %v2283_v42 = vshrl.u32 %v9841_v7, 16 }
 0x208   : > { %v9884_v62 = vor.u32 %v2429_v54, %v2269_v13  ;;  %v8268_v12 = vadd.f32 %v7832_v52, %v9747_v48  ;;  %v2152_v8 = vpop.f32.mrb[13].mxu0  ;;  %v2281_v29 = vor.u32 %v2279_v56, %v2278_v21  ;;  %v2286_v13 = vshll.u32 %v9841_v7, 16 }
 0x209   : > { %v2240_v24 = vpack.c.bf16 %v9879_v3, %v9879_v3  ;;  %v9890_v26 = vor.u32 %v2431_v60, %v2276_v55  ;;  %v8269_v49 = vadd.f32 %v2152_v8, %v9749_v57  ;;  %v7833_v37 = vpop.f32.mrb[14].mxu0  ;;  %v2285_v16 = vrot.slane %v2283_v42, 7 }
 0x20a   : > { %v2203_v45 = vadd.f32 %v8268_v12, %v9775_v27  ;;  %v8270_v38 = vadd.f32 %v7833_v37, %v9751_v59  ;;  %v2155_v48 = vpop.f32.mrb[15].mxu0  ;;  %2367 = vrot.lane.b32.xlu0 %v2281_v29, %s8761_s29  ;;  %v2290_v9 = vshrl.u32 %v9826_v46, 16  ;;  %v2293_v40 = vshll.u32 %v9826_v46, 16 }
 0x20b   : > { %v2201_v41 = vadd.f32 %v8269_v49, %v9775_v27  ;;  %v8271_v0 = vadd.f32 %v2155_v48, %v9753_v28  ;;  %v2288_v15 = vor.u32 %v2286_v13, %v2285_v16  ;;  %v2433_v10 = vrot.slane %v2286_v13, 1 }
 0x20c   : > { %v9901_v57 = vmax.f32 %v2203_v45, 0.0  ;;  %v2204_v5 = vadd.f32 %v8270_v38, %v9775_v27  ;;  %v2292_v53 = vrot.slane %v2290_v9, 7  ;;  %v2435_v33 = vrot.slane %v2293_v40, 1 }
 0x20d   : > { %v9904_v7 = vmax.f32 %v2201_v41, 0.0  ;;  %v2202_v59 = vadd.f32 %v8271_v0, %v9775_v27  ;;  %v2242_v35 = vpack.c.bf16 %v9877_v1, %v9877_v1  ;;  %v9909_v28 = vor.u32 %v2433_v10, %v2283_v42  ;;  %2369 = vrot.lane.b32.xlu1 %v2288_v15, %s8761_s29 }
 0x20e   : > { %v9912_v46 = vmax.f32 %v2204_v5, 0.0  ;;  %v2297_v58 = vshrl.u32 %v9867_v32, 16  ;;  %v9917_v55 = vpack.c.bf16 %v9901_v57, %v9901_v57  ;;  %v2295_v27 = vor.u32 %v2293_v40, %v2292_v53 }
 0x20f   : > { %v9919_v56 = vmax.f32 %v2202_v59, 0.0  ;;  %v9921_v47 = vor.u32 %v2435_v33, %v2290_v9  ;;  %v2243_v31 = vpack.c.bf16 %v9904_v7, %v9904_v7  ;;  %v2300_v60 = vshll.u32 %v9867_v32, 16 }
 0x210   : > { %v2299_v21 = vrot.slane %v2297_v58, 7  ;;  %2371 = vrot.lane.b32.xlu0 %v2295_v27, %s8761_s29  ;;  %v2304_v12 = vshrl.u32 %v2239_v50, 16  ;;  %v2307_v8 = vshll.u32 %v2239_v50, 16  ;;  %v2311_v42 = vshrl.u32 %v2240_v24, 16 }
 0x211   : > { %v2244_v52 = vpack.c.bf16 %v9919_v56, %v9919_v56  ;;  %v2437_v49 = vrot.slane %v2300_v60, 1  ;;  %v2314_v37 = vshll.u32 %v2240_v24, 16  ;;  %v2318_v45 = vshrl.u32 %v9871_v18, 16 }
 0x212   : > { %v2302_v29 = vor.u32 %v2300_v60, %v2299_v21  ;;  %v2306_v16 = vrot.slane %v2304_v12, 7  ;;  %v2439_v13 = vrot.slane %v2307_v8, 1  ;;  %v2313_v38 = vrot.slane %v2311_v42, 7 }
 0x213   : > { %v2321_v48 = vshll.u32 %v9871_v18, 16  ;;  %v2438_v41 = vor.u32 %v2437_v49, %v2297_v58  ;;  %v2441_v32 = vrot.slane %v2314_v37, 1  ;;  %v2320_v0 = vrot.slane %v2318_v45, 7 }
 0x214   : > { %2373 = vrot.lane.b32.xlu1 %v2302_v29, %s8761_s29  ;;  %v2325_v9 = vshrl.u32 %v2242_v35, 16  ;;  %v2309_v40 = vor.u32 %v2307_v8, %v2306_v16  ;;  %v2440_v15 = vor.u32 %v2439_v13, %v2304_v12  ;;  %v2316_v50 = vor.u32 %v2314_v37, %v2313_v38 }
 0x215   : > { %v2443_v10 = vrot.slane %v2321_v48, 1  ;;  %v9936_v24 = vpack.c.bf16 %v9912_v46, %v9912_v46  ;;  %v2442_v5 = vor.u32 %v2441_v32, %v2311_v42  ;;  %v2328_v53 = vshll.u32 %v2242_v35, 16 }
 0x216   : > { %v2327_v59 = vrot.slane %v2325_v9, 7  ;;  %2375 = vrot.lane.b32.xlu0 %v2309_v40, %s8761_s29  ;;  %v2332_v33 = vshrl.u32 %v2243_v31, 16  ;;  %v2335_v58 = vshll.u32 %v2243_v31, 16  ;;  %v2339_v27 = vshrl.u32 %v2244_v52, 16 }
 0x217   : > { %11422 = vst [vmem:[#allocation3_spill] sm:$0xff] %v9936_v24  ;;  %v2444_v18 = vor.u32 %v2443_v10, %v2318_v45  ;;  %v2323_v21 = vor.u32 %v2321_v48, %v2320_v0  ;;  %v2445_v60 = vrot.slane %v2328_v53, 1  ;;  %v2342_v12 = vshll.u32 %v2244_v52, 16 }
 0x218   : > { %2377 = vrot.lane.b32.xlu1 %v2316_v50, %s8761_s29  ;;  %v2346_v8 = vshrl.u32 %v9917_v55, 16  ;;  %v2334_v29 = vrot.slane %v2332_v33, 7  ;;  %v2447_v49 = vrot.slane %v2335_v58, 1  ;;  %v2341_v37 = vrot.slane %v2339_v27, 7 }
 0x219   : > { %v2349_v42 = vshll.u32 %v9917_v55, 16  ;;  %v2330_v16 = vor.u32 %v2328_v53, %v2327_v59  ;;  %v2446_v35 = vor.u32 %v2445_v60, %v2325_v9  ;;  %v2449_v13 = vrot.slane %v2342_v12, 1 }
 0x21a   : > { %v2353_v45 = vshrl.u32 %v9936_v24, 16  ;;  %2379 = vrot.lane.b32.xlu0 %v2323_v21, %s8761_s29  ;;  %v2337_v31 = vor.u32 %v2335_v58, %v2334_v29  ;;  %v2448_v38 = vor.u32 %v2447_v49, %v2332_v33  ;;  %v2348_v32 = vrot.slane %v2346_v8, 7 }
 0x21b   : > { %v2451_v48 = vrot.slane %v2349_v42, 1  ;;  %v2344_v52 = vor.u32 %v2342_v12, %v2341_v37  ;;  %v2450_v0 = vor.u32 %v2449_v13, %v2339_v27  ;;  %v2356_v50 = vshll.u32 %v9936_v24, 16 }
 0x21c   : > { %2381 = vrot.lane.b32.xlu1 %v2330_v16, %s8761_s29  ;;  %v2355_v40 = vrot.slane %v2353_v45, 7  ;;  %v9948_v55 = vpack.c.bf16 %v9821_v34, %v9787_v23  ;;  %v9952_v59 = vpack.c.bf16 %v9816_v4, %v9832_v19  ;;  %v9956_v53 = vpack.c.bf16 %v9858_v43, %v9830_v61 }
 0x21d   : > { %v2452_v10 = vor.u32 %v2451_v48, %v2346_v8  ;;  %v2453_v9 = vrot.slane %v2356_v50, 1  ;;  %v2351_v33 = vor.u32 %v2349_v42, %v2348_v32  ;;  %v9961_v58 = vpack.c.bf16 %v9855_v44, %v9879_v3 }
 0x21e   : > { %2383 = vrot.lane.b32.xlu0 %v2337_v31, %s8761_s29  ;;  %v9965_v27 = vpack.c.bf16 %v9904_v7, %v9877_v1  ;;  %v9969_v21 = vpack.c.bf16 %v9901_v57, %v9919_v56  ;;  %v2358_v60 = vor.u32 %v2356_v50, %v2355_v40  ;;  %v9975_v8 = vsel %vm9135_vm4, %v9884_v62, 0 }
 0x21f   : > { %v2454_v12 = vor.u32 %v2453_v9, %v2353_v45  ;;  %v9980_v29 = vsel %vm9135_vm4, %v9890_v26, 0  ;;  %v9985_v49 = vsel %vm9135_vm4, %v9828_v30, 0  ;;  %v9996_v62 = vsel %vm9135_vm4, %v9909_v28, 0 }
 0x220   : > { %2385 = vrot.lane.b32.xlu1 %v2344_v52, %s8761_s29  ;;  %v9989_v37 = vcombine.low %v9975_v8, %v9980_v29  ;;  %v10001_v26 = vsel %vm9135_vm4, %v9921_v47, 0  ;;  %v10005_v30 = vsel %vm9135_vm4, %v2438_v41, 0  ;;  %v10009_v16 = vsel %vm9135_vm4, %v2440_v15, 0 }
 0x221   : > { %v10013_v13 = vsel %vm9135_vm4, %v2442_v5, 0  ;;  %v10018_v28 = vcombine.low %v9996_v62, %v10001_v26  ;;  %v10022_v47 = vcombine.low %v10005_v30, %v10009_v16  ;;  %v10026_v41 = vsel %vm9135_vm4, %v2444_v18, 0 }
 0x222   : > { %11423 = vst [vmem:[#allocation2_spill] sm:$0xff] %v10013_v13  ;;  %2387 = vrot.lane.b32.xlu0 %v2351_v33, %s8761_s29  ;;  %11424 = vst [vmem:[#allocation5_spill] sm:$0xff] %v10026_v41  ;;  %v10030_v15 = vsel %vm9135_vm4, %v2446_v35, 0  ;;  %v10035_v5 = vcombine.low %v10013_v13, %v10026_v41  ;;  %v10039_v45 = vsel %vm9135_vm4, %v2448_v38, 0  ;;  %v10043_v31 = vsel %vm9135_vm4, %v2450_v0, 0 }
 0x223   : > { %11425 = vst [vmem:[#allocation6_spill] sm:$0xff] %v10030_v15  ;;  %11426 = vst [vmem:[#allocation7_spill] sm:$0xff] %v10039_v45  ;;  %v10047_v18 = vsel %vm9135_vm4, %v2452_v10, 0  ;;  %v10051_v35 = vcombine.low %v10030_v15, %v10039_v45  ;;  %v10083_v50 = vsel %vm9135_vm4, %v2454_v12, 0 }
 0x224   : > { %2389 = vrot.lane.b32.xlu1 %v2358_v60, %s8761_s29  ;;  %11427 = vst [vmem:[#allocation8_spill] sm:$0xff] %v10043_v31  ;;  %11428 = vst [vmem:[#allocation9_spill] sm:$0xff] %v10047_v18  ;;  %v10055_v32 = vcombine.low %v10043_v31, %v10047_v18 }
 0x225   : > { %11429 = vst [vmem:[#allocation11_spill] sm:$0xff] %v10083_v50 }
 0x25f   : > { %v10087_v9 = vpop.f32.mrb[16].mxu0 }
 0x260   : > { %11430 = vst [vmem:[#allocation15_spill] sm:$0xff] %v10087_v9  ;;  %v10089_v40 = vpop.f32.mrb[17].mxu0 }
 0x261   : > { %11431 = vst [vmem:[#allocation14_spill] sm:$0xff] %v10089_v40  ;;  %v10091_v33 = vpop.f32.mrb[18].mxu0 }
 0x262   : > { %11432 = vst [vmem:[#allocation16_spill] sm:$0xff] %v10091_v33  ;;  %v10093_v60 = vpop.f32.mrb[19].mxu0 }
 0x263   : > { %11433 = vst [vmem:[#allocation17_spill] sm:$0xff] %v10093_v60 }
 0x267   : > { %v10095_v0 = vpop.f32.mrb[20].mxu0 }
 0x268   : > { %11434 = vst [vmem:[#allocation18_spill] sm:$0xff] %v10095_v0  ;;  %v10097_v42 = vpop.f32.mrb[21].mxu0 }
 0x269   : > { %11435 = vst [vmem:[#allocation19_spill] sm:$0xff] %v10097_v42  ;;  %v10099_v54 = vpop.f32.mrb[22].mxu0 }
 0x26a   : > { %11436 = vst [vmem:[#allocation4_spill] sm:$0xff] %v10099_v54  ;;  %v10101_v52 = vpop.f32.mrb[23].mxu0 }
 0x26b   : > { %11437 = vst [vmem:[#allocation10_spill] sm:$0xff] %v10101_v52  ;;  %v2712_v52 = vsel %vm846_vm0, %v9814_v36, 0 }
 0x271   : > { %v2360_v12 = vpop.permute.xlu0 %2359 }
 0x272   : > { %v10105_v10 = vsel %vm9392_vm8, 0, %v2360_v12 }
 0x273   : > { %v7009_v11 = vcombine.low %v11378_v39, %v10105_v10  ;;  %v2362_v38 = vpop.permute.xlu1 %2361 }
 0x274   : > { %v10111_v63 = vsel %vm9392_vm8, 0, %v2362_v38  ;;  %v2227_v38 = vld [vmem:[%s11270_s7] sm:$0x3] }
 0x275   : > { %v2364_v33 = vpop.permute.xlu0 %2363  ;;  %7836 = vmatprep.mubr.msk.bf16.mxu1 %vm905_vm5, %v7009_v11 }
 0x276   : > { %v10118_v54 = vsel %vm9392_vm8, 0, %v2364_v33 }
 0x277   : > { %v10122_v12 = vcombine.low %v10111_v63, %v10118_v54 }
 0x278   : > { %v2366_v9 = vpop.permute.xlu1 %2365 }
 0x279   : > { %11439 = vst [vmem:[#allocation13_spill] sm:$0xff] %v10122_v12  ;;  %7837 = vmatmul.mubr.msk.bf16.vlgmr.msra.gmra.mrb[16].mxu1 %vm905_vm5, %v10122_v12  ;;  %v10133_v11 = vsel %vm9392_vm8, 0, %v2366_v9 }
 0x27a   : > { %7853 = vmatpush3.bf16.msra.mxu1 %v2712_v52 }
 0x27b   : > { %8691 = vmatprep.subr.msk.bf16.mxu1 %vm930_vm1, %v2227_v38 }
 0x27c   : > { %v2368_v0 = vpop.permute.xlu0 %2367 }
 0x27d   : > { %v10140_v36 = vsel %vm9392_vm8, 0, %v2368_v0 }
 0x27e   : > { %v10144_v42 = vcombine.low %v10133_v11, %v10140_v36 }
 0x27f   : > { %v2370_v60 = vpop.permute.xlu1 %2369 }
 0x280   : > { %11440 = vst [vmem:[#allocation20_spill] sm:$0xff] %v10144_v42  ;;  %v10148_v9 = vsel %vm9392_vm8, 0, %v2370_v60  ;;  %7840 = vmatprep.mubr.msk.bf16.mxu1 %vm905_vm5, %v10144_v42 }
 0x282   : > { %v2372_v33 = vpop.permute.xlu0 %2371 }
 0x283   : > { %v10156_v0 = vsel %vm9392_vm8, 0, %v2372_v33 }
 0x284   : > { %v10160_v40 = vcombine.low %v10148_v9, %v10156_v0 }
 0x286   : > { %11441 = vst [vmem:[#allocation21_spill] sm:$0xff] %v10160_v40  ;;  %v2374_v12 = vpop.permute.xlu1 %2373  ;;  %7841 = vmatmul.mubr.msk.bf16.gmra.mrb[20].mxu1 %vm905_vm5, %v10160_v40 }
 0x287   : > { %v10164_v60 = vsel %vm9392_vm8, 0, %v2374_v12 }
 0x288   : > { %v2376_v42 = vpop.permute.xlu0 %2375 }
 0x289   : > { %v10172_v33 = vsel %vm9392_vm8, 0, %v2376_v42 }
 0x28a   : > { %v2378_v24 = vpop.permute.xlu1 %2377  ;;  %v10176_v50 = vcombine.low %v10164_v60, %v10172_v33 }
 0x28b   : > { %v10180_v12 = vsel %vm9392_vm8, 0, %v2378_v24 }
 0x28c   : > { %11442 = vst [vmem:[#allocation22_spill] sm:$0xff] %v10176_v50  ;;  %v2380_v18 = vpop.permute.xlu0 %2379  ;;  %7844 = vmatprep.mubr.msk.bf16.mxu1 %vm905_vm5, %v10176_v50 }
 0x28d   : > { %v10188_v42 = vsel %vm9392_vm8, 0, %v2380_v18 }
 0x28e   : > { %v2382_v52 = vpop.permute.xlu1 %2381  ;;  %v10192_v31 = vcombine.low %v10180_v12, %v10188_v42 }
 0x28f   : > { %v10196_v24 = vsel %vm9392_vm8, 0, %v2382_v52 }
 0x290   : > { %11443 = vst [vmem:[#allocation23_spill] sm:$0xff] %v10192_v31  ;;  %v7078_v40 = vcombine.low %v10188_v42, %v10196_v24  ;;  %7845 = vmatmul.mubr.msk.bf16.gmra.mrb[24].mxu1 %vm905_vm5, %v10192_v31  ;;  %v2384_v50 = vpop.permute.xlu0 %2383 }
 0x291   : > { %v2419_v18 = vsel %vm9392_vm8, 0, %v2384_v50  ;;  %v7025_v50 = vcombine.low %v11378_v39, %v9791_v17  ;;  %v7041_v17 = vcombine.low %v11378_v39, %v9985_v49 }
 0x292   : > { %v2386_v45 = vpop.permute.xlu1 %2385  ;;  %v10205_v15 = vcombine.low %v10196_v24, %v2419_v18  ;;  %v2222_v24 = vld [vmem:[%s11268_s5 + $0x4] sm:$0xf] }
 0x293   : > { %v2420_v41 = vsel %vm9392_vm8, 0, %v2386_v45  ;;  %v2874_v45 = vsel %vm930_vm1, %v2227_v38, 0  ;;  %v2225_v38 = vld [vmem:[%s11269_s6 + $0x2] sm:$0x3] }
 0x294   : > { %v7079_v13 = vcombine.low %v2419_v18, %v2420_v41  ;;  %7848 = vmatprep.mubr.msk.bf16.mxu1 %vm905_vm5, %v10205_v15  ;;  %v2388_v52 = vpop.permute.xlu0 %2387  ;;  %v11444_v18 = vpack.c.bf16 %v9793_v25, %v9782_v20  ;;  %v11447_v20 = vpack.c.bf16 %v9830_v61, %v9816_v4  ;;  %v11448_v25 = vpack.c.bf16 %v9879_v3, %v9858_v43 }
 0x295   : > { %v2421_v42 = vsel %vm9392_vm8, 0, %v2388_v52  ;;  %v3174_v52 = vsel %vm930_vm1, %v2225_v38, 0  ;;  %v11451_v4 = vpack.c.bf16 %v9912_v46, %v9901_v57  ;;  %v11454_v43 = vcombine.low %v10140_v36, %v10148_v9  ;;  %v11469_v9 = vld [vmem:[#allocation9_spill] sm:$0xff] }
 0x296   : > { %v10213_v31 = vcombine.low %v2420_v41, %v2421_v42  ;;  %v3024_v41 = vsel %vm846_vm0, %v2222_v24, 0  ;;  %v2390_v3 = vpop.permute.xlu1 %2389  ;;  %v11457_v46 = vcombine.low %v9985_v49, %v9848_v6  ;;  %v11460_v6 = vcombine.low %v10001_v26, %v10005_v30  ;;  %v11461_v49 = vld [vmem:[#allocation2_spill] sm:$0xff] }
 0x297   : > { %v2422_v57 = vsel %vm9392_vm8, 0, %v2390_v3 }
 0x298   : > { %7849 = vmatmul.mubr.msk.bf16.gmra.mrb[28].mxu1 %vm905_vm5, %v10213_v31 }
 0x299   : > { %7854 = vmatprep.mubr.msk.bf16.mxu1 %vm1069_vm2, %v7025_v50  ;;  %v2228_v50 = vld [vmem:[%s11270_s7 + $0x2] sm:$0x3] }
 0x29a   : > { %v3324_v61 = vsel %vm930_vm1, %v2228_v50, 0 }
 0x2a0   : > { %7855 = vmatmul.mubr.msk.bf16.vlgmr.msra.gmra.mrb[16].mxu1 %vm1069_vm2, %v9805_v22 }
 0x2a1   : > { %7871 = vmatpush3.bf16.msra.mxu1 %v2874_v45  ;;  %7858 = vmatprep.mubr.msk.bf16.mxu1 %vm1069_vm2, %v9948_v55  ;;  %v11445_v45 = vpack.c.bf16 %v9787_v23, %v9779_v51  ;;  %v11449_v51 = vpack.c.bf16 %v9877_v1, %v9855_v44  ;;  %v11450_v23 = vpack.c.bf16 %v9919_v56, %v9904_v7 }
 0x2a2   : > { %8692 = vmatprep.subr.msk.bf16.mxu1 %vm846_vm0, %v2222_v24  ;;  %v11446_v24 = vpack.c.bf16 %v9832_v19, %v9821_v34  ;;  %v11452_v34 = vcombine.low %v10105_v10, %v10111_v63  ;;  %v2223_v19 = vld [vmem:[%s11268_s5 + $0x8] sm:$0xf]  ;;  %v11453_v44 = vcombine.low %v10118_v54, %v10133_v11  ;;  %v11455_v63 = vcombine.low %v10156_v0, %v10164_v60  ;;  %v2226_v54 = vld [vmem:[%s11269_s6 + $0x4] sm:$0x3] }
 0x2a3   : > { %v11456_v1 = vcombine.low %v10172_v33, %v10180_v12  ;;  %v7080_v7 = vcombine.low %v2421_v42, %v2422_v57  ;;  %v3444_v56 = vsel %vm846_vm0, %v2223_v19, 0  ;;  %v11462_v10 = vcombine.low %v10009_v16, %v11461_v49  ;;  %v11470_v0 = vld [vmem:[#allocation11_spill] sm:$0xff]  ;;  %v2229_v16 = vld [vmem:[%s11270_s7 + $0x4] sm:$0x3] }
 0x2a4   : > { %v11471_v26 = vcombine.low %v11469_v9, %v11470_v0  ;;  %v3564_v30 = vsel %vm930_vm1, %v2226_v54, 0  ;;  %v3684_v60 = vsel %vm930_vm1, %v2229_v16, 0  ;;  %v11477_v33 = vld [vmem:[#allocation23_spill] sm:$0xff]  ;;  %v7114_v12 = vcombine.low %v2422_v57, %v11378_v39 }
 0x2a8   : > { %7859 = vmatmul.mubr.msk.bf16.gmra.mrb[20].mxu1 %vm1069_vm2, %v9952_v59 }
 0x2a9   : > { %7862 = vmatprep.mubr.msk.bf16.mxu1 %vm1069_vm2, %v9956_v53 }
 0x2b0   : > { %7863 = vmatmul.mubr.msk.bf16.gmra.mrb[24].mxu1 %vm1069_vm2, %v9961_v58 }
 0x2b1   : > { %7866 = vmatprep.mubr.msk.bf16.mxu1 %vm1069_vm2, %v9965_v27 }
 0x2b8   : > { %7867 = vmatmul.mubr.msk.bf16.gmra.mrb[28].mxu1 %vm1069_vm2, %v9969_v21 }
 0x2b9   : > { %7872 = vmatprep.mubr.msk.bf16.mxu1 %vm905_vm5, %v7041_v17  ;;  %v4394_v17 = vld [vmem:[%s11275_s12] sm:$0xf] }
 0x2c0   : > { %7873 = vmatmul.mubr.msk.bf16.vlgmr.msra.gmra.mrb[16].mxu1 %vm905_vm5, %v9875_v2 }
 0x2c1   : > { %7889 = vmatpush3.bf16.msra.mxu1 %v3024_v41  ;;  %7876 = vmatprep.mubr.msk.bf16.mxu1 %vm905_vm5, %v9989_v37 }
 0x2c2   : > { %8693 = vmatprep.subr.msk.bf16.mxu1 %vm930_vm1, %v2225_v38 }
 0x2c8   : > { %7877 = vmatmul.mubr.msk.bf16.gmra.mrb[20].mxu1 %vm905_vm5, %v10018_v28 }
 0x2c9   : > { %7880 = vmatprep.mubr.msk.bf16.mxu1 %vm905_vm5, %v10022_v47 }
 0x2d0   : > { %7881 = vmatmul.mubr.msk.bf16.gmra.mrb[24].mxu1 %vm905_vm5, %v10035_v5 }
 0x2d1   : > { %7884 = vmatprep.mubr.msk.bf16.mxu1 %vm905_vm5, %v10051_v35 }
 0x2d8   : > { %7885 = vmatmul.mubr.msk.bf16.gmra.mrb[28].mxu1 %vm905_vm5, %v10055_v32 }
 0x2d9   : > { %7890 = vmatprep.mubr.msk.bf16.mxu1 %vm1069_vm2, %v11444_v18 }
 0x2e0   : > { %7891 = vmatmul.mubr.msk.bf16.vlgmr.msra.gmra.mrb[16].mxu1 %vm1069_vm2, %v11445_v45 }
 0x2e1   : > { %7907 = vmatpush3.bf16.msra.mxu1 %v3174_v52  ;;  %7894 = vmatprep.mubr.msk.bf16.mxu1 %vm1069_vm2, %v11446_v24 }
 0x2e2   : > { %8694 = vmatprep.subr.msk.bf16.mxu1 %vm930_vm1, %v2228_v50  ;;  %v11482_v50 = vld [vmem:[#allocation16_spill] sm:$0xff] }
 0x2e8   : > { %7895 = vmatmul.mubr.msk.bf16.gmra.mrb[20].mxu1 %vm1069_vm2, %v11447_v20 }
 0x2e9   : > { %7898 = vmatprep.mubr.msk.bf16.mxu1 %vm1069_vm2, %v11448_v25 }
 0x2f0   : > { %7899 = vmatmul.mubr.msk.bf16.gmra.mrb[24].mxu1 %vm1069_vm2, %v11449_v51 }
 0x2f1   : > { %7902 = vmatprep.mubr.msk.bf16.mxu1 %vm1069_vm2, %v11450_v23 }
 0x2f8   : > { %7903 = vmatmul.mubr.msk.bf16.gmra.mrb[28].mxu1 %vm1069_vm2, %v11451_v4 }
 0x2f9   : > { %7908 = vmatprep.mubr.msk.bf16.mxu1 %vm905_vm5, %v11452_v34 }
 0x300   : > { %7909 = vmatmul.mubr.msk.bf16.vlgmr.msra.gmra.mrb[16].mxu1 %vm905_vm5, %v11453_v44  ;;  %v11483_v44 = vld [vmem:[#allocation10_spill] sm:$0xff] }
 0x301   : > { %7925 = vmatpush3.bf16.msra.mxu1 %v3324_v61  ;;  %7912 = vmatprep.mubr.msk.bf16.mxu1 %vm905_vm5, %v11454_v43  ;;  %v4645_v61 = vsel %vm846_vm0, %v4394_v17, 0 }
 0x302   : > { %8695 = vmatprep.subr.msk.bf16.mxu1 %vm846_vm0, %v2223_v19 }
 0x308   : > { %7913 = vmatmul.mubr.msk.bf16.gmra.mrb[20].mxu1 %vm905_vm5, %v11455_v63 }
 0x309   : > { %7916 = vmatprep.mubr.msk.bf16.mxu1 %vm905_vm5, %v11456_v1  ;;  %v4396_v1 = vld [vmem:[%s11275_s12 + $0x8] sm:$0xf] }
 0x310   : > { %7917 = vmatmul.mubr.msk.bf16.gmra.mrb[24].mxu1 %vm905_vm5, %v7078_v40  ;;  %v11459_v40 = vcombine.low %v9980_v29, %v9996_v62  ;;  %v11466_v29 = vld [vmem:[#allocation7_spill] sm:$0xff]  ;;  %v11467_v62 = vld [vmem:[#allocation8_spill] sm:$0xff] }
 0x311   : > { %7920 = vmatprep.mubr.msk.bf16.mxu1 %vm905_vm5, %v7079_v13  ;;  %v11458_v13 = vcombine.low %v9863_v14, %v9975_v8  ;;  %v11463_v14 = vld [vmem:[#allocation5_spill] sm:$0xff]  ;;  %v11464_v8 = vld [vmem:[#allocation6_spill] sm:$0xff]  ;;  %v11468_v36 = vcombine.low %v11466_v29, %v11467_v62 }
 0x312   : > { %v11465_v11 = vcombine.low %v11463_v14, %v11464_v8 }
 0x318   : > { %7921 = vmatmul.mubr.msk.bf16.gmra.mrb[28].mxu1 %vm905_vm5, %v7080_v7 }
 0x319   : > { %7926 = vmatprep.mubr.msk.bf16.mxu1 %vm905_vm5, %v11457_v46  ;;  %v11484_v46 = vld [vmem:[#allocation18_spill] sm:$0xff] }
 0x320   : > { %7927 = vmatmul.mubr.msk.bf16.vlgmr.msra.gmra.mrb[16].mxu1 %vm905_vm5, %v11458_v13 }
 0x321   : > { %7943 = vmatpush3.bf16.msra.mxu1 %v3444_v56  ;;  %7930 = vmatprep.mubr.msk.bf16.mxu1 %vm905_vm5, %v11459_v40 }
 0x322   : > { %8696 = vmatprep.subr.msk.bf16.mxu1 %vm930_vm1, %v2226_v54 }
 0x328   : > { %7931 = vmatmul.mubr.msk.bf16.gmra.mrb[20].mxu1 %vm905_vm5, %v11460_v6 }
 0x329   : > { %7934 = vmatprep.mubr.msk.bf16.mxu1 %vm905_vm5, %v11462_v10 }
 0x330   : > { %7935 = vmatmul.mubr.msk.bf16.gmra.mrb[24].mxu1 %vm905_vm5, %v11465_v11 }
 0x331   : > { %7938 = vmatprep.mubr.msk.bf16.mxu1 %vm905_vm5, %v11468_v36 }
 0x338   : > { %7939 = vmatmul.mubr.msk.bf16.gmra.mrb[28].mxu1 %vm905_vm5, %v11471_v26 }
 0x339   : > { %7944 = vmatprep.mubr.msk.bf16.mxu1 %vm1069_vm2, %v9805_v22  ;;  %v11472_v22 = vld [vmem:[#allocation3_spill] sm:$0xff] }
 0x340   : > { %7945 = vmatmul.mubr.msk.bf16.vlgmr.msra.gmra.mrb[16].mxu1 %vm1069_vm2, %v9948_v55  ;;  %v7105_v55 = vcombine.low %v11472_v22, %v11378_v39 }
 0x341   : > { %7961 = vmatpush3.bf16.msra.mxu1 %v3564_v30  ;;  %7948 = vmatprep.mubr.msk.bf16.mxu1 %vm1069_vm2, %v9952_v59  ;;  %v11473_v59 = vld [vmem:[#allocation13_spill] sm:$0xff] }
 0x342   : > { %8697 = vmatprep.subr.msk.bf16.mxu1 %vm930_vm1, %v2229_v16 }
 0x348   : > { %7949 = vmatmul.mubr.msk.bf16.gmra.mrb[20].mxu1 %vm1069_vm2, %v9956_v53  ;;  %v4395_v53 = vld [vmem:[%s11275_s12 + $0x4] sm:$0xf] }
 0x349   : > { %7952 = vmatprep.mubr.msk.bf16.mxu1 %vm1069_vm2, %v9961_v58  ;;  %v11474_v58 = vld [vmem:[#allocation20_spill] sm:$0xff]  ;;  %v4547_v42 = vsel %vm846_vm0, %v4395_v53, 0 }
 0x350   : > { %7953 = vmatmul.mubr.msk.bf16.gmra.mrb[24].mxu1 %vm1069_vm2, %v9965_v27  ;;  %v11475_v27 = vld [vmem:[#allocation21_spill] sm:$0xff] }
 0x351   : > { %7956 = vmatprep.mubr.msk.bf16.mxu1 %vm1069_vm2, %v9969_v21  ;;  %v11476_v21 = vld [vmem:[#allocation22_spill] sm:$0xff] }
 0x358   : > { %7957 = vmatmul.mubr.msk.bf16.gmra.mrb[28].mxu1 %vm1069_vm2, %v7105_v55 }
 0x359   : > { %7962 = vmatprep.mubr.msk.bf16.mxu1 %vm905_vm5, %v11473_v59 }
 0x360   : > { %7963 = vmatmul.mubr.msk.bf16.vlgmr.msra.gmra.mrb[16].mxu1 %vm905_vm5, %v11474_v58 }
 0x361   : > { %7979 = vmatpush3.bf16.msra.mxu1 %v3684_v60  ;;  %7966 = vmatprep.mubr.msk.bf16.mxu1 %vm905_vm5, %v11475_v27 }
 0x362   : > { %8704 = vmatprep.subr.msk.bf16.mxu1 %vm846_vm0, %v4395_v53 }
 0x368   : > { %7967 = vmatmul.mubr.msk.bf16.gmra.mrb[20].mxu1 %vm905_vm5, %v11476_v21 }
 0x369   : > { %7970 = vmatprep.mubr.msk.bf16.mxu1 %vm905_vm5, %v11477_v33 }
 0x370   : > { %7971 = vmatmul.mubr.msk.bf16.gmra.mrb[24].mxu1 %vm905_vm5, %v10205_v15  ;;  %v11478_v15 = vld [vmem:[#allocation14_spill] sm:$0xff] }
 0x371   : > { %7974 = vmatprep.mubr.msk.bf16.mxu1 %vm905_vm5, %v10213_v31 }
 0x378   : > { %7975 = vmatmul.mubr.msk.bf16.gmra.mrb[28].mxu1 %vm905_vm5, %v7114_v12 }
 0x379   : > { %7980 = vmatprep.mubr.msk.bf16.mxu1 %vm905_vm5, %v9875_v2  ;;  %v10426_v2 = vld [vmem:[%s11274_s11] ss:$0 sm:$0xff] }
 0x37a   : > { %v10461_v45 = vadd.f32 %v11482_v50, %v10426_v2  ;;  %v10490_v43 = vadd.f32 %v10426_v2, %v11483_v44  ;;  %v10505_v56 = vadd.f32 %v11484_v46, %v10426_v2 }
 0x37c   : > { %v10480_v4 = vpack.c.bf16 %v10461_v45, %v10461_v45  ;;  %v10513_v40 = vpack.c.bf16 %v10490_v43, %v10490_v43  ;;  %v10522_v8 = vpack.c.bf16 %v10505_v56, %v10505_v56  ;;  %v10527_v29 = vpack.c.bf16 %v10505_v56, %v10490_v43 }
 0x37e   : > { %v4434_v54 = vshrl.u32 %v10480_v4, 16  ;;  %v4437_v30 = vshll.u32 %v10480_v4, 16  ;;  %v4455_v55 = vshrl.u32 %v10522_v8, 16  ;;  %v4451_v33 = vshll.u32 %v10513_v40, 16 }
 0x380   : > { %7981 = vmatmul.mubr.msk.bf16.vlgmr.msra.gmra.mrb[16].mxu1 %vm905_vm5, %v9989_v37  ;;  %v10430_v37 = vadd.f32 %v10426_v2, %v11478_v15  ;;  %v4436_v62 = vrot.slane %v4434_v54, 7  ;;  %v4457_v12 = vrot.slane %v4455_v55, 7 }
 0x381   : > { %8057 = vmatpush3.bf16.msra.mxu1 %v4547_v42  ;;  %7984 = vmatprep.mubr.msk.bf16.mxu1 %vm905_vm5, %v10018_v28 }
 0x382   : > { %8705 = vmatprep.subr.msk.bf16.mxu1 %vm846_vm0, %v4394_v17  ;;  %v10438_v28 = vpack.c.bf16 %v10430_v37, %v10430_v37  ;;  %v4439_v59 = vor.u32 %v4437_v30, %v4436_v62  ;;  %v4743_v17 = vsel %vm846_vm0, %v4396_v1, 0 }
 0x384   : > { %v7182_v41 = vcombine.low %v11378_v39, %v10438_v28  ;;  %v4413_v38 = vshrl.u32 %v10438_v28, 16  ;;  %v4416_v23 = vshll.u32 %v10438_v28, 16  ;;  %v4479_v15 = vsel %vm9392_vm8, 0, %v4439_v59 }
 0x386   : > { %v4415_v20 = vrot.slane %v4413_v38, 7  ;;  %v4484_v58 = vrot.slane %v4416_v23, 1 }
 0x388   : > { %7985 = vmatmul.mubr.msk.bf16.gmra.mrb[20].mxu1 %vm905_vm5, %v10022_v47  ;;  %v7123_v47 = vcombine.low %v11470_v0, %v11378_v39  ;;  %v4418_v57 = vor.u32 %v4416_v23, %v4415_v20  ;;  %v4448_v0 = vshrl.u32 %v10513_v40, 16 }
 0x389   : > { %7988 = vmatprep.mubr.msk.bf16.mxu1 %vm905_vm5, %v10035_v5  ;;  %v11479_v5 = vld [vmem:[#allocation17_spill] sm:$0xff] }
 0x38a   : > { %v10444_v31 = vadd.f32 %v10426_v2, %v11479_v5  ;;  %v10517_v6 = vsel %vm9392_vm8, 0, %v4418_v57  ;;  %v4450_v53 = vrot.slane %v4448_v0, 7 }
 0x38b   : > { %v7190_v26 = vcombine.low %v11378_v39, %v10517_v6 }
 0x38c   : > { %v10465_v24 = vpack.c.bf16 %v10444_v31, %v10444_v31 }
 0x38e   : > { %v4420_v19 = vshrl.u32 %v10465_v24, 16  ;;  %v4423_v14 = vshll.u32 %v10465_v24, 16 }
 0x390   : > { %7989 = vmatmul.mubr.msk.bf16.gmra.mrb[24].mxu1 %vm905_vm5, %v10051_v35  ;;  %v11480_v35 = vld [vmem:[#allocation19_spill] sm:$0xff]  ;;  %v4422_v13 = vrot.slane %v4420_v19, 7  ;;  %v4486_v24 = vrot.slane %v4423_v14, 1 }
 0x391   : > { %7992 = vmatprep.mubr.msk.bf16.mxu1 %vm905_vm5, %v10055_v32  ;;  %v10451_v18 = vadd.f32 %v10426_v2, %v11480_v35  ;;  %v11481_v32 = vld [vmem:[#allocation15_spill] sm:$0xff] }
 0x392   : > { %v10456_v52 = vadd.f32 %v11481_v32, %v10426_v2  ;;  %v4425_v9 = vor.u32 %v4423_v14, %v4422_v13  ;;  %v4397_v35 = vld [vmem:[%s11275_s12 + $0xc] sm:$0xf]  ;;  %v4485_v32 = vor.u32 %v4484_v58, %v4413_v38  ;;  %v4487_v44 = vor.u32 %v4486_v24, %v4420_v19 }
 0x393   : > { %v10471_v25 = vpack.c.bf16 %v10451_v18, %v10451_v18  ;;  %v10494_v63 = vpack.c.bf16 %v10451_v18, %v10461_v45 }
 0x394   : > { %v10475_v51 = vpack.c.bf16 %v10456_v52, %v10456_v52  ;;  %v10484_v34 = vpack.c.bf16 %v10456_v52, %v10444_v31  ;;  %v4477_v60 = vsel %vm9392_vm8, 0, %v4425_v9  ;;  %v4509_v40 = vsel %vm9135_vm4, %v4487_v44, 0  ;;  %v4398_v9 = vld [vmem:[%s11275_s12 + $0x10] sm:$0xf]  ;;  %v5363_v44 = vld [vmem:[%s11277_s14 + $0x4] sm:$0xf] }
 0x395   : > { %v4441_v3 = vshrl.u32 %v10471_v25, 16  ;;  %v4444_v11 = vshll.u32 %v10471_v25, 16  ;;  %v7206_v59 = vcombine.low %v10517_v6, %v4477_v60  ;;  %8713 = vmatprep.subr.msk.bf16.mxu0 %vm846_vm0, %v5363_v44 }
 0x396   : > { %v4427_v7 = vshrl.u32 %v10475_v51, 16  ;;  %v4430_v36 = vshll.u32 %v10475_v51, 16  ;;  %v10573_v51 = vsel %vm9135_vm4, %v4485_v32, 0 }
 0x397   : > { %v4443_v49 = vrot.slane %v4441_v3, 7  ;;  %v4492_v23 = vrot.slane %v4444_v11, 1 }
 0x398   : > { %7993 = vmatmul.mubr.msk.bf16.gmra.mrb[28].mxu1 %vm905_vm5, %v7123_v47  ;;  %v4429_v10 = vrot.slane %v4427_v7, 7  ;;  %v4458_v47 = vshll.u32 %v10522_v8, 16  ;;  %v4488_v4 = vrot.slane %v4430_v36, 1 }
 0x399   : > { %8058 = vmatprep.mubr.msk.bf16.mxu1 %vm1069_vm2, %v7182_v41  ;;  %v4446_v16 = vor.u32 %v4444_v11, %v4443_v49  ;;  %v4453_v41 = vor.u32 %v4451_v33, %v4450_v53  ;;  %v4493_v57 = vor.u32 %v4492_v23, %v4441_v3  ;;  %v4494_v49 = vrot.slane %v4451_v33, 1 }
 0x39a   : > { %v4432_v22 = vor.u32 %v4430_v36, %v4429_v10  ;;  %v4460_v50 = vor.u32 %v4458_v47, %v4457_v12  ;;  %v4489_v46 = vor.u32 %v4488_v4, %v4427_v7  ;;  %v4496_v14 = vrot.slane %v4458_v47, 1  ;;  %v11486_v7 = vld [vmem:[#allocation4_spill] sm:$0xff] }
 0x39b   : > { %v10542_v27 = vsel %vm9392_vm8, 0, %v4446_v16  ;;  %v4481_v20 = vsel %vm9392_vm8, 0, %v4453_v41  ;;  %v4512_v10 = vsel %vm9135_vm4, %v4493_v57, 0  ;;  %v4837_v11 = vsel %vm846_vm0, %v4397_v35, 0  ;;  %v4399_v47 = vld [vmem:[%s11275_s12 + $0x14] sm:$0xf] }
 0x39c   : > { %v10546_v21 = vsel %vm9392_vm8, 0, %v4432_v22  ;;  %v10557_v5 = vcombine.low %v4479_v15, %v10542_v27  ;;  %v4482_v28 = vsel %vm9392_vm8, 0, %v4460_v50  ;;  %v4510_v19 = vsel %vm9135_vm4, %v4489_v46, 0 }
 0x39d   : > { %v10550_v42 = vcombine.low %v4477_v60, %v10546_v21  ;;  %v10577_v38 = vcombine.low %v4481_v20, %v4482_v28  ;;  %v10590_v8 = vcombine.low %v4509_v40, %v4510_v19  ;;  %v4495_v36 = vor.u32 %v4494_v49, %v4448_v0 }
 0x39e   : > { %v7207_v58 = vcombine.low %v10546_v21, %v4479_v15  ;;  %v4931_v33 = vsel %vm846_vm0, %v4398_v9, 0  ;;  %v7208_v12 = vcombine.low %v10542_v27, %v4481_v20  ;;  %v7369_v21 = vpack.c.bf16 %v10444_v31, %v10430_v37 }
 0x39f   : > { %v4513_v0 = vsel %vm9135_vm4, %v4495_v36, 0  ;;  %v7370_v27 = vpack.c.bf16 %v10461_v45, %v10456_v52  ;;  %v5025_v15 = vsel %vm846_vm0, %v4399_v47, 0  ;;  %v7371_v41 = vpack.c.bf16 %v10490_v43, %v10451_v18 }
 0x3a0   : > { %8059 = vmatmul.mubr.msk.bf16.vlgmr.msra.gmra.mrb[32].mxu1 %vm1069_vm2, %v10484_v34  ;;  %v7222_v50 = vcombine.low %v10573_v51, %v4509_v40  ;;  %v7224_v4 = vcombine.low %v4512_v10, %v4513_v0 }
 0x3a1   : > { %8067 = vmatpush3.bf16.msra.mxu1 %v4645_v61  ;;  %8062 = vmatprep.mubr.msk.bf16.mxu1 %vm1069_vm2, %v10494_v63  ;;  %v4490_v61 = vrot.slane %v4437_v30, 1 }
 0x3a2   : > { %8706 = vmatprep.subr.msk.bf16.mxu1 %vm846_vm0, %v4396_v1  ;;  %v7198_v1 = vcombine.low %v11378_v39, %v10573_v51 }
 0x3a3   : > { %v4491_v13 = vor.u32 %v4490_v61, %v4434_v54  ;;  %v10597_v54 = vadd.f32 %v11486_v7, %v10426_v2  ;;  %v4401_v61 = vld [vmem:[%s11275_s12 + $0x1c] sm:$0xf] }
 0x3a4   : > { %v5185_v46 = vsel %vm846_vm0, %v4401_v61, 0 }
 0x3a5   : > { %v4511_v3 = vsel %vm9135_vm4, %v4491_v13, 0  ;;  %v10611_v2 = vpack.c.bf16 %v10597_v54, %v10597_v54  ;;  %v7372_v32 = vpack.c.bf16 %v10597_v54, %v10505_v56  ;;  %v4402_v13 = vld [vmem:[%s11275_s12 + $0x20] sm:$0xf] }
 0x3a6   : > { %v10599_v62 = vcombine.low %v4511_v3, %v4512_v10  ;;  %v7223_v20 = vcombine.low %v4510_v19, %v4511_v3  ;;  %v8737_v3 = vld [vmem:[%s8891_s26 + $0x10] sm:$0xff] }
 0x3a7   : > { %v4462_v22 = vshrl.u32 %v10611_v2, 16  ;;  %v4465_v53 = vshll.u32 %v10611_v2, 16 }
 0x3a8   : > { %8063 = vmatmul.mubr.msk.bf16.gmra.mrb[36].mxu1 %vm1069_vm2, %v10527_v29 }
 0x3a9   : > { %8068 = vmatprep.mubr.msk.bf16.mxu1 %vm1069_vm2, %v7190_v26  ;;  %v4497_v26 = vor.u32 %v4496_v14, %v4455_v55  ;;  %v4464_v55 = vrot.slane %v4462_v22, 7  ;;  %v4498_v24 = vrot.slane %v4465_v53, 1 }
 0x3ab   : > { %v4514_v30 = vsel %vm9135_vm4, %v4497_v26, 0 }
 0x3ac   : > { %v10617_v16 = vcombine.low %v4513_v0, %v4514_v30 }
 0x3b0   : > { %8069 = vmatmul.mubr.msk.bf16.vlgmr.msra.gmra.mrb[32].mxu1 %vm1069_vm2, %v10550_v42 }
 0x3b1   : > { %8077 = vmatpush3.bf16.msra.mxu1 %v4743_v17  ;;  %8072 = vmatprep.mubr.msk.bf16.mxu1 %vm1069_vm2, %v10557_v5  ;;  %v4467_v17 = vor.u32 %v4465_v53, %v4464_v55 }
 0x3b2   : > { %8707 = vmatprep.subr.msk.bf16.mxu1 %vm846_vm0, %v4397_v35  ;;  %v4400_v35 = vld [vmem:[%s11275_s12 + $0x18] sm:$0xf] }
 0x3b3   : > { %v4483_v6 = vsel %vm9392_vm8, 0, %v4467_v17  ;;  %v5105_v23 = vsel %vm846_vm0, %v4400_v35, 0 }
 0x3b4   : > { %v7209_v60 = vcombine.low %v4482_v28, %v4483_v6  ;;  %v4499_v28 = vor.u32 %v4498_v24, %v4462_v22  ;;  %v7230_v40 = vcombine.low %v4483_v6, %v11378_v39 }
 0x3b6   : > { %v4515_v51 = vsel %vm9135_vm4, %v4499_v28, 0 }
 0x3b7   : > { %v7225_v57 = vcombine.low %v4514_v30, %v4515_v51 }
 0x3b8   : > { %8073 = vmatmul.mubr.msk.bf16.gmra.mrb[36].mxu1 %vm1069_vm2, %v10577_v38 }
 0x3b9   : > { %8078 = vmatprep.mubr.msk.bf16.mxu1 %vm1069_vm2, %v7198_v1  ;;  %v5515_v1 = vsel %vm846_vm0, %v5363_v44, 0 }
 0x3ba   : > { %8147 = vmatpush3.bf16.msra.mxu0 %v5515_v1  ;;  %v8745_v1 = vld [vmem:[%s8891_s26 + $0x50] sm:$0xff] }
 0x3c0   : > { %8079 = vmatmul.mubr.msk.bf16.vlgmr.msra.gmra.mrb[32].mxu1 %vm1069_vm2, %v10590_v8 }
 0x3c1   : > { %8087 = vmatpush3.bf16.msra.mxu1 %v4837_v11  ;;  %8082 = vmatprep.mubr.msk.bf16.mxu1 %vm1069_vm2, %v10599_v62 }
 0x3c2   : > { %8708 = vmatprep.subr.msk.bf16.mxu1 %vm846_vm0, %v4398_v9  ;;  %v8739_v9 = vld [vmem:[%s8891_s26] sm:$0xff] }
 0x3c8   : > { %8083 = vmatmul.mubr.msk.bf16.gmra.mrb[36].mxu1 %vm1069_vm2, %v10617_v16 }
 0x3c9   : > { %8088 = vmatprep.mubr.msk.bf16.mxu1 %vm1069_vm2, %v7206_v59 }
 0x3d0   : > { %8089 = vmatmul.mubr.msk.bf16.vlgmr.msra.gmra.mrb[32].mxu1 %vm1069_vm2, %v7207_v58 }
 0x3d1   : > { %8097 = vmatpush3.bf16.msra.mxu1 %v4931_v33  ;;  %8092 = vmatprep.mubr.msk.bf16.mxu1 %vm1069_vm2, %v7208_v12 }
 0x3d2   : > { %8709 = vmatprep.subr.msk.bf16.mxu1 %vm846_vm0, %v4399_v47  ;;  %v8741_v47 = vld [vmem:[%s8891_s26 + $0x30] sm:$0xff] }
 0x3d8   : > { %8093 = vmatmul.mubr.msk.bf16.gmra.mrb[36].mxu1 %vm1069_vm2, %v7209_v60  ;;  %v8742_v60 = vld [vmem:[%s8891_s26 + $0x38] sm:$0xff] }
 0x3d9   : > { %8098 = vmatprep.mubr.msk.bf16.mxu1 %vm1069_vm2, %v7369_v21 }
 0x3e0   : > { %8099 = vmatmul.mubr.msk.bf16.vlgmr.msra.gmra.mrb[32].mxu1 %vm1069_vm2, %v7370_v27  ;;  %v8743_v27 = vld [vmem:[%s8891_s26 + $0x20] sm:$0xff] }
 0x3e1   : > { %8107 = vmatpush3.bf16.msra.mxu1 %v5025_v15  ;;  %8102 = vmatprep.mubr.msk.bf16.mxu1 %vm1069_vm2, %v7371_v41  ;;  %v8744_v41 = vld [vmem:[%s8891_s26 + $0x28] sm:$0xff] }
 0x3e2   : > { %8710 = vmatprep.subr.msk.bf16.mxu1 %vm846_vm0, %v4400_v35 }
 0x3e8   : > { %8103 = vmatmul.mubr.msk.bf16.gmra.mrb[36].mxu1 %vm1069_vm2, %v7372_v32 }
 0x3e9   : > { %8108 = vmatprep.mubr.msk.bf16.mxu1 %vm1069_vm2, %v7222_v50 }
 0x3f0   : > { %8109 = vmatmul.mubr.msk.bf16.vlgmr.msra.gmra.mrb[32].mxu1 %vm1069_vm2, %v7223_v20 }
 0x3f1   : > { %8117 = vmatpush3.bf16.msra.mxu1 %v5105_v23  ;;  %8112 = vmatprep.mubr.msk.bf16.mxu1 %vm1069_vm2, %v7224_v4 }
 0x3f2   : > { %8711 = vmatprep.subr.msk.bf16.mxu1 %vm846_vm0, %v4401_v61 }
 0x3f8   : > { %8113 = vmatmul.mubr.msk.bf16.gmra.mrb[36].mxu1 %vm1069_vm2, %v7225_v57 }
 0x3f9   : > { %8118 = vmatprep.mubr.msk.bf16.mxu1 %vm1069_vm2, %v10550_v42  ;;  %v5265_v42 = vsel %vm846_vm0, %v4402_v13, 0 }
 0x400   : > { %8119 = vmatmul.mubr.msk.bf16.vlgmr.msra.gmra.mrb[32].mxu1 %vm1069_vm2, %v10557_v5  ;;  %v7235_v5 = vcombine.low %v10611_v2, %v11378_v39  ;;  %v8740_v2 = vld [vmem:[%s8891_s26 + $0x8] sm:$0xff] }
 0x401   : > { %8127 = vmatpush3.bf16.msra.mxu1 %v5185_v46  ;;  %8122 = vmatprep.mubr.msk.bf16.mxu1 %vm1069_vm2, %v10577_v38  ;;  %v8746_v46 = vld [vmem:[%s8891_s26 + $0x58] sm:$0xff] }
 0x402   : > { %8712 = vmatprep.subr.msk.bf16.mxu1 %vm846_vm0, %v4402_v13 }
 0x408   : > { %8123 = vmatmul.mubr.msk.bf16.gmra.mrb[36].mxu1 %vm1069_vm2, %v7230_v40  ;;  %v8747_v40 = vld [vmem:[%s8891_s26 + $0x40] sm:$0xff] }
 0x409   : > { %8128 = vmatprep.mubr.msk.bf16.mxu1 %vm1069_vm2, %v10484_v34  ;;  %v7240_v34 = vcombine.low %v4515_v51, %v11378_v39 }
 0x410   : > { %8129 = vmatmul.mubr.msk.bf16.vlgmr.msra.gmra.mrb[32].mxu1 %vm1069_vm2, %v10494_v63  ;;  %v7132_v63 = vld [vmem:[%s11271_s8] ss:$0 sm:$0xff] }
 0x411   : > { %8137 = vmatpush3.bf16.msra.mxu1 %v5265_v42  ;;  %8132 = vmatprep.mubr.msk.bf16.mxu1 %vm1069_vm2, %v10527_v29 }
 0x418   : > { %8133 = vmatmul.mubr.msk.bf16.gmra.mrb[36].mxu1 %vm1069_vm2, %v7235_v5  ;;  %v8748_v5 = vld [vmem:[%s8891_s26 + $0x48] sm:$0xff] }
 0x419   : > { %8138 = vmatprep.mubr.msk.bf16.mxu1 %vm1069_vm2, %v10590_v8 }
 0x420   : > { %8139 = vmatmul.mubr.msk.bf16.vlgmr.msra.gmra.mrb[32].mxu1 %vm1069_vm2, %v10599_v62  ;;  %v8738_v62 = vld [vmem:[%s8891_s26 + $0x18] sm:$0xff] }
 0x421   : > { %8142 = vmatprep.mubr.msk.bf16.mxu1 %vm1069_vm2, %v10617_v16 }
 0x428   : > { %8143 = vmatmul.mubr.msk.bf16.gmra.mrb[36].mxu1 %vm1069_vm2, %v7240_v34 }
 0x453   : > { %v7982_v29 = vpop.f32.mrb[16].mxu1 }
 0x454   : > { %v3807_v38 = vadd.f32 %v7982_v29, %v7132_v63  ;;  %v3720_v49 = vpop.f32.mrb[17].mxu1 }
 0x455   : > { %v3805_v10 = vadd.f32 %v7132_v63, %v3720_v49  ;;  %v7983_v19 = vpop.f32.mrb[18].mxu1 }
 0x456   : > { %v3808_v14 = vadd.f32 %v7983_v19, %v7132_v63  ;;  %v3723_v8 = vpop.f32.mrb[19].mxu1  ;;  %v10706_v7 = vadd.f32 %v8737_v3, %v3807_v38 }
 0x457   : > { %v3806_v11 = vadd.f32 %v7132_v63, %v3723_v8  ;;  %v10712_v26 = vadd.f32 %v8739_v9, %v3805_v10  ;;  %v8749_v9 = vld [vmem:[%s8891_s26 + $0x70] sm:$0xff] }
 0x458   : > { %v10709_v36 = vadd.f32 %v8738_v62, %v3808_v14 }
 0x459   : > { %v10715_v0 = vadd.f32 %v8740_v2, %v3806_v11 }
 0x45b   : > { %v7986_v22 = vpop.f32.mrb[20].mxu1 }
 0x45c   : > { %v3811_v59 = vadd.f32 %v7986_v22, %v7132_v63  ;;  %v3736_v55 = vpop.f32.mrb[21].mxu1  ;;  %v8750_v22 = vld [vmem:[%s8891_s26 + $0x78] sm:$0xff] }
 0x45d   : > { %v3809_v53 = vadd.f32 %v7132_v63, %v3736_v55  ;;  %v7987_v58 = vpop.f32.mrb[22].mxu1  ;;  %v8751_v55 = vld [vmem:[%s8891_s26 + $0x60] sm:$0xff] }
 0x45e   : > { %v3812_v33 = vadd.f32 %v7987_v58, %v7132_v63  ;;  %v3739_v12 = vpop.f32.mrb[23].mxu1  ;;  %v10722_v6 = vadd.f32 %v8741_v47, %v3811_v59  ;;  %v8752_v58 = vld [vmem:[%s8891_s26 + $0x68] sm:$0xff]  ;;  %v7245_v47 = vld [vmem:[%s11276_s13] ss:$0 sm:$0xff]  ;;  %s8763_s26 = smov 8  }
 0x45f   : > { %v3810_v17 = vadd.f32 %v7132_v63, %v3739_v12  ;;  %v10728_v15 = vadd.f32 %v8743_v27, %v3809_v53 }
 0x460   : > { %11487 = vst [vmem:[#allocation2_spill] sm:$0xff] %v10722_v6  ;;  %v10725_v21 = vadd.f32 %v8742_v60, %v3812_v33 }
 0x461   : > { %11489 = vst [vmem:[#allocation6_spill] sm:$0xff] %v10728_v15  ;;  %v10731_v35 = vadd.f32 %v8744_v41, %v3810_v17 }
 0x462   : > { %11488 = vst [vmem:[#allocation5_spill] sm:$0xff] %v10725_v21 }
 0x463   : > { %11490 = vst [vmem:[#allocation7_spill] sm:$0xff] %v10731_v35  ;;  %v7990_v24 = vpop.f32.mrb[24].mxu1 }
 0x464   : > { %v3815_v20 = vadd.f32 %v7990_v24, %v7132_v63  ;;  %v3752_v23 = vpop.f32.mrb[25].mxu1 }
 0x465   : > { %v3813_v4 = vadd.f32 %v7132_v63, %v3752_v23  ;;  %v7991_v28 = vpop.f32.mrb[26].mxu1 }
 0x466   : > { %v3816_v61 = vadd.f32 %v7991_v28, %v7132_v63  ;;  %v3755_v51 = vpop.f32.mrb[27].mxu1  ;;  %v10738_v57 = vadd.f32 %v8745_v1, %v3815_v20 }
 0x467   : > { %v3814_v44 = vadd.f32 %v7132_v63, %v3755_v51  ;;  %v10744_v42 = vadd.f32 %v8747_v40, %v3813_v4 }
 0x468   : > { %11491 = vst [vmem:[#allocation8_spill] sm:$0xff] %v10738_v57  ;;  %v10741_v13 = vadd.f32 %v8746_v46, %v3816_v61 }
 0x469   : > { %11493 = vst [vmem:[#allocation11_spill] sm:$0xff] %v10744_v42  ;;  %v10747_v34 = vadd.f32 %v8748_v5, %v3814_v44 }
 0x46a   : > { %11492 = vst [vmem:[#allocation9_spill] sm:$0xff] %v10741_v13 }
 0x46b   : > { %11494 = vst [vmem:[#allocation3_spill] sm:$0xff] %v10747_v34  ;;  %v7994_v49 = vpop.f32.mrb[28].mxu1 }
 0x46c   : > { %v3819_v10 = vadd.f32 %v7994_v49, %v7132_v63  ;;  %v3768_v19 = vpop.f32.mrb[29].mxu1 }
 0x46d   : > { %v3817_v14 = vadd.f32 %v7132_v63, %v3768_v19  ;;  %v7995_v8 = vpop.f32.mrb[30].mxu1 }
 0x46e   : > { %v3820_v11 = vadd.f32 %v7995_v8, %v7132_v63  ;;  %v3771_v3 = vpop.f32.mrb[31].mxu1  ;;  %v10754_v2 = vadd.f32 %v8749_v9, %v3819_v10 }
 0x46f   : > { %v3818_v62 = vadd.f32 %v7132_v63, %v3771_v3  ;;  %v10760_v53 = vadd.f32 %v8751_v55, %v3817_v14  ;;  %v5362_v63 = vld [vmem:[%s11277_s14] sm:$0xf] }
 0x470   : > { %11495 = vst [vmem:[#allocation13_spill] sm:$0xff] %v10754_v2  ;;  %v10757_v59 = vadd.f32 %v8750_v22, %v3820_v11  ;;  %8714 = vmatprep.subr.msk.bf16.mxu0 %vm846_vm0, %v5362_v63  ;;  %v5613_v12 = vsel %vm846_vm0, %v5362_v63, 0 }
 0x471   : > { %11497 = vst [vmem:[#allocation21_spill] sm:$0xff] %v10760_v53  ;;  %v10763_v33 = vadd.f32 %v8752_v58, %v3818_v62 }
 0x472   : > { %11496 = vst [vmem:[#allocation20_spill] sm:$0xff] %v10757_v59 }
 0x473   : > { %11498 = vst [vmem:[#allocation22_spill] sm:$0xff] %v10763_v33 }
 0x4f3   : > { %v8140_v60 = vpop.f32.mrb[32].mxu1 }
 0x4f4   : > { %v5348_v27 = vadd.f32 %v8140_v60, %v7245_v47  ;;  %v5301_v41 = vpop.f32.mrb[33].mxu1 }
 0x4f5   : > { %v5346_v24 = vadd.f32 %v7245_v47, %v5301_v41  ;;  %v8141_v20 = vpop.f32.mrb[34].mxu1 }
 0x4f6   : > { %v10776_v23 = vmax.f32 %v5348_v27, 0.0  ;;  %v5349_v4 = vadd.f32 %v8141_v20, %v7245_v47  ;;  %v5304_v28 = vpop.f32.mrb[35].mxu1 }
 0x4f7   : > { %v10778_v61 = vmax.f32 %v5346_v24, 0.0  ;;  %v5347_v51 = vadd.f32 %v7245_v47, %v5304_v28 }
 0x4f8   : > { %v5374_v44 = vpack.c.bf16 %v10776_v23, %v10776_v23  ;;  %v10782_v1 = vmax.f32 %v5349_v4, 0.0 }
 0x4f9   : > { %v5372_v46 = vpack.c.bf16 %v10778_v61, %v10778_v61  ;;  %v10786_v40 = vmax.f32 %v5347_v51, 0.0 }
 0x4fa   : > { %v5395_v5 = vshrl.u32 %v5374_v44, 16  ;;  %v5398_v49 = vshll.u32 %v5374_v44, 16  ;;  %v5375_v10 = vpack.c.bf16 %v10782_v1, %v10782_v1 }
 0x4fb   : > { %v5381_v14 = vshrl.u32 %v5372_v46, 16  ;;  %v5384_v8 = vshll.u32 %v5372_v46, 16  ;;  %v5373_v11 = vpack.c.bf16 %v10786_v40, %v10786_v40  ;;  %v10796_v3 = vpack.c.bf16 %v10776_v23, %v10786_v40  ;;  %v8144_v62 = vpop.f32.mrb[36].mxu1 }
 0x4fc   : > { %v5397_v9 = vrot.slane %v5395_v5, 7  ;;  %v5456_v22 = vrot.slane %v5398_v49, 1  ;;  %v5402_v55 = vshrl.u32 %v5375_v10, 16  ;;  %v5405_v58 = vshll.u32 %v5375_v10, 16  ;;  %v5317_v60 = vpop.f32.mrb[37].mxu1 }
 0x4fd   : > { %v5383_v27 = vrot.slane %v5381_v14, 7  ;;  %v5452_v41 = vrot.slane %v5384_v8, 1  ;;  %v5388_v24 = vshrl.u32 %v5373_v11, 16  ;;  %v5391_v20 = vshll.u32 %v5373_v11, 16  ;;  %v8145_v4 = vpop.f32.mrb[38].mxu1 }
 0x4fe   : > { %v5400_v28 = vor.u32 %v5398_v49, %v5397_v9  ;;  %v5457_v51 = vor.u32 %v5456_v22, %v5395_v5  ;;  %v5404_v44 = vrot.slane %v5402_v55, 7  ;;  %v5320_v17 = vpop.f32.mrb[39].mxu1  ;;  %v5458_v29 = vrot.slane %v5405_v58, 1 }
 0x4ff   : > { %v5386_v38 = vor.u32 %v5384_v8, %v5383_v27  ;;  %v5390_v32 = vrot.slane %v5388_v24, 7  ;;  %v5454_v50 = vrot.slane %v5391_v20, 1  ;;  %v10807_v11 = vor.u32 %v5452_v41, %v5381_v14 }
 0x500   : > { %v10801_v16 = vsel %vm9392_vm8, 0, %v5400_v28  ;;  %v10805_v10 = vsel %vm9135_vm4, %v5457_v51, 0  ;;  %v5407_v49 = vor.u32 %v5405_v58, %v5404_v44  ;;  %v5352_v8 = vadd.f32 %v8144_v62, %v7245_v47 }
 0x501   : > { %v5393_v5 = vor.u32 %v5391_v20, %v5390_v32  ;;  %v5455_v9 = vor.u32 %v5454_v50, %v5388_v24  ;;  %v5350_v22 = vadd.f32 %v7245_v47, %v5317_v60  ;;  %v5353_v27 = vadd.f32 %v8145_v4, %v7245_v47 }
 0x502   : > { %v7246_v30 = vcombine.low %v11378_v39, %v5372_v46  ;;  %v5351_v19 = vadd.f32 %v7245_v47, %v5320_v17  ;;  %v5459_v28 = vor.u32 %v5458_v29, %v5402_v55  ;;  %v10820_v32 = vmax.f32 %v5352_v8, 0.0  ;;  %v10838_v47 = vld [vmem:[%s11277_s14 + $0x8] sm:$0xf] }
 0x503   : > { %v10814_v53 = vsel %vm9392_vm8, 0, %v5393_v5  ;;  %v10818_v14 = vsel %vm9135_vm4, %v5455_v9, 0  ;;  %v10830_v17 = vmax.f32 %v5350_v22, 0.0  ;;  %v10832_v29 = vmax.f32 %v5353_v27, 0.0 }
 0x504   : > { %v10824_v50 = vcombine.low %v10814_v53, %v10801_v16  ;;  %v10828_v62 = vcombine.low %v10818_v14, %v10805_v10  ;;  %8148 = vmatprep.mubr.msk.bf16.mxu0 %vm1069_vm2, %v7246_v30  ;;  %v5378_v46 = vpack.c.bf16 %v10820_v32, %v10820_v32  ;;  %v10842_v55 = vmax.f32 %v5351_v19, 0.0 }
 0x505   : > { %8149 = vmatmul.mubr.msk.bf16.vlgmr.msra.gmra.mrb[24].mxu0 %vm1069_vm2, %v10796_v3  ;;  %v10848_v58 = vsel %vm9392_vm8, 0, %v5386_v38  ;;  %v10852_v30 = vsel %vm9392_vm8, 0, %v5407_v49  ;;  %v5376_v60 = vpack.c.bf16 %v10830_v17, %v10830_v17  ;;  %v10858_v41 = vpack.c.bf16 %v10830_v17, %v10782_v1 }
 0x506   : > { %v10862_v19 = vpack.c.bf16 %v10832_v29, %v10832_v29  ;;  %8157 = vmatpush3.bf16.msra.mxu0 %v5613_v12  ;;  %v5423_v38 = vshrl.u32 %v5378_v46, 16  ;;  %v5426_v20 = vshll.u32 %v5378_v46, 16  ;;  %v5377_v4 = vpack.c.bf16 %v10842_v55, %v10842_v55 }
 0x507   : > { %v10870_v51 = vpack.c.bf16 %v10820_v32, %v10842_v55  ;;  %8715 = vmatprep.subr.msk.bf16.mxu0 %vm846_vm0, %v10838_v47  ;;  %v5409_v44 = vshrl.u32 %v5376_v60, 16  ;;  %v5412_v49 = vshll.u32 %v5376_v60, 16  ;;  %8152 = vmatprep.mubr.msk.bf16.mxu0 %vm1069_vm2, %v10858_v41  ;;  %v7254_v60 = vcombine.low %v11378_v39, %v10848_v58 }
 0x508   : > { %v5430_v5 = vshrl.u32 %v10862_v19, 16  ;;  %v5433_v9 = vshll.u32 %v10862_v19, 16  ;;  %v5425_v12 = vrot.slane %v5423_v38, 7  ;;  %v5464_v8 = vrot.slane %v5426_v20, 1 }
 0x509   : > { %v5416_v22 = vshrl.u32 %v5377_v4, 16  ;;  %v5419_v27 = vshll.u32 %v5377_v4, 16  ;;  %v5411_v46 = vrot.slane %v5409_v44, 7  ;;  %v5460_v24 = vrot.slane %v5412_v49, 1 }
 0x50a   : > { %v5432_v63 = vrot.slane %v5430_v5, 7  ;;  %v5466_v33 = vrot.slane %v5433_v9, 1  ;;  %v5428_v2 = vor.u32 %v5426_v20, %v5425_v12  ;;  %v5465_v34 = vor.u32 %v5464_v8, %v5423_v38  ;;  %v5368_v12 = vld [vmem:[%s11277_s14 + $0x18] sm:$0xf] }
 0x50b   : > { %v5418_v59 = vrot.slane %v5416_v22, 7  ;;  %v5462_v42 = vrot.slane %v5419_v27, 1  ;;  %v5414_v57 = vor.u32 %v5412_v49, %v5411_v46  ;;  %v5461_v13 = vor.u32 %v5460_v24, %v5409_v44 }
 0x50c   : > { %v5435_v6 = vor.u32 %v5433_v9, %v5432_v63  ;;  %v7378_v35 = vpack.c.bf16 %v10842_v55, %v10830_v17  ;;  %v7271_v20 = vcombine.low %v10801_v16, %v10852_v30  ;;  %v5467_v4 = vor.u32 %v5466_v33, %v5430_v5 }
 0x50d   : > { %v5421_v21 = vor.u32 %v5419_v27, %v5418_v59  ;;  %v5463_v15 = vor.u32 %v5462_v42, %v5416_v22  ;;  %8153 = vmatmul.mubr.msk.bf16.gmra.mrb[28].mxu0 %vm1069_vm2, %v10870_v51  ;;  %v5448_v38 = vsel %vm9392_vm8, 0, %v5414_v57  ;;  %v5450_v63 = vsel %vm9392_vm8, 0, %v5428_v2 }
 0x50e   : > { %8158 = vmatprep.mubr.msk.bf16.mxu0 %vm1069_vm2, %v7254_v60  ;;  %v5479_v42 = vsel %vm9135_vm4, %v5459_v28, 0  ;;  %v7256_v59 = vcombine.low %v10852_v30, %v5448_v38  ;;  %v5476_v16 = vsel %vm9135_vm4, %v10807_v11, 0  ;;  %v5480_v33 = vsel %vm9135_vm4, %v5461_v13, 0 }
 0x50f   : > { %v5449_v17 = vsel %vm9392_vm8, 0, %v5421_v21  ;;  %v10901_v57 = vcombine.low %v5479_v42, %v5480_v33  ;;  %v7287_v2 = vcombine.low %v10805_v10, %v5479_v42  ;;  %v5481_v28 = vsel %vm9135_vm4, %v5463_v15, 0 }
 0x510   : > { %v7257_v55 = vcombine.low %v5449_v17, %v5450_v63  ;;  %v5482_v30 = vsel %vm9135_vm4, %v5465_v34, 0  ;;  %v7270_v21 = vcombine.low %v10848_v58, %v10814_v53  ;;  %v7272_v24 = vcombine.low %v5448_v38, %v5449_v17  ;;  %v5365_v34 = vld [vmem:[%s11277_s14 + $0xc] sm:$0xf] }
 0x511   : > { %v5451_v11 = vsel %vm9392_vm8, 0, %v5435_v6  ;;  %v10912_v44 = vcombine.low %v5481_v28, %v5482_v30  ;;  %v7286_v49 = vcombine.low %v5476_v16, %v10818_v14  ;;  %v7288_v5 = vcombine.low %v5480_v33, %v5481_v28  ;;  %v5366_v6 = vld [vmem:[%s11277_s14 + $0x10] sm:$0xf] }
 0x512   : > { %v7273_v13 = vcombine.low %v5450_v63, %v5451_v11  ;;  %v5711_v10 = vsel %vm846_vm0, %v10838_v47, 0  ;;  %v5483_v15 = vsel %vm9135_vm4, %v5467_v4, 0  ;;  %v7262_v48 = vcombine.low %v11378_v39, %v5476_v16  ;;  %v5367_v47 = vld [vmem:[%s11277_s14 + $0x14] sm:$0xf] }
 0x513   : > { %v7289_v53 = vcombine.low %v5482_v30, %v5483_v15  ;;  %v5805_v25 = vsel %vm846_vm0, %v5365_v34, 0  ;;  %v5899_v14 = vsel %vm846_vm0, %v5366_v6, 0  ;;  %v11499_v58 = vpack.c.bf16 %v10786_v40, %v10778_v61 }
 0x514   : > { %v5993_v9 = vsel %vm846_vm0, %v5367_v47, 0  ;;  %v11500_v8 = vpack.c.bf16 %v10782_v1, %v10776_v23  ;;  %v11501_v61 = vpack.c.bf16 %v10832_v29, %v10820_v32  ;;  %v6073_v40 = vsel %vm846_vm0, %v5368_v12, 0  ;;  %v5369_v23 = vld [vmem:[%s11277_s14 + $0x1c] sm:$0xf]  ;;  %v5370_v1 = vld [vmem:[%s11277_s14 + $0x20] sm:$0xf] }
 0x515   : > { %8159 = vmatmul.mubr.msk.bf16.vlgmr.msra.gmra.mrb[24].mxu0 %vm1069_vm2, %v10824_v50  ;;  %v7294_v32 = vcombine.low %v5451_v11, %v11378_v39  ;;  %v7299_v29 = vcombine.low %v10862_v19, %v11378_v39  ;;  %v8736_v19 = vld [vmem:[%s11279_s16 + $0x8] ss:$0 sps:$4 sm:$0xff]  }
 0x516   : > { %8167 = vmatpush3.bf16.msra.mxu0 %v5711_v10  ;;  %8162 = vmatprep.mubr.msk.bf16.mxu0 %vm1069_vm2, %v7256_v59 }
 0x517   : > { %8716 = vmatprep.subr.msk.bf16.mxu0 %vm846_vm0, %v5365_v34 }
 0x51d   : > { %8163 = vmatmul.mubr.msk.bf16.gmra.mrb[28].mxu0 %vm1069_vm2, %v7257_v55 }
 0x51e   : > { %8168 = vmatprep.mubr.msk.bf16.mxu0 %vm1069_vm2, %v7262_v48 }
 0x525   : > { %8169 = vmatmul.mubr.msk.bf16.vlgmr.msra.gmra.mrb[24].mxu0 %vm1069_vm2, %v10828_v62 }
 0x526   : > { %8177 = vmatpush3.bf16.msra.mxu0 %v5805_v25  ;;  %8172 = vmatprep.mubr.msk.bf16.mxu0 %vm1069_vm2, %v10901_v57 }
 0x527   : > { %8717 = vmatprep.subr.msk.bf16.mxu0 %vm846_vm0, %v5366_v6 }
 0x52d   : > { %8173 = vmatmul.mubr.msk.bf16.gmra.mrb[28].mxu0 %vm1069_vm2, %v10912_v44 }
 0x52e   : > { %8178 = vmatprep.mubr.msk.bf16.mxu0 %vm1069_vm2, %v7270_v21 }
 0x535   : > { %8179 = vmatmul.mubr.msk.bf16.vlgmr.msra.gmra.mrb[24].mxu0 %vm1069_vm2, %v7271_v20 }
 0x536   : > { %8187 = vmatpush3.bf16.msra.mxu0 %v5899_v14  ;;  %8182 = vmatprep.mubr.msk.bf16.mxu0 %vm1069_vm2, %v7272_v24 }
 0x537   : > { %8718 = vmatprep.subr.msk.bf16.mxu0 %vm846_vm0, %v5367_v47 }
 0x53d   : > { %8183 = vmatmul.mubr.msk.bf16.gmra.mrb[28].mxu0 %vm1069_vm2, %v7273_v13 }
 0x53e   : > { %8188 = vmatprep.mubr.msk.bf16.mxu0 %vm1069_vm2, %v11499_v58 }
 0x545   : > { %8189 = vmatmul.mubr.msk.bf16.vlgmr.msra.gmra.mrb[24].mxu0 %vm1069_vm2, %v11500_v8 }
 0x546   : > { %8197 = vmatpush3.bf16.msra.mxu0 %v5993_v9  ;;  %8192 = vmatprep.mubr.msk.bf16.mxu0 %vm1069_vm2, %v7378_v35  ;;  %v6153_v35 = vsel %vm846_vm0, %v5369_v23, 0 }
 0x547   : > { %8719 = vmatprep.subr.msk.bf16.mxu0 %vm846_vm0, %v5368_v12 }
 0x54d   : > { %8193 = vmatmul.mubr.msk.bf16.gmra.mrb[28].mxu0 %vm1069_vm2, %v11501_v61 }
 0x54e   : > { %8198 = vmatprep.mubr.msk.bf16.mxu0 %vm1069_vm2, %v7286_v49 }
 0x555   : > { %8199 = vmatmul.mubr.msk.bf16.vlgmr.msra.gmra.mrb[24].mxu0 %vm1069_vm2, %v7287_v2 }
 0x556   : > { %8207 = vmatpush3.bf16.msra.mxu0 %v6073_v40  ;;  %8202 = vmatprep.mubr.msk.bf16.mxu0 %vm1069_vm2, %v7288_v5 }
 0x557   : > { %8720 = vmatprep.subr.msk.bf16.mxu0 %vm846_vm0, %v5369_v23 }
 0x55d   : > { %8203 = vmatmul.mubr.msk.bf16.gmra.mrb[28].mxu0 %vm1069_vm2, %v7289_v53 }
 0x55e   : > { %8208 = vmatprep.mubr.msk.bf16.mxu0 %vm1069_vm2, %v10824_v50  ;;  %v6233_v50 = vsel %vm846_vm0, %v5370_v1, 0 }
 0x565   : > { %8209 = vmatmul.mubr.msk.bf16.vlgmr.msra.gmra.mrb[24].mxu0 %vm1069_vm2, %v7256_v59 }
 0x566   : > { %8217 = vmatpush3.bf16.msra.mxu0 %v6153_v35  ;;  %8212 = vmatprep.mubr.msk.bf16.mxu0 %vm1069_vm2, %v7257_v55 }
 0x567   : > { %8721 = vmatprep.subr.msk.bf16.mxu0 %vm846_vm0, %v5370_v1 }
 0x56d   : > { %8213 = vmatmul.mubr.msk.bf16.gmra.mrb[28].mxu0 %vm1069_vm2, %v7294_v32 }
 0x56e   : > { %8218 = vmatprep.mubr.msk.bf16.mxu0 %vm1069_vm2, %v10796_v3  ;;  %v7304_v3 = vcombine.low %v5483_v15, %v11378_v39  ;;  %v7309_v39 = vld [vmem:[%s11278_s15] ss:$0 sm:$0xff] }
 0x575   : > { %8219 = vmatmul.mubr.msk.bf16.vlgmr.msra.gmra.mrb[24].mxu0 %vm1069_vm2, %v10858_v41  ;;  %v8735_v41 = vld [vmem:[%s11279_s16] sm:$0xff]  }
 0x576   : > { %8227 = vmatpush3.bf16.msra.mxu0 %v6233_v50  ;;  %8222 = vmatprep.mubr.msk.bf16.mxu0 %vm1069_vm2, %v10870_v51 }
 0x577   : > { %8236 = vmatprep.subr.bf16.mxu1 %v8735_v41 }
 0x578   : > { %8237 = vmatpush3.bf16.msra.mxu1 %v8735_v41 }
 0x579   : > { %8722 = vmatprep.subr.msk.bf16.mxu1 %vm846_vm0, %v8736_v19 }
 0x57d   : > { %8223 = vmatmul.mubr.msk.bf16.gmra.mrb[28].mxu0 %vm1069_vm2, %v7299_v29 }
 0x57e   : > { %8228 = vmatprep.mubr.msk.bf16.mxu0 %vm1069_vm2, %v10828_v62  ;;  %v6706_v62 = vsel %vm846_vm0, %v8736_v19, 0 }
 0x57f   : > { %8239 = vmatpush3.bf16.msra.mxu1 %v6706_v62 }
 0x585   : > { %8229 = vmatmul.mubr.msk.bf16.vlgmr.msra.gmra.mrb[24].mxu0 %vm1069_vm2, %v10901_v57 }
 0x586   : > { %8232 = vmatprep.mubr.msk.bf16.mxu0 %vm1069_vm2, %v10912_v44 }
 0x58d   : > { %8233 = vmatmul.mubr.msk.bf16.gmra.mrb[28].mxu0 %vm1069_vm2, %v7304_v3 }
 0x658   : > { %v8230_v51 = vpop.f32.mrb[24].mxu0 }
 0x659   : > { %v6316_v22 = vadd.f32 %v8230_v51, %v7309_v39  ;;  %v6269_v27 = vpop.f32.mrb[25].mxu0 }
 0x65a   : > { %v6314_v46 = vadd.f32 %v7309_v39, %v6269_v27  ;;  %v8231_v60 = vpop.f32.mrb[26].mxu0 }
 0x65b   : > { %v6324_v20 = vadd.f32 %v6316_v22, %v10456_v52  ;;  %v6317_v4 = vadd.f32 %v8231_v60, %v7309_v39  ;;  %v6272_v38 = vpop.f32.mrb[27].mxu0 }
 0x65c   : > { %v6322_v63 = vadd.f32 %v6314_v46, %v10430_v37  ;;  %v6315_v42 = vadd.f32 %v7309_v39, %v6272_v38 }
 0x65d   : > { %v6325_v59 = vadd.f32 %v6317_v4, %v10461_v45  ;;  %v6332_v55 = vmul.f32 0.25, %v6324_v20  ;;  %v6339_v57 = vmul.f32 0.75, %v6324_v20 }
 0x65e   : > { %v6330_v17 = vmul.f32 0.25, %v6322_v63  ;;  %v6337_v16 = vmul.f32 0.75, %v6322_v63  ;;  %v6323_v33 = vadd.f32 %v6315_v42, %v10444_v31 }
 0x65f   : > { %v6333_v2 = vmul.f32 0.25, %v6325_v59  ;;  %v6340_v28 = vmul.f32 0.75, %v6325_v59 }
 0x660   : > { %v11020_v30 = vadd.f32 %v6337_v16, %v6330_v17  ;;  %v6331_v21 = vmul.f32 0.25, %v6323_v33  ;;  %v6338_v24 = vmul.f32 0.75, %v6323_v33  ;;  %v8234_v52 = vpop.f32.mrb[28].mxu0 }
 0x661   : > { %v11022_v11 = vadd.f32 %v6340_v28, %v6332_v55  ;;  %v11024_v44 = vadd.f32 %v6339_v57, %v6333_v2  ;;  %v6320_v37 = vadd.f32 %v8234_v52, %v7309_v39  ;;  %v6285_v13 = vpop.f32.mrb[29].mxu0 }
 0x662   : > { %v6346_v45 = vadd.f32 %v6338_v24, %v6330_v17  ;;  %v11026_v49 = vadd.f32 %v6339_v57, %v6331_v21  ;;  %v11028_v5 = vadd.f32 %v6337_v16, %v6331_v21  ;;  %v6355_v31 = vadd.f32 %v6338_v24, %v6332_v55  ;;  %v8235_v10 = vpop.f32.mrb[30].mxu0 }
 0x663   : > { %v6328_v15 = vadd.f32 %v6320_v37, %v10505_v56  ;;  %v6318_v34 = vadd.f32 %v7309_v39, %v6285_v13  ;;  %v6321_v53 = vadd.f32 %v8235_v10, %v7309_v39  ;;  %v6288_v48 = vpop.f32.mrb[31].mxu0  ;;  %v6378_v25 = vrot.slane %v11020_v30, 7 }
 0x664   : > { %v6319_v6 = vadd.f32 %v7309_v39, %v6288_v48  ;;  %v6380_v14 = vrot.slane %v6346_v45, 7  ;;  %v6381_v47 = vrot.slane %v6355_v31, 7  ;;  %v6494_v58 = vmul.f32 0.75, %v6346_v45 }
 0x665   : > { %v6336_v9 = vmul.f32 0.25, %v6328_v15  ;;  %v6343_v12 = vmul.f32 0.75, %v6328_v15  ;;  %v6326_v8 = vadd.f32 %v6318_v34, %v10451_v18  ;;  %v6329_v61 = vadd.f32 %v6321_v53, %v10597_v54 }
 0x666   : > { %v6327_v40 = vadd.f32 %v6319_v6, %v10490_v43  ;;  %v6413_v56 = vsel %vm779_vm6, %v6346_v45, %v6380_v14  ;;  %v6414_v23 = vsel %vm779_vm6, %v6355_v31, %v6381_v47  ;;  %v6495_v35 = vmul.f32 0.75, %v6355_v31 }
 0x667   : > { %v6334_v1 = vmul.f32 0.25, %v6326_v8  ;;  %v6341_v32 = vmul.f32 0.75, %v6326_v8  ;;  %v6344_v50 = vmul.f32 0.75, %v6329_v61  ;;  %v6353_v29 = vmul.f32 0.25, %v6329_v61 }
 0x668   : > { %v6335_v3 = vmul.f32 0.25, %v6327_v40  ;;  %v6342_v41 = vmul.f32 0.75, %v6327_v40  ;;  %v6478_v19 = vmul.f32 0.25, %v6413_v56  ;;  %v6479_v62 = vmul.f32 0.25, %v6414_v23 }
 0x669   : > { %v11037_v39 = vadd.f32 %v6341_v32, %v6333_v2  ;;  %v11039_v18 = vadd.f32 %v6340_v28, %v6334_v1  ;;  %v11041_v54 = vadd.f32 %v6344_v50, %v6336_v9  ;;  %v11043_v43 = vadd.f32 %v6353_v29, %v6343_v12 }
 0x66a   : > { %v11045_v51 = vadd.f32 %v6353_v29, %v6344_v50  ;;  %v11047_v22 = vadd.f32 %v6342_v41, %v6334_v1  ;;  %v11049_v27 = vadd.f32 %v6343_v12, %v6335_v3  ;;  %v11051_v46 = vadd.f32 %v6341_v32, %v6335_v3 }
 0x66b   : > { %v11053_v60 = vadd.f32 %v6342_v41, %v6336_v9  ;;  %v6510_v20 = vadd.f32 %v6494_v58, %v6478_v19  ;;  %v6511_v4 = vadd.f32 %v6495_v35, %v6479_v62  ;;  %v6379_v38 = vrot.slane %v11028_v5, 7 }
 0x66c   : > { %v6411_v63 = vsel %vm779_vm6, %v11020_v30, %v6378_v25  ;;  %v6492_v42 = vmul.f32 0.75, %v11020_v30  ;;  %v6493_v59 = vmul.f32 0.75, %v11028_v5  ;;  %v6429_v17 = vrot.slane %v6346_v45, 1 }
 0x66d   : > { %v6565_v16 = vpack.c.bf16 %v6511_v4, %v6510_v20  ;;  %v6412_v33 = vsel %vm779_vm6, %v11028_v5, %v6379_v38  ;;  %v6476_v55 = vmul.f32 0.25, %v6411_v63  ;;  %v6430_v57 = vrot.slane %v6355_v31, 1 }
 0x66e   : > { %v6477_v2 = vmul.f32 0.25, %v6412_v33  ;;  %v6462_v28 = vsel %vm6459_vm9, %v6429_v17, %v6346_v45  ;;  %v6427_v21 = vrot.slane %v11020_v30, 1  ;;  %v6428_v24 = vrot.slane %v11028_v5, 1 }
 0x66f   : > { %6590 = vrot.lane.b32.xlu1 %v6565_v16, %s8763_s26  ;;  %v6508_v52 = vadd.f32 %v6492_v42, %v6476_v55  ;;  %v6463_v37 = vsel %vm6459_vm9, %v6430_v57, %v6355_v31  ;;  %v6526_v13 = vmul.f32 0.25, %v6462_v28  ;;  %v6382_v10 = vrot.slane %v11026_v49, 7 }
 0x670   : > { %v6509_v15 = vadd.f32 %v6493_v59, %v6477_v2  ;;  %v6527_v34 = vmul.f32 0.25, %v6463_v37  ;;  %v6460_v53 = vsel %vm6459_vm9, %v6427_v21, %v11020_v30  ;;  %v6461_v45 = vsel %vm6459_vm9, %v6428_v24, %v11028_v5 }
 0x671   : > { %v6542_v48 = vadd.f32 %v6526_v13, %v6494_v58  ;;  %v6524_v25 = vmul.f32 0.25, %v6460_v53  ;;  %v6525_v6 = vmul.f32 0.25, %v6461_v45  ;;  %v6383_v14 = vrot.slane %v11024_v44, 7 }
 0x672   : > { %v6564_v47 = vpack.c.bf16 %v6509_v15, %v6508_v52  ;;  %v6543_v9 = vadd.f32 %v6527_v34, %v6495_v35  ;;  %v6415_v31 = vsel %vm779_vm6, %v11026_v49, %v6382_v10  ;;  %v6496_v12 = vmul.f32 0.75, %v11026_v49 }
 0x673   : > { %v6540_v8 = vadd.f32 %v6524_v25, %v6492_v42  ;;  %v6541_v61 = vadd.f32 %v6525_v6, %v6493_v59  ;;  %v6416_v30 = vsel %vm779_vm6, %v11024_v44, %v6383_v14  ;;  %v6480_v40 = vmul.f32 0.25, %v6415_v31 }
 0x674   : > { %6588 = vrot.lane.b32.xlu0 %v6564_v47, %s8763_s26  ;;  %v6573_v5 = vpack.c.bf16 %v6543_v9, %v6542_v48  ;;  %v6481_v58 = vmul.f32 0.25, %v6416_v30  ;;  %v6497_v56 = vmul.f32 0.75, %v11024_v44  ;;  %v6384_v23 = vrot.slane %v11022_v11, 7 }
 0x675   : > { %v6572_v35 = vpack.c.bf16 %v6541_v61, %v6540_v8  ;;  %v6512_v1 = vadd.f32 %v6496_v12, %v6480_v40  ;;  %v6385_v32 = vrot.slane %v11039_v18, 7  ;;  %v6498_v50 = vmul.f32 0.75, %v11022_v11 }
 0x676   : > { %6614 = vrot.lane.b32.xlu1 %v6573_v5, %s8764_s21  ;;  %v6513_v29 = vadd.f32 %v6497_v56, %v6481_v58  ;;  %v6417_v3 = vsel %vm779_vm6, %v11022_v11, %v6384_v23  ;;  %v6499_v41 = vmul.f32 0.75, %v11039_v18  ;;  %v6431_v19 = vrot.slane %v11026_v49, 1 }
 0x677   : > { %v6418_v62 = vsel %vm779_vm6, %v11039_v18, %v6385_v32  ;;  %v6482_v20 = vmul.f32 0.25, %v6417_v3  ;;  %v6432_v4 = vrot.slane %v11024_v44, 1  ;;  %v6433_v38 = vrot.slane %v11022_v11, 1 }
 0x678   : > { %6612 = vrot.lane.b32.xlu0 %v6572_v35, %s8764_s21  ;;  %v6566_v63 = vpack.c.bf16 %v6513_v29, %v6512_v1  ;;  %v6483_v42 = vmul.f32 0.25, %v6418_v62  ;;  %v6464_v59 = vsel %vm6459_vm9, %v6431_v19, %v11026_v49  ;;  %v6434_v17 = vrot.slane %v11039_v18, 1 }
 0x679   : > { %v6514_v16 = vadd.f32 %v6498_v50, %v6482_v20  ;;  %v6465_v33 = vsel %vm6459_vm9, %v6432_v4, %v11024_v44  ;;  %v6528_v55 = vmul.f32 0.25, %v6464_v59  ;;  %v6466_v57 = vsel %vm6459_vm9, %v6433_v38, %v11022_v11 }
 0x67a   : > { %v6515_v2 = vadd.f32 %v6499_v41, %v6483_v42  ;;  %v6529_v28 = vmul.f32 0.25, %v6465_v33  ;;  %v6467_v21 = vsel %vm6459_vm9, %v6434_v17, %v11039_v18  ;;  %v6530_v24 = vmul.f32 0.25, %v6466_v57 }
 0x67b   : > { %v6544_v52 = vadd.f32 %v6528_v55, %v6496_v12  ;;  %v6531_v37 = vmul.f32 0.25, %v6467_v21  ;;  %v6388_v49 = vrot.slane %v11047_v22, 7  ;;  %v6389_v13 = vrot.slane %v11053_v60, 7 }
 0x67c   : > { %6592 = vrot.lane.b32.xlu0 %v6566_v63, %s8763_s26  ;;  %v6567_v10 = vpack.c.bf16 %v6515_v2, %v6514_v16  ;;  %v6545_v44 = vadd.f32 %v6529_v28, %v6497_v56  ;;  %v6546_v15 = vadd.f32 %v6530_v24, %v6498_v50  ;;  %v6502_v34 = vmul.f32 0.75, %v11047_v22 }
 0x67d   : > { %v6547_v11 = vadd.f32 %v6531_v37, %v6499_v41  ;;  %v6421_v53 = vsel %vm779_vm6, %v11047_v22, %v6388_v49  ;;  %v6422_v18 = vsel %vm779_vm6, %v11053_v60, %v6389_v13  ;;  %v6503_v45 = vmul.f32 0.75, %v11053_v60 }
 0x67e   : > { %6594 = vrot.lane.b32.xlu1 %v6567_v10, %s8763_s26  ;;  %v6574_v48 = vpack.c.bf16 %v6545_v44, %v6544_v52  ;;  %v6486_v25 = vmul.f32 0.25, %v6421_v53  ;;  %v6487_v6 = vmul.f32 0.25, %v6422_v18  ;;  %v6386_v14 = vrot.slane %v11037_v39, 7 }
 0x67f   : > { %v6575_v47 = vpack.c.bf16 %v6547_v11, %v6546_v15  ;;  %v6387_v9 = vrot.slane %v11051_v46, 7  ;;  %v6500_v31 = vmul.f32 0.75, %v11037_v39  ;;  %v6501_v12 = vmul.f32 0.75, %v11051_v46 }
 0x680   : > { %6616 = vrot.lane.b32.xlu0 %v6574_v48, %s8764_s21  ;;  %v6518_v8 = vadd.f32 %v6502_v34, %v6486_v25  ;;  %v6519_v61 = vadd.f32 %v6503_v45, %v6487_v6  ;;  %v6419_v30 = vsel %vm779_vm6, %v11037_v39, %v6386_v14  ;;  %v6437_v40 = vrot.slane %v11047_v22, 1 }
 0x681   : > { %v6420_v5 = vsel %vm779_vm6, %v11051_v46, %v6387_v9  ;;  %v6484_v58 = vmul.f32 0.25, %v6419_v30  ;;  %v6438_v56 = vrot.slane %v11053_v60, 1  ;;  %v6435_v23 = vrot.slane %v11037_v39, 1 }
 0x682   : > { %6618 = vrot.lane.b32.xlu1 %v6575_v47, %s8764_s21  ;;  %v6569_v35 = vpack.c.bf16 %v6519_v61, %v6518_v8  ;;  %v6485_v1 = vmul.f32 0.25, %v6420_v5  ;;  %v6470_v32 = vsel %vm6459_vm9, %v6437_v40, %v11047_v22  ;;  %v6436_v50 = vrot.slane %v11051_v46, 1 }
 0x683   : > { %v6516_v29 = vadd.f32 %v6500_v31, %v6484_v58  ;;  %v6471_v3 = vsel %vm6459_vm9, %v6438_v56, %v11053_v60  ;;  %v6534_v41 = vmul.f32 0.25, %v6470_v32  ;;  %v6468_v19 = vsel %vm6459_vm9, %v6435_v23, %v11037_v39 }
 0x684   : > { %v6517_v62 = vadd.f32 %v6501_v12, %v6485_v1  ;;  %v6535_v20 = vmul.f32 0.25, %v6471_v3  ;;  %v6469_v4 = vsel %vm6459_vm9, %v6436_v50, %v11051_v46  ;;  %v6532_v38 = vmul.f32 0.25, %v6468_v19 }
 0x685   : > { %v6550_v63 = vadd.f32 %v6534_v41, %v6502_v34  ;;  %v6533_v42 = vmul.f32 0.25, %v6469_v4  ;;  %v6392_v22 = vrot.slane %v11041_v54, 7  ;;  %v6393_v59 = vrot.slane %v11045_v51, 7 }
 0x686   : > { %6598 = vrot.lane.b32.xlu1 %v6569_v35, %s8763_s26  ;;  %v6568_v17 = vpack.c.bf16 %v6517_v62, %v6516_v29  ;;  %v6551_v60 = vadd.f32 %v6535_v20, %v6503_v45  ;;  %v6548_v16 = vadd.f32 %v6532_v38, %v6500_v31  ;;  %v6506_v33 = vmul.f32 0.75, %v11041_v54 }
 0x687   : > { %v6549_v39 = vadd.f32 %v6533_v42, %v6501_v12  ;;  %v6425_v55 = vsel %vm779_vm6, %v11041_v54, %v6392_v22  ;;  %v6426_v46 = vsel %vm779_vm6, %v11045_v51, %v6393_v59  ;;  %v6507_v57 = vmul.f32 0.75, %v11045_v51  ;;  %v11508_v59 = vld [vmem:[#allocation2_spill] sm:$0xff] }
 0x688   : > { %6596 = vrot.lane.b32.xlu0 %v6568_v17, %s8763_s26  ;;  %v6577_v2 = vpack.c.bf16 %v6551_v60, %v6550_v63  ;;  %v6490_v28 = vmul.f32 0.25, %v6425_v55  ;;  %v6491_v21 = vmul.f32 0.25, %v6426_v46  ;;  %v6390_v24 = vrot.slane %v11049_v27, 7 }
 0x689   : > { %v6576_v52 = vpack.c.bf16 %v6549_v39, %v6548_v16  ;;  %v6391_v37 = vrot.slane %v11043_v43, 7  ;;  %v6504_v49 = vmul.f32 0.75, %v11049_v27  ;;  %v6505_v13 = vmul.f32 0.75, %v11043_v43 }
 0x68a   : > { %6622 = vrot.lane.b32.xlu1 %v6577_v2, %s8764_s21  ;;  %v6522_v10 = vadd.f32 %v6506_v33, %v6490_v28  ;;  %v6523_v44 = vadd.f32 %v6507_v57, %v6491_v21  ;;  %v6423_v15 = vsel %vm779_vm6, %v11049_v27, %v6390_v24  ;;  %v6441_v34 = vrot.slane %v11041_v54, 1  ;;  %v11511_v2 = vld [vmem:[#allocation8_spill] sm:$0xff]  ;;  %v11513_v24 = vld [vmem:[#allocation3_spill] sm:$0xff] }
 0x68b   : > { %v6424_v11 = vsel %vm779_vm6, %v11043_v43, %v6391_v37  ;;  %v6488_v53 = vmul.f32 0.25, %v6423_v15  ;;  %v6442_v18 = vrot.slane %v11045_v51, 1  ;;  %v6439_v45 = vrot.slane %v11049_v27, 1 }
 0x68c   : > { %6620 = vrot.lane.b32.xlu0 %v6576_v52, %s8764_s21  ;;  %v6571_v48 = vpack.c.bf16 %v6523_v44, %v6522_v10  ;;  %v6489_v25 = vmul.f32 0.25, %v6424_v11  ;;  %v6474_v6 = vsel %vm6459_vm9, %v6441_v34, %v11041_v54  ;;  %v6440_v14 = vrot.slane %v11043_v43, 1  ;;  %v11514_v52 = vld [vmem:[#allocation11_spill] sm:$0xff] }
 0x68d   : > { %v6520_v47 = vadd.f32 %v6504_v49, %v6488_v53  ;;  %v6475_v9 = vsel %vm6459_vm9, %v6442_v18, %v11045_v51  ;;  %v6538_v31 = vmul.f32 0.25, %v6474_v6  ;;  %v6472_v12 = vsel %vm6459_vm9, %v6439_v45, %v11049_v27  ;;  %v11516_v53 = vld [vmem:[#allocation20_spill] sm:$0xff]  ;;  %v11517_v18 = vld [vmem:[#allocation13_spill] sm:$0xff] }
 0x68e   : > { %6602 = vrot.lane.b32.xlu1 %v6571_v48, %s8763_s26  ;;  %v6521_v8 = vadd.f32 %v6505_v13, %v6489_v25  ;;  %v6539_v61 = vmul.f32 0.25, %v6475_v9  ;;  %v6473_v30 = vsel %vm6459_vm9, %v6440_v14, %v11043_v43  ;;  %v6536_v40 = vmul.f32 0.25, %v6472_v12  ;;  %v11519_v25 = vld [vmem:[#allocation22_spill] sm:$0xff]  ;;  %v11520_v6 = vld [vmem:[#allocation21_spill] sm:$0xff] }
 0x68f   : > { %v6554_v5 = vadd.f32 %v6538_v31, %v6506_v33  ;;  %v6537_v54 = vmul.f32 0.25, %v6473_v30  ;;  %v11502_v43 = vpack.c.bf16 %v10709_v36, %v10706_v7  ;;  %v11503_v3 = vpack.c.bf16 %v10715_v0, %v10712_v26  ;;  %v11504_v7 = vld [vmem:[#allocation7_spill] sm:$0xff]  ;;  %v11505_v36 = vld [vmem:[#allocation6_spill] sm:$0xff]  ;;  %v11507_v0 = vld [vmem:[#allocation5_spill] sm:$0xff] }
 0x690   : > { %v6570_v58 = vpack.c.bf16 %v6521_v8, %v6520_v47  ;;  %v6555_v56 = vadd.f32 %v6539_v61, %v6507_v57  ;;  %v6552_v23 = vadd.f32 %v6536_v40, %v6504_v49  ;;  %v11506_v63 = vpack.c.bf16 %v11504_v7, %v11505_v36  ;;  %v11510_v57 = vld [vmem:[#allocation9_spill] sm:$0xff]  ;;  %v7310_v8 = vld [vmem:[%s11280_s17] ss:$0 sm:$0xff] }
 0x691   : > { %v6553_v35 = vadd.f32 %v6537_v54, %v6505_v13  ;;  %v11509_v17 = vpack.c.bf16 %v11507_v0, %v11508_v59  ;;  %v11512_v28 = vpack.c.bf16 %v11510_v57, %v11511_v2  ;;  %v11515_v37 = vpack.c.bf16 %v11513_v24, %v11514_v52 }
 0x692   : > { %6600 = vrot.lane.b32.xlu0 %v6570_v58, %s8763_s26  ;;  %v6579_v51 = vpack.c.bf16 %v6555_v56, %v6554_v5  ;;  %v11518_v45 = vpack.c.bf16 %v11516_v53, %v11517_v18  ;;  %v11521_v14 = vpack.c.bf16 %v11519_v25, %v11520_v6 }
 0x693   : > { %v6578_v1 = vpack.c.bf16 %v6553_v35, %v6552_v23 }
 0x694   : > { %6626 = vrot.lane.b32.xlu1 %v6579_v51, %s8764_s21 }
 0x696   : > { %6624 = vrot.lane.b32.xlu0 %v6578_v1, %s8764_s21 }
 0x6e1   : > { %v6591_v27 = vpop.permute.xlu1 %6590 }
 0x6e2   : > { %v6633_v29 = vsel %vm1069_vm2, %v11502_v43, %v6591_v27 }
 0x6e6   : > { %v6589_v32 = vpop.permute.xlu0 %6588 }
 0x6e7   : > { %v6630_v41 = vsel %vm1069_vm2, %v11503_v3, %v6589_v32 }
 0x6e8   : > { %v6615_v50 = vpop.permute.xlu1 %6614 }
 0x6e9   : > { %v6656_v19 = vsel %vm6652_vm10, %v6633_v29, %v6615_v50 }
 0x6ea   : > { %v6613_v62 = vpop.permute.xlu0 %6612 }
 0x6eb   : > { %v6654_v20 = vsel %vm6652_vm10, %v6630_v41, %v6613_v62 }
 0x6ec   : > { %8240 = vmatprep.mubr.msk.bf16.mxu1 %vm6688_vm11, %v6654_v20 }
 0x6ed   : > { %8241 = vmatmul.mubr.msk.bf16.vlgmr.msra.gmra.mrb[40].mxu1 %vm6688_vm11, %v6656_v19 }
 0x6ee   : > { %v6593_v4 = vpop.permute.xlu0 %6592 }
 0x6ef   : > { %v6636_v42 = vsel %vm1069_vm2, %v11506_v63, %v6593_v4 }
 0x6f0   : > { %v6595_v38 = vpop.permute.xlu1 %6594 }
 0x6f1   : > { %v6639_v60 = vsel %vm1069_vm2, %v11509_v17, %v6595_v38 }
 0x6f2   : > { %v6617_v22 = vpop.permute.xlu0 %6616 }
 0x6f3   : > { %v6658_v26 = vsel %vm6652_vm10, %v6636_v42, %v6617_v22 }
 0x6f4   : > { %v6619_v16 = vpop.permute.xlu1 %6618  ;;  %8244 = vmatprep.mubr.msk.bf16.mxu1 %vm6688_vm11, %v6658_v26 }
 0x6f5   : > { %v6660_v33 = vsel %vm6652_vm10, %v6639_v60, %v6619_v16 }
 0x6f6   : > { %8245 = vmatmul.mubr.msk.bf16.gmra.mrb[44].mxu1 %vm6688_vm11, %v6660_v33 }
 0x6f8   : > { %v6599_v39 = vpop.permute.xlu1 %6598 }
 0x6f9   : > { %v6645_v21 = vsel %vm1069_vm2, %v11512_v28, %v6599_v39 }
 0x6fa   : > { %v6597_v55 = vpop.permute.xlu0 %6596 }
 0x6fb   : > { %v6642_v49 = vsel %vm1069_vm2, %v11515_v37, %v6597_v55 }
 0x6fc   : > { %v6623_v46 = vpop.permute.xlu1 %6622 }
 0x6fd   : > { %v6664_v13 = vsel %vm6652_vm10, %v6645_v21, %v6623_v46 }
 0x6fe   : > { %v6621_v10 = vpop.permute.xlu0 %6620 }
 0x6ff   : > { %v6662_v44 = vsel %vm6652_vm10, %v6642_v49, %v6621_v10 }
 0x700   : > { %8248 = vmatprep.mubr.msk.bf16.mxu1 %vm6688_vm11, %v6662_v44  ;;  %v6603_v15 = vpop.permute.xlu1 %6602 }
 0x701   : > { %8249 = vmatmul.mubr.msk.bf16.gmra.mrb[48].mxu1 %vm6688_vm11, %v6664_v13  ;;  %v6651_v48 = vsel %vm1069_vm2, %v11518_v45, %v6603_v15 }
 0x704   : > { %v6601_v34 = vpop.permute.xlu0 %6600 }
 0x705   : > { %v6648_v47 = vsel %vm1069_vm2, %v11521_v14, %v6601_v34 }
 0x706   : > { %v6627_v11 = vpop.permute.xlu1 %6626 }
 0x707   : > { %v6668_v9 = vsel %vm6652_vm10, %v6651_v48, %v6627_v11 }
 0x708   : > { %v6625_v31 = vpop.permute.xlu0 %6624 }
 0x709   : > { %v6666_v12 = vsel %vm6652_vm10, %v6648_v47, %v6625_v31 }
 0x70a   : > { %8252 = vmatprep.mubr.msk.bf16.mxu1 %vm6688_vm11, %v6666_v12 }
 0x70b   : > { %8253 = vmatmul.mubr.msk.bf16.gmra.mrb[52].mxu1 %vm6688_vm11, %v6668_v9 }
 0x7c0   : > { %v8242_v61 = vpop.f32.mrb[40].mxu1 }
 0x7c1   : > { %v6751_v30 = vadd.f32 %v8242_v61, %v7310_v8  ;;  %v6742_v40 = vpop.f32.mrb[41].mxu1 }
 0x7c2   : > { %v6743_v5 = vadd.f32 %v7310_v8, %v6742_v40  ;;  %v8243_v54 = vpop.f32.mrb[42].mxu1 }
 0x7c3   : > { %6807 = vst.msk [vmem:[%s11226_s25 + $0x10] sm:$0xff] %vm1069_vm2, %v6751_v30  ;;  %v6754_v58 = vadd.f32 %v8243_v54, %v7310_v8  ;;  %v6745_v56 = vpop.f32.mrb[43].mxu1 }
 0x7c4   : > { %6805 = vst.msk [vmem:[%s11226_s25] sm:$0xff] %vm1069_vm2, %v6743_v5  ;;  %v6746_v23 = vadd.f32 %v7310_v8, %v6745_v56 }
 0x7c5   : > { %6808 = vst.msk [vmem:[%s11226_s25 + $0x18] sm:$0xff] %vm1069_vm2, %v6754_v58 }
 0x7c6   : > { %6806 = vst.msk [vmem:[%s11226_s25 + $0x8] sm:$0xff] %vm1069_vm2, %v6746_v23 }
 0x7c9   : > { %v8246_v35 = vpop.f32.mrb[44].mxu1 }
 0x7ca   : > { %v6767_v51 = vadd.f32 %v8246_v35, %v7310_v8  ;;  %v6758_v1 = vpop.f32.mrb[45].mxu1 }
 0x7cb   : > { %v6759_v27 = vadd.f32 %v7310_v8, %v6758_v1  ;;  %v8247_v32 = vpop.f32.mrb[46].mxu1 }
 0x7cc   : > { %6811 = vst.msk [vmem:[%s11226_s25 + $0x30] sm:$0xff] %vm1069_vm2, %v6767_v51  ;;  %v6770_v50 = vadd.f32 %v8247_v32, %v7310_v8  ;;  %v6761_v43 = vpop.f32.mrb[47].mxu1 }
 0x7cd   : > { %6809 = vst.msk [vmem:[%s11226_s25 + $0x20] sm:$0xff] %vm1069_vm2, %v6759_v27  ;;  %v6762_v29 = vadd.f32 %v7310_v8, %v6761_v43 }
 0x7ce   : > { %6812 = vst.msk [vmem:[%s11226_s25 + $0x38] sm:$0xff] %vm1069_vm2, %v6770_v50 }
 0x7cf   : > { %6810 = vst.msk [vmem:[%s11226_s25 + $0x28] sm:$0xff] %vm1069_vm2, %v6762_v29 }
 0x7d4   : > { %v8250_v3 = vpop.f32.mrb[48].mxu1 }
 0x7d5   : > { %v6783_v41 = vadd.f32 %v8250_v3, %v7310_v8  ;;  %v6774_v19 = vpop.f32.mrb[49].mxu1 }
 0x7d6   : > { %v6775_v62 = vadd.f32 %v7310_v8, %v6774_v19  ;;  %v8251_v20 = vpop.f32.mrb[50].mxu1 }
 0x7d7   : > { %6815 = vst.msk [vmem:[%s11226_s25 + $0x50] sm:$0xff] %vm1069_vm2, %v6783_v41  ;;  %v6786_v4 = vadd.f32 %v8251_v20, %v7310_v8  ;;  %v6777_v38 = vpop.f32.mrb[51].mxu1 }
 0x7d8   : > { %6813 = vst.msk [vmem:[%s11226_s25 + $0x40] sm:$0xff] %vm1069_vm2, %v6775_v62  ;;  %v6778_v7 = vadd.f32 %v7310_v8, %v6777_v38 }
 0x7d9   : > { %6816 = vst.msk [vmem:[%s11226_s25 + $0x58] sm:$0xff] %vm1069_vm2, %v6786_v4 }
 0x7da   : > { %6814 = vst.msk [vmem:[%s11226_s25 + $0x48] sm:$0xff] %vm1069_vm2, %v6778_v7 }
 0x7de   : > { %v8254_v36 = vpop.f32.mrb[52].mxu1 }
 0x7df   : > { %v6799_v63 = vadd.f32 %v8254_v36, %v7310_v8  ;;  %v6790_v42 = vpop.f32.mrb[53].mxu1 }
 0x7e0   : > { %v6791_v22 = vadd.f32 %v7310_v8, %v6790_v42  ;;  %v8255_v26 = vpop.f32.mrb[54].mxu1 }
 0x7e1   : > { %6819 = vst.msk [vmem:[%s11226_s25 + $0x70] sm:$0xff] %vm1069_vm2, %v6799_v63  ;;  %v6802_v0 = vadd.f32 %v8255_v26, %v7310_v8  ;;  %v6793_v59 = vpop.f32.mrb[55].mxu1 }
 0x7e2   : > { %6817 = vst.msk [vmem:[%s11226_s25 + $0x60] sm:$0xff] %vm1069_vm2, %v6791_v22  ;;  %v6794_v17 = vadd.f32 %v7310_v8, %v6793_v59 }
 0x7e3   : > { %6820 = vst.msk [vmem:[%s11226_s25 + $0x78] sm:$0xff] %vm1069_vm2, %v6802_v0 }
 0x7e4   : > { %6818 = vst.msk [vmem:[%s11226_s25 + $0x68] sm:$0xff] %vm1069_vm2, %v6794_v17 }
 0x7e5 PF: > { %s28_s27 = sadd.s32 1, %s8759_s27  }
 0x7e6   : > { %p25_p4 = scmp.ge.s32.totalorder %s28_s27, 4  }
 0x7e8   :  { %27 = sbr.rel (!%p25_p4) target bundleno = 4 (0x4), region = 122 }

</bundles_post_ra>
